<compile_context>
chip_gen: v7x
topology: tpu7x:2x2x1
jax: 0.10.0
libtpu: 0.0.40
codegen_flags: <defaults>
</compile_context>

<pallas_src>
import numpy as np
import jax
import jax.numpy as jnp
from jax.experimental import pallas as pl
from jax.experimental.pallas import tpu as pltpu

BT = 8  # images per grid step; BT*28 = 224 rows ~ fills the 256-row MXU


# ----------------------------------------------------------------------------
# Fused kernel: conv1+ReLU+pool1+conv2+ReLU+pool2+flatten+fc for BT images.
# ----------------------------------------------------------------------------
def _make_kernel(bt):
    def nn_kernel(x_ref, k1_ref, b1_ref, m1_ref, s1_ref, gg1_ref,
                  k2_ref, b2_ref, m2_ref, s2_ref, gg2_ref, wf_ref, bf_ref,
                  out_ref):
        f32, bf16 = jnp.float32, jnp.bfloat16

        def dotf(a, b):                                  # small/selection dots in f32
            return jnp.dot(a, b, preferred_element_type=f32)

        # ---- conv1 + ReLU:  rows = img*28 + h, lanes = w*8 + ci ----
        x = x_ref[...]                                   # (bt*28, 28) f32
        r1 = x.shape[0]
        # tap d=-1: y[r] = x[r-1], zeroed where h == 0 (top padding)
        t_m = pltpu.roll(x, 1, axis=0) * m1_ref[:, 0:1]
        # tap d=+1: y[r] = x[r+1], zeroed where h == 27 (bottom padding)
        t_p = pltpu.roll(x, r1 - 1, axis=0) * m1_ref[:, 1:2]
        x3 = jnp.concatenate([t_m, x, t_p], axis=1).astype(bf16)      # (bt*28, 84)
        c1 = jnp.dot(x3, k1_ref[...], preferred_element_type=f32)     # (bt*28, 224)
        c1 = jnp.maximum(c1 + b1_ref[...], 0.0)

        # ---- maxpool 2x2 #1 ----
        mrow = jnp.maximum(c1, pltpu.roll(c1, r1 - 1, axis=0))        # max(row, row+1)
        rcmp = dotf(s1_ref[...], mrow)                                # (bt*14, 224) even rows
        p1 = jnp.maximum(dotf(rcmp, gg1_ref[0]), dotf(rcmp, gg1_ref[1]))  # (bt*14, 112)

        # ---- conv2 + ReLU:  rows = img*14 + h, lanes = w*16 + co ----
        r2 = p1.shape[0]
        u_m = pltpu.roll(p1, 1, axis=0) * m2_ref[:, 0:1]
        u_p = pltpu.roll(p1, r2 - 1, axis=0) * m2_ref[:, 1:2]
        p3 = jnp.concatenate([u_m, p1, u_p], axis=1).astype(bf16)     # (bt*14, 336)
        c2 = jnp.dot(p3, k2_ref[...], preferred_element_type=f32)     # (bt*14, 224)
        c2 = jnp.maximum(c2 + b2_ref[...], 0.0)

        # ---- maxpool 2x2 #2 (rows re-ordered h-major for the FC) ----
        mrow2 = jnp.maximum(c2, pltpu.roll(c2, r2 - 1, axis=0))
        rcmp2 = dotf(s2_ref[...], mrow2)                              # (7*bt, 224), row = h*bt+img
        p2 = jnp.maximum(dotf(rcmp2, gg2_ref[0]), dotf(rcmp2, gg2_ref[1]))  # (7*bt, 112)

        # ---- flatten (NCHW order folded into wf_ref) + fc -> (bt, 128) ----
        acc = bf_ref[...]                                             # (1, 128), cols >=10 zero
        for h in range(7):
            acc = acc + dotf(p2[h * bt:(h + 1) * bt, :], wf_ref[h])   # (bt,112)@(112,128)
        out_ref[...] = acc

    return nn_kernel


# ----------------------------------------------------------------------------
# Host-side (one-time) parameter preparation.
# ----------------------------------------------------------------------------
def prepare_params(params, bt=BT):
    w1, b1, w2, b2, wf, bf = [np.asarray(p, dtype=np.float32) for p in params]

    # conv1 banded im2col weights, taps stacked along rows: (3*28, 28*8)
    K1 = np.zeros((3, 28, 224), np.float32)
    for dh in range(3):
        for w in range(28):
            for dw in range(3):
                wp = w + dw - 1
                if 0 <= wp < 28:
                    K1[dh, wp, w * 8:(w + 1) * 8] = w1[:, 0, dh, dw]
    K1cat = K1.reshape(84, 224)
    b1row = np.tile(b1, 28).reshape(1, 224)

    # conv1 row-shift boundary masks (col 0: tap -1, col 1: tap +1)
    M1 = np.ones((bt * 28, 2), np.float32)
    h1 = np.arange(bt * 28) % 28
    M1[h1 == 0, 0] = 0.0
    M1[h1 == 27, 1] = 0.0

    # pool1 row-compaction (img-major): picks even rows of each image
    S1 = np.zeros((bt * 14, bt * 28), np.float32)
    for img in range(bt):
        for h in range(14):
            S1[img * 14 + h, img * 28 + 2 * h] = 1.0

    # pool1 lane compaction: even / odd width columns
    GG1 = np.zeros((2, 224, 112), np.float32)
    for w in range(14):
        for ci in range(8):
            GG1[0, (2 * w) * 8 + ci, w * 8 + ci] = 1.0
            GG1[1, (2 * w + 1) * 8 + ci, w * 8 + ci] = 1.0

    # conv2 banded im2col weights, taps stacked along rows: (3*112, 14*16)
    K2 = np.zeros((3, 112, 224), np.float32)
    for dh in range(3):
        for w in range(14):
            for dw in range(3):
                wp = w + dw - 1
                if 0 <= wp < 14:
                    K2[dh, wp * 8:(wp + 1) * 8, w * 16:(w + 1) * 16] = w2[:, :, dh, dw].T
    K2cat = K2.reshape(336, 224)
    b2row = np.tile(b2, 14).reshape(1, 224)

    # conv2 row-shift boundary masks
    M2 = np.ones((bt * 14, 2), np.float32)
    h2 = np.arange(bt * 14) % 14
    M2[h2 == 0, 0] = 0.0
    M2[h2 == 13, 1] = 0.0

    # pool2 row-compaction, h-major output rows (row = h*bt + img)
    S2 = np.zeros((7 * bt, bt * 14), np.float32)
    for h in range(7):
        for img in range(bt):
            S2[h * bt + img, img * 14 + 2 * h] = 1.0

    GG2 = np.zeros((2, 224, 112), np.float32)
    for w in range(7):
        for co in range(16):
            GG2[0, (2 * w) * 16 + co, w * 16 + co] = 1.0
            GG2[1, (2 * w + 1) * 16 + co, w * 16 + co] = 1.0

    # fc: PyTorch flatten index is co*49 + h*7 + w; kernel feature index is w*16+co.
    wf4 = wf.reshape(10, 16, 7, 7)                                   # [n, co, h, w]
    wfp = np.transpose(wf4, (2, 3, 1, 0)).reshape(7, 112, 10)        # [h, w*16+co, n]
    WFP = np.zeros((7, 112, 128), np.float32)                        # pad N to 128 lanes
    WFP[:, :, :10] = wfp
    bfrow = np.zeros((1, 128), np.float32)
    bfrow[0, :10] = bf

    # bf16 for the big conv matmul weights (MXU-native on v6e/v7x); rest f32.
    return (jnp.asarray(K1cat).astype(jnp.bfloat16), jnp.asarray(b1row),
            jnp.asarray(M1), jnp.asarray(S1), jnp.asarray(GG1),
            jnp.asarray(K2cat).astype(jnp.bfloat16), jnp.asarray(b2row),
            jnp.asarray(M2), jnp.asarray(S2), jnp.asarray(GG2),
            jnp.asarray(WFP), jnp.asarray(bfrow))


# ----------------------------------------------------------------------------
# Wrapper: single pallas_call, BT images per grid step.
# ----------------------------------------------------------------------------
def nn_forward(x_nchw, prep, bt=BT):
    B = x_nchw.shape[0]
    Bp = ((B + bt - 1) // bt) * bt
    x2 = x_nchw.reshape(B, 28, 28)
    if Bp != B:
        x2 = jnp.pad(x2, ((0, Bp - B), (0, 0), (0, 0)))
    x2 = x2.reshape(Bp * 28, 28)                      # lane-dense (rows, 28) input

    (K1, B1, M1, S1, GG1, K2, B2, M2, S2, GG2, WF, BF) = prep

    out = pl.pallas_call(
        _make_kernel(bt),
        out_shape=jax.ShapeDtypeStruct((Bp, 128), jnp.float32),
        grid=(Bp // bt,),
        in_specs=[
            pl.BlockSpec((bt * 28, 28),      lambda i: (i, 0)),       # x (bt images)
            pl.BlockSpec((84, 224),          lambda i: (0, 0)),       # K1cat (bf16)
            pl.BlockSpec((1, 224),           lambda i: (0, 0)),       # b1 row
            pl.BlockSpec((bt * 28, 2),       lambda i: (0, 0)),       # conv1 masks
            pl.BlockSpec((bt * 14, bt * 28), lambda i: (0, 0)),       # S1
            pl.BlockSpec((2, 224, 112),      lambda i: (0, 0, 0)),    # GG1
            pl.BlockSpec((336, 224),         lambda i: (0, 0)),       # K2cat (bf16)
            pl.BlockSpec((1, 224),           lambda i: (0, 0)),       # b2 row
            pl.BlockSpec((bt * 14, 2),       lambda i: (0, 0)),       # conv2 masks
            pl.BlockSpec((7 * bt, bt * 14),  lambda i: (0, 0)),       # S2 (h-major)
            pl.BlockSpec((2, 224, 112),      lambda i: (0, 0, 0)),    # GG2
            pl.BlockSpec((7, 112, 128),      lambda i: (0, 0, 0)),    # WFP
            pl.BlockSpec((1, 128),           lambda i: (0, 0)),       # bf row
        ],
        out_specs=pl.BlockSpec((bt, 128), lambda i: (i, 0)),
        compiler_params=pltpu.CompilerParams(
            dimension_semantics=("parallel",)),
    )(x2, K1, B1, M1, S1, GG1, K2, B2, M2, S2, GG2, WF, BF)
    return out[:B, :10]


# ----------------------------------------------------------------------------
# Pure-JAX reference (for correctness check)
# ----------------------------------------------------------------------------
def reference_forward(x_nchw, params):
    w1, b1, w2, b2, wf, bf = params
    dn = ("NCHW", "OIHW", "NCHW")
    hi = jax.lax.Precision.HIGHEST

    def conv(x, w, b):
        y = jax.lax.conv_general_dilated(
            x, w, (1, 1), ((1, 1), (1, 1)), dimension_numbers=dn, precision=hi)
        return jnp.maximum(y + b[None, :, None, None], 0.0)

    def pool(x):
        return jax.lax.reduce_window(
            x, -jnp.inf, jax.lax.max, (1, 1, 2, 2), (1, 1, 2, 2), "VALID")

    y = pool(conv(x_nchw, w1, b1))
    y = pool(conv(y, w2, b2))
    y = y.reshape(y.shape[0], -1)
    return jnp.dot(y, wf.T, precision=hi) + bf


# ----------------------------------------------------------------------------
if __name__ == "__main__":
    key = jax.random.PRNGKey(0)
    ks = jax.random.split(key, 7)

    B = 16  # small batch; 2 grid steps of BT=8 (even grid -> both v7x TCs busy)
    x = jax.random.normal(ks[0], (B, 1, 28, 28), jnp.float32)

    # Deterministic synthetic parameters (PyTorch weight shape conventions).
    w1 = jax.random.normal(ks[1], (8, 1, 3, 3), jnp.float32) * 0.2
    b1 = jax.random.normal(ks[2], (8,), jnp.float32) * 0.1
    w2 = jax.random.normal(ks[3], (16, 8, 3, 3), jnp.float32) * 0.1
    b2 = jax.random.normal(ks[4], (16,), jnp.float32) * 0.1
    wf = jax.random.normal(ks[5], (10, 16 * 7 * 7), jnp.float32) * 0.05
    bf = jax.random.normal(ks[6], (10,), jnp.float32) * 0.1
    params = (w1, b1, w2, b2, wf, bf)

    prep = prepare_params(params)          # one-time host-side weight packing
    out = jax.block_until_ready(nn_forward(x, prep))
    assert out.shape == (B, 10) and out.dtype == jnp.float32

    ref = jax.block_until_ready(reference_forward(x, params))
    # Tolerance covers bf16 conv-matmul operands (f32 accumulation) plus MXU
    # rounding across the chained conv/pool/fc dots vs. the HIGHEST-precision
    # f32 reference.
    np.testing.assert_allclose(np.asarray(out), np.asarray(ref), rtol=2e-2, atol=2e-2)

    print("KERNEL_OK")
</pallas_src>

<mosaic_0001>
module attributes {stable_mosaic.version = 11 : i64} {
  func.func @nn_kernel(%arg0: i32, %arg1: memref<224x28xf32, #tpu.memory_space<vmem>>, %arg2: memref<84x224xbf16, #tpu.memory_space<vmem>>, %arg3: memref<1x224xf32, #tpu.memory_space<vmem>>, %arg4: memref<224x2xf32, #tpu.memory_space<vmem>>, %arg5: memref<112x224xf32, #tpu.memory_space<vmem>>, %arg6: memref<2x224x112xf32, #tpu.memory_space<vmem>>, %arg7: memref<336x224xbf16, #tpu.memory_space<vmem>>, %arg8: memref<1x224xf32, #tpu.memory_space<vmem>>, %arg9: memref<112x2xf32, #tpu.memory_space<vmem>>, %arg10: memref<56x112xf32, #tpu.memory_space<vmem>>, %arg11: memref<2x224x112xf32, #tpu.memory_space<vmem>>, %arg12: memref<7x112x128xf32, #tpu.memory_space<vmem>>, %arg13: memref<1x128xf32, #tpu.memory_space<vmem>>, %arg14: memref<8x128xf32, #tpu.memory_space<vmem>>) attributes {dimension_semantics = [#tpu.dimension_semantics<parallel>], iteration_bounds = array<i64: 2>, scalar_prefetch = 0 : i64, scratch_operands = 0 : i64, tpu.core_type = #tpu.core_type<tc>, window_params = [{transform_indices = @transform_0, window_bounds = array<i64: 224, 28>}, {pipeline_mode = #tpu.pipeline_mode<synchronous>, transform_indices = @transform_1, window_bounds = array<i64: 84, 224>}, {pipeline_mode = #tpu.pipeline_mode<synchronous>, transform_indices = @transform_2, window_bounds = array<i64: 1, 224>}, {pipeline_mode = #tpu.pipeline_mode<synchronous>, transform_indices = @transform_3, window_bounds = array<i64: 224, 2>}, {pipeline_mode = #tpu.pipeline_mode<synchronous>, transform_indices = @transform_4, window_bounds = array<i64: 112, 224>}, {pipeline_mode = #tpu.pipeline_mode<synchronous>, transform_indices = @transform_5, window_bounds = array<i64: 2, 224, 112>}, {pipeline_mode = #tpu.pipeline_mode<synchronous>, transform_indices = @transform_6, window_bounds = array<i64: 336, 224>}, {pipeline_mode = #tpu.pipeline_mode<synchronous>, transform_indices = @transform_7, window_bounds = array<i64: 1, 224>}, {pipeline_mode = #tpu.pipeline_mode<synchronous>, transform_indices = @transform_8, window_bounds = array<i64: 112, 2>}, {pipeline_mode = #tpu.pipeline_mode<synchronous>, transform_indices = @transform_9, window_bounds = array<i64: 56, 112>}, {pipeline_mode = #tpu.pipeline_mode<synchronous>, transform_indices = @transform_10, window_bounds = array<i64: 2, 224, 112>}, {pipeline_mode = #tpu.pipeline_mode<synchronous>, transform_indices = @transform_11, window_bounds = array<i64: 7, 112, 128>}, {pipeline_mode = #tpu.pipeline_mode<synchronous>, transform_indices = @transform_12, window_bounds = array<i64: 1, 128>}, {transform_indices = @transform_13, window_bounds = array<i64: 8, 128>}]} {
    %c0 = arith.constant 0 : index
    %c0_0 = arith.constant 0 : index
    %0 = vector.load %arg1[%c0, %c0_0] : memref<224x28xf32, #tpu.memory_space<vmem>>, vector<224x28xf32>
    %c1_i32 = arith.constant 1 : i32
    %1 = tpu.dynamic_rotate %0 by %c1_i32 dim 0 : vector<224x28xf32>, i32 -> vector<224x28xf32>
    %c0_1 = arith.constant 0 : index
    %c0_2 = arith.constant 0 : index
    %2 = vector.load %arg4[%c0_1, %c0_2] : memref<224x2xf32, #tpu.memory_space<vmem>>, vector<224x1xf32>
    %3 = vector.broadcast %2 : vector<224x1xf32> to vector<224x28xf32>
    %4 = arith.mulf %1, %3 : vector<224x28xf32>
    %c223_i32 = arith.constant 223 : i32
    %5 = tpu.dynamic_rotate %0 by %c223_i32 dim 0 : vector<224x28xf32>, i32 -> vector<224x28xf32>
    %c0_3 = arith.constant 0 : index
    %c1 = arith.constant 1 : index
    %6 = vector.load %arg4[%c0_3, %c1] : memref<224x2xf32, #tpu.memory_space<vmem>>, vector<224x1xf32>
    %7 = vector.broadcast %6 : vector<224x1xf32> to vector<224x28xf32>
    %8 = arith.mulf %5, %7 : vector<224x28xf32>
    %9 = tpu.concatenate %4, %0, %8 in 1 : vector<224x28xf32>, vector<224x28xf32>, vector<224x28xf32> -> vector<224x84xf32>
    %10 = arith.truncf %9 : vector<224x84xf32> to vector<224x84xbf16>
    %c0_4 = arith.constant 0 : index
    %c0_5 = arith.constant 0 : index
    %11 = vector.load %arg2[%c0_4, %c0_5] : memref<84x224xbf16, #tpu.memory_space<vmem>>, vector<84x224xbf16>
    %cst = arith.constant dense<0.000000e+00> : vector<224x224xf32>
    %12 = tpu.matmul %10, %11, %cst {dimension_numbers = #tpu.dot_dimension_numbers<[1], [0], [0], [1], [0, 0, 1, 1], [], []>} : vector<224x84xbf16>, vector<84x224xbf16>, vector<224x224xf32> -> vector<224x224xf32>
    %c0_6 = arith.constant 0 : index
    %c0_7 = arith.constant 0 : index
    %13 = vector.load %arg3[%c0_6, %c0_7] : memref<1x224xf32, #tpu.memory_space<vmem>>, vector<1x224xf32>
    %14 = vector.broadcast %13 : vector<1x224xf32> to vector<224x224xf32>
    %15 = arith.addf %12, %14 : vector<224x224xf32>
    %cst_8 = arith.constant 0.000000e+00 : f32
    %16 = vector.broadcast %cst_8 : f32 to vector<224x224xf32>
    %17 = arith.maximumf %15, %16 : vector<224x224xf32>
    %c223_i32_9 = arith.constant 223 : i32
    %18 = tpu.dynamic_rotate %17 by %c223_i32_9 dim 0 : vector<224x224xf32>, i32 -> vector<224x224xf32>
    %19 = arith.maximumf %17, %18 : vector<224x224xf32>
    %c0_10 = arith.constant 0 : index
    %c0_11 = arith.constant 0 : index
    %20 = vector.load %arg5[%c0_10, %c0_11] : memref<112x224xf32, #tpu.memory_space<vmem>>, vector<112x224xf32>
    %cst_12 = arith.constant dense<0.000000e+00> : vector<112x224xf32>
    %21 = tpu.matmul %20, %19, %cst_12 {dimension_numbers = #tpu.dot_dimension_numbers<[1], [0], [0], [1], [0, 0, 1, 1], [], []>} : vector<112x224xf32>, vector<224x224xf32>, vector<112x224xf32> -> vector<112x224xf32>
    %c0_13 = arith.constant 0 : index
    %c0_14 = arith.constant 0 : index
    %c0_15 = arith.constant 0 : index
    %22 = vector.load %arg6[%c0_13, %c0_14, %c0_15] : memref<2x224x112xf32, #tpu.memory_space<vmem>>, vector<1x224x112xf32>
    %23 = vector.shape_cast %22 : vector<1x224x112xf32> to vector<224x112xf32>
    %cst_16 = arith.constant dense<0.000000e+00> : vector<112x112xf32>
    %24 = tpu.matmul %21, %23, %cst_16 {dimension_numbers = #tpu.dot_dimension_numbers<[1], [0], [0], [1], [0, 0, 1, 1], [], []>} : vector<112x224xf32>, vector<224x112xf32>, vector<112x112xf32> -> vector<112x112xf32>
    %c1_17 = arith.constant 1 : index
    %c0_18 = arith.constant 0 : index
    %c0_19 = arith.constant 0 : index
    %25 = vector.load %arg6[%c1_17, %c0_18, %c0_19] : memref<2x224x112xf32, #tpu.memory_space<vmem>>, vector<1x224x112xf32>
    %26 = vector.shape_cast %25 : vector<1x224x112xf32> to vector<224x112xf32>
    %cst_20 = arith.constant dense<0.000000e+00> : vector<112x112xf32>
    %27 = tpu.matmul %21, %26, %cst_20 {dimension_numbers = #tpu.dot_dimension_numbers<[1], [0], [0], [1], [0, 0, 1, 1], [], []>} : vector<112x224xf32>, vector<224x112xf32>, vector<112x112xf32> -> vector<112x112xf32>
    %28 = arith.maximumf %24, %27 : vector<112x112xf32>
    %c1_i32_21 = arith.constant 1 : i32
    %29 = tpu.dynamic_rotate %28 by %c1_i32_21 dim 0 : vector<112x112xf32>, i32 -> vector<112x112xf32>
    %c0_22 = arith.constant 0 : index
    %c0_23 = arith.constant 0 : index
    %30 = vector.load %arg9[%c0_22, %c0_23] : memref<112x2xf32, #tpu.memory_space<vmem>>, vector<112x1xf32>
    %31 = vector.broadcast %30 : vector<112x1xf32> to vector<112x112xf32>
    %32 = arith.mulf %29, %31 : vector<112x112xf32>
    %c111_i32 = arith.constant 111 : i32
    %33 = tpu.dynamic_rotate %28 by %c111_i32 dim 0 : vector<112x112xf32>, i32 -> vector<112x112xf32>
    %c0_24 = arith.constant 0 : index
    %c1_25 = arith.constant 1 : index
    %34 = vector.load %arg9[%c0_24, %c1_25] : memref<112x2xf32, #tpu.memory_space<vmem>>, vector<112x1xf32>
    %35 = vector.broadcast %34 : vector<112x1xf32> to vector<112x112xf32>
    %36 = arith.mulf %33, %35 : vector<112x112xf32>
    %37 = tpu.concatenate %32, %28, %36 in 1 : vector<112x112xf32>, vector<112x112xf32>, vector<112x112xf32> -> vector<112x336xf32>
    %38 = arith.truncf %37 : vector<112x336xf32> to vector<112x336xbf16>
    %c0_26 = arith.constant 0 : index
    %c0_27 = arith.constant 0 : index
    %39 = vector.load %arg7[%c0_26, %c0_27] : memref<336x224xbf16, #tpu.memory_space<vmem>>, vector<336x224xbf16>
    %cst_28 = arith.constant dense<0.000000e+00> : vector<112x224xf32>
    %40 = tpu.matmul %38, %39, %cst_28 {dimension_numbers = #tpu.dot_dimension_numbers<[1], [0], [0], [1], [0, 0, 1, 1], [], []>} : vector<112x336xbf16>, vector<336x224xbf16>, vector<112x224xf32> -> vector<112x224xf32>
    %c0_29 = arith.constant 0 : index
    %c0_30 = arith.constant 0 : index
    %41 = vector.load %arg8[%c0_29, %c0_30] : memref<1x224xf32, #tpu.memory_space<vmem>>, vector<1x224xf32>
    %42 = vector.broadcast %41 : vector<1x224xf32> to vector<112x224xf32>
    %43 = arith.addf %40, %42 : vector<112x224xf32>
    %cst_31 = arith.constant 0.000000e+00 : f32
    %44 = vector.broadcast %cst_31 : f32 to vector<112x224xf32>
    %45 = arith.maximumf %43, %44 : vector<112x224xf32>
    %c111_i32_32 = arith.constant 111 : i32
    %46 = tpu.dynamic_rotate %45 by %c111_i32_32 dim 0 : vector<112x224xf32>, i32 -> vector<112x224xf32>
    %47 = arith.maximumf %45, %46 : vector<112x224xf32>
    %c0_33 = arith.constant 0 : index
    %c0_34 = arith.constant 0 : index
    %48 = vector.load %arg10[%c0_33, %c0_34] : memref<56x112xf32, #tpu.memory_space<vmem>>, vector<56x112xf32>
    %cst_35 = arith.constant dense<0.000000e+00> : vector<56x224xf32>
    %49 = tpu.matmul %48, %47, %cst_35 {dimension_numbers = #tpu.dot_dimension_numbers<[1], [0], [0], [1], [0, 0, 1, 1], [], []>} : vector<56x112xf32>, vector<112x224xf32>, vector<56x224xf32> -> vector<56x224xf32>
    %c0_36 = arith.constant 0 : index
    %c0_37 = arith.constant 0 : index
    %c0_38 = arith.constant 0 : index
    %50 = vector.load %arg11[%c0_36, %c0_37, %c0_38] : memref<2x224x112xf32, #tpu.memory_space<vmem>>, vector<1x224x112xf32>
    %51 = vector.shape_cast %50 : vector<1x224x112xf32> to vector<224x112xf32>
    %cst_39 = arith.constant dense<0.000000e+00> : vector<56x112xf32>
    %52 = tpu.matmul %49, %51, %cst_39 {dimension_numbers = #tpu.dot_dimension_numbers<[1], [0], [0], [1], [0, 0, 1, 1], [], []>} : vector<56x224xf32>, vector<224x112xf32>, vector<56x112xf32> -> vector<56x112xf32>
    %c1_40 = arith.constant 1 : index
    %c0_41 = arith.constant 0 : index
    %c0_42 = arith.constant 0 : index
    %53 = vector.load %arg11[%c1_40, %c0_41, %c0_42] : memref<2x224x112xf32, #tpu.memory_space<vmem>>, vector<1x224x112xf32>
    %54 = vector.shape_cast %53 : vector<1x224x112xf32> to vector<224x112xf32>
    %cst_43 = arith.constant dense<0.000000e+00> : vector<56x112xf32>
    %55 = tpu.matmul %49, %54, %cst_43 {dimension_numbers = #tpu.dot_dimension_numbers<[1], [0], [0], [1], [0, 0, 1, 1], [], []>} : vector<56x224xf32>, vector<224x112xf32>, vector<56x112xf32> -> vector<56x112xf32>
    %56 = arith.maximumf %52, %55 : vector<56x112xf32>
    %c0_44 = arith.constant 0 : index
    %c0_45 = arith.constant 0 : index
    %57 = vector.load %arg13[%c0_44, %c0_45] : memref<1x128xf32, #tpu.memory_space<vmem>>, vector<1x128xf32>
    %58 = vector.extract_strided_slice %56 {offsets = [0, 0], sizes = [8, 112], strides = [1, 1]} : vector<56x112xf32> to vector<8x112xf32>
    %c0_46 = arith.constant 0 : index
    %c0_47 = arith.constant 0 : index
    %c0_48 = arith.constant 0 : index
    %59 = vector.load %arg12[%c0_46, %c0_47, %c0_48] : memref<7x112x128xf32, #tpu.memory_space<vmem>>, vector<1x112x128xf32>
    %60 = vector.shape_cast %59 : vector<1x112x128xf32> to vector<112x128xf32>
    %cst_49 = arith.constant dense<0.000000e+00> : vector<8x128xf32>
    %61 = tpu.matmul %58, %60, %cst_49 {dimension_numbers = #tpu.dot_dimension_numbers<[1], [0], [0], [1], [0, 0, 1, 1], [], []>} : vector<8x112xf32>, vector<112x128xf32>, vector<8x128xf32> -> vector<8x128xf32>
    %62 = vector.broadcast %57 : vector<1x128xf32> to vector<8x128xf32>
    %63 = arith.addf %62, %61 : vector<8x128xf32>
    %64 = vector.extract_strided_slice %56 {offsets = [8, 0], sizes = [8, 112], strides = [1, 1]} : vector<56x112xf32> to vector<8x112xf32>
    %c1_50 = arith.constant 1 : index
    %c0_51 = arith.constant 0 : index
    %c0_52 = arith.constant 0 : index
    %65 = vector.load %arg12[%c1_50, %c0_51, %c0_52] : memref<7x112x128xf32, #tpu.memory_space<vmem>>, vector<1x112x128xf32>
    %66 = vector.shape_cast %65 : vector<1x112x128xf32> to vector<112x128xf32>
    %cst_53 = arith.constant dense<0.000000e+00> : vector<8x128xf32>
    %67 = tpu.matmul %64, %66, %cst_53 {dimension_numbers = #tpu.dot_dimension_numbers<[1], [0], [0], [1], [0, 0, 1, 1], [], []>} : vector<8x112xf32>, vector<112x128xf32>, vector<8x128xf32> -> vector<8x128xf32>
    %68 = arith.addf %63, %67 : vector<8x128xf32>
    %69 = vector.extract_strided_slice %56 {offsets = [16, 0], sizes = [8, 112], strides = [1, 1]} : vector<56x112xf32> to vector<8x112xf32>
    %c2 = arith.constant 2 : index
    %c0_54 = arith.constant 0 : index
    %c0_55 = arith.constant 0 : index
    %70 = vector.load %arg12[%c2, %c0_54, %c0_55] : memref<7x112x128xf32, #tpu.memory_space<vmem>>, vector<1x112x128xf32>
    %71 = vector.shape_cast %70 : vector<1x112x128xf32> to vector<112x128xf32>
    %cst_56 = arith.constant dense<0.000000e+00> : vector<8x128xf32>
    %72 = tpu.matmul %69, %71, %cst_56 {dimension_numbers = #tpu.dot_dimension_numbers<[1], [0], [0], [1], [0, 0, 1, 1], [], []>} : vector<8x112xf32>, vector<112x128xf32>, vector<8x128xf32> -> vector<8x128xf32>
    %73 = arith.addf %68, %72 : vector<8x128xf32>
    %74 = vector.extract_strided_slice %56 {offsets = [24, 0], sizes = [8, 112], strides = [1, 1]} : vector<56x112xf32> to vector<8x112xf32>
    %c3 = arith.constant 3 : index
    %c0_57 = arith.constant 0 : index
    %c0_58 = arith.constant 0 : index
    %75 = vector.load %arg12[%c3, %c0_57, %c0_58] : memref<7x112x128xf32, #tpu.memory_space<vmem>>, vector<1x112x128xf32>
    %76 = vector.shape_cast %75 : vector<1x112x128xf32> to vector<112x128xf32>
    %cst_59 = arith.constant dense<0.000000e+00> : vector<8x128xf32>
    %77 = tpu.matmul %74, %76, %cst_59 {dimension_numbers = #tpu.dot_dimension_numbers<[1], [0], [0], [1], [0, 0, 1, 1], [], []>} : vector<8x112xf32>, vector<112x128xf32>, vector<8x128xf32> -> vector<8x128xf32>
    %78 = arith.addf %73, %77 : vector<8x128xf32>
    %79 = vector.extract_strided_slice %56 {offsets = [32, 0], sizes = [8, 112], strides = [1, 1]} : vector<56x112xf32> to vector<8x112xf32>
    %c4 = arith.constant 4 : index
    %c0_60 = arith.constant 0 : index
    %c0_61 = arith.constant 0 : index
    %80 = vector.load %arg12[%c4, %c0_60, %c0_61] : memref<7x112x128xf32, #tpu.memory_space<vmem>>, vector<1x112x128xf32>
    %81 = vector.shape_cast %80 : vector<1x112x128xf32> to vector<112x128xf32>
    %cst_62 = arith.constant dense<0.000000e+00> : vector<8x128xf32>
    %82 = tpu.matmul %79, %81, %cst_62 {dimension_numbers = #tpu.dot_dimension_numbers<[1], [0], [0], [1], [0, 0, 1, 1], [], []>} : vector<8x112xf32>, vector<112x128xf32>, vector<8x128xf32> -> vector<8x128xf32>
    %83 = arith.addf %78, %82 : vector<8x128xf32>
    %84 = vector.extract_strided_slice %56 {offsets = [40, 0], sizes = [8, 112], strides = [1, 1]} : vector<56x112xf32> to vector<8x112xf32>
    %c5 = arith.constant 5 : index
    %c0_63 = arith.constant 0 : index
    %c0_64 = arith.constant 0 : index
    %85 = vector.load %arg12[%c5, %c0_63, %c0_64] : memref<7x112x128xf32, #tpu.memory_space<vmem>>, vector<1x112x128xf32>
    %86 = vector.shape_cast %85 : vector<1x112x128xf32> to vector<112x128xf32>
    %cst_65 = arith.constant dense<0.000000e+00> : vector<8x128xf32>
    %87 = tpu.matmul %84, %86, %cst_65 {dimension_numbers = #tpu.dot_dimension_numbers<[1], [0], [0], [1], [0, 0, 1, 1], [], []>} : vector<8x112xf32>, vector<112x128xf32>, vector<8x128xf32> -> vector<8x128xf32>
    %88 = arith.addf %83, %87 : vector<8x128xf32>
    %89 = vector.extract_strided_slice %56 {offsets = [48, 0], sizes = [8, 112], strides = [1, 1]} : vector<56x112xf32> to vector<8x112xf32>
    %c6 = arith.constant 6 : index
    %c0_66 = arith.constant 0 : index
    %c0_67 = arith.constant 0 : index
    %90 = vector.load %arg12[%c6, %c0_66, %c0_67] : memref<7x112x128xf32, #tpu.memory_space<vmem>>, vector<1x112x128xf32>
    %91 = vector.shape_cast %90 : vector<1x112x128xf32> to vector<112x128xf32>
    %cst_68 = arith.constant dense<0.000000e+00> : vector<8x128xf32>
    %92 = tpu.matmul %89, %91, %cst_68 {dimension_numbers = #tpu.dot_dimension_numbers<[1], [0], [0], [1], [0, 0, 1, 1], [], []>} : vector<8x112xf32>, vector<112x128xf32>, vector<8x128xf32> -> vector<8x128xf32>
    %93 = arith.addf %88, %92 : vector<8x128xf32>
    %c0_69 = arith.constant 0 : index
    %c0_70 = arith.constant 0 : index
    %94 = vector.load %arg14[%c0_69, %c0_70] : memref<8x128xf32, #tpu.memory_space<vmem>>, vector<8x128xf32>
    tpu.vector_store %arg14[%c0_69, %c0_70], %93 {strides = array<i32>} : memref<8x128xf32, #tpu.memory_space<vmem>>, vector<8x128xf32>,
    return
  }
  func.func @transform_0(%arg0: i32) -> (i32, i32) {
    %c0_i32 = arith.constant 0 : i32
    %c0_i32_0 = arith.constant 0 : i32
    return %arg0, %c0_i32 : i32, i32
  }
  func.func @transform_1(%arg0: i32) -> (i32, i32) {
    %c0_i32 = arith.constant 0 : i32
    %c0_i32_0 = arith.constant 0 : i32
    %c0_i32_1 = arith.constant 0 : i32
    return %c0_i32, %c0_i32_0 : i32, i32
  }
  func.func @transform_2(%arg0: i32) -> (i32, i32) {
    %c0_i32 = arith.constant 0 : i32
    %c0_i32_0 = arith.constant 0 : i32
    %c0_i32_1 = arith.constant 0 : i32
    return %c0_i32, %c0_i32_0 : i32, i32
  }
  func.func @transform_3(%arg0: i32) -> (i32, i32) {
    %c0_i32 = arith.constant 0 : i32
    %c0_i32_0 = arith.constant 0 : i32
    %c0_i32_1 = arith.constant 0 : i32
    return %c0_i32, %c0_i32_0 : i32, i32
  }
  func.func @transform_4(%arg0: i32) -> (i32, i32) {
    %c0_i32 = arith.constant 0 : i32
    %c0_i32_0 = arith.constant 0 : i32
    %c0_i32_1 = arith.constant 0 : i32
    return %c0_i32, %c0_i32_0 : i32, i32
  }
  func.func @transform_5(%arg0: i32) -> (i32, i32, i32) {
    %c0_i32 = arith.constant 0 : i32
    %c0_i32_0 = arith.constant 0 : i32
    %c0_i32_1 = arith.constant 0 : i32
    %c0_i32_2 = arith.constant 0 : i32
    return %c0_i32, %c0_i32_0, %c0_i32_1 : i32, i32, i32
  }
  func.func @transform_6(%arg0: i32) -> (i32, i32) {
    %c0_i32 = arith.constant 0 : i32
    %c0_i32_0 = arith.constant 0 : i32
    %c0_i32_1 = arith.constant 0 : i32
    return %c0_i32, %c0_i32_0 : i32, i32
  }
  func.func @transform_7(%arg0: i32) -> (i32, i32) {
    %c0_i32 = arith.constant 0 : i32
    %c0_i32_0 = arith.constant 0 : i32
    %c0_i32_1 = arith.constant 0 : i32
    return %c0_i32, %c0_i32_0 : i32, i32
  }
  func.func @transform_8(%arg0: i32) -> (i32, i32) {
    %c0_i32 = arith.constant 0 : i32
    %c0_i32_0 = arith.constant 0 : i32
    %c0_i32_1 = arith.constant 0 : i32
    return %c0_i32, %c0_i32_0 : i32, i32
  }
  func.func @transform_9(%arg0: i32) -> (i32, i32) {
    %c0_i32 = arith.constant 0 : i32
    %c0_i32_0 = arith.constant 0 : i32
    %c0_i32_1 = arith.constant 0 : i32
    return %c0_i32, %c0_i32_0 : i32, i32
  }
  func.func @transform_10(%arg0: i32) -> (i32, i32, i32) {
    %c0_i32 = arith.constant 0 : i32
    %c0_i32_0 = arith.constant 0 : i32
    %c0_i32_1 = arith.constant 0 : i32
    %c0_i32_2 = arith.constant 0 : i32
    return %c0_i32, %c0_i32_0, %c0_i32_1 : i32, i32, i32
  }
  func.func @transform_11(%arg0: i32) -> (i32, i32, i32) {
    %c0_i32 = arith.constant 0 : i32
    %c0_i32_0 = arith.constant 0 : i32
    %c0_i32_1 = arith.constant 0 : i32
    %c0_i32_2 = arith.constant 0 : i32
    return %c0_i32, %c0_i32_0, %c0_i32_1 : i32, i32, i32
  }
  func.func @transform_12(%arg0: i32) -> (i32, i32) {
    %c0_i32 = arith.constant 0 : i32
    %c0_i32_0 = arith.constant 0 : i32
    %c0_i32_1 = arith.constant 0 : i32
    return %c0_i32, %c0_i32_0 : i32, i32
  }
  func.func @transform_13(%arg0: i32) -> (i32, i32) {
    %c0_i32 = arith.constant 0 : i32
    %c0_i32_0 = arith.constant 0 : i32
    return %arg0, %c0_i32 : i32, i32
  }
}

</mosaic_0001>

<bundles_post_ra>
// kernel: tpu_custom_call.1
= control target key start
LH: loop header
LB: loop body
LE: loop exit
PB: predicated region body
PF: predicated region fallthrough
CT: control target
= control target key end

     0   :  { %s8624_s0 = inlined_call_operand.vmem [shape: f32[448,28], index: 0, kind: input, shape index: {}]   ;;  %s8625_s1 = inlined_call_operand.vmem [shape: bf16[84,224], index: 1, kind: input, shape index: {}]   ;;  %s8626_s2 = inlined_call_operand.vmem [shape: f32[1,224], index: 2, kind: input, shape index: {}]   ;;  %s8627_s3 = inlined_call_operand.vmem [shape: f32[224,2], index: 3, kind: input, shape index: {}]   ;;  %s8628_s4 = inlined_call_operand.hbm [shape: f32[112,224], index: 4, kind: input, shape index: {}]   ;;  %s8629_s5 = inlined_call_operand.hbm [shape: f32[2,224,112], index: 5, kind: input, shape index: {}]   ;;  %s8630_s6 = inlined_call_operand.hbm [shape: bf16[336,224], index: 6, kind: input, shape index: {}]   ;;  %s8631_s7 = inlined_call_operand.vmem [shape: f32[1,224], index: 7, kind: input, shape index: {}]   ;;  %s8632_s8 = inlined_call_operand.vmem [shape: f32[112,2], index: 8, kind: input, shape index: {}]   ;;  %s8633_s9 = inlined_call_operand.vmem [shape: f32[56,112], index: 9, kind: input, shape index: {}]   ;;  %s8634_s10 = inlined_call_operand.hbm [shape: f32[2,224,112], index: 10, kind: input, shape index: {}]   ;;  %s8635_s11 = inlined_call_operand.vmem [shape: f32[7,112,128], index: 11, kind: input, shape index: {}]   ;;  %s8636_s12 = inlined_call_operand.vmem [shape: f32[1,128], index: 12, kind: input, shape index: {}]   ;;  %s8637_s13 = inlined_call_operand.hbm [shape: f32[16,128], index: 13, kind: output, shape index: {}]  }
   0x1   :  { %8655 = sst [smem:[#allocation21_spill]] %s8629_s5 }
   0x2   :  { %8656 = sst [smem:[#allocation22_spill]] %s8636_s12 }
   0x3   :  { %8657 = sst [smem:[#allocation23_spill]] %s8637_s13 }
   0x4   :  { %18 = vsyncpa [#allocation3], 0 }
   0x5   :  { %19 = vsyncpa [#allocation6], 0 }
   0x6   :  { %20 = vsyncpa [#allocation9], 0 }
   0x7   :  { %21 = vsyncpa [#allocation4], 0 }
   0x8   :  { %23 = vsyncpa [#allocation4 + $0x1], 0  ;;  %s6283_s25 = smov 0   ;;  %s6285_s26 = smov 0  }
   0x9   :  { %s6287_s27 = smov 0   ;;  %s6289_s28 = smov 0  }
   0xa LB: > { %8658 = sst [smem:[#allocation15_spill]] %s6181_s25  ;;  %s6304_s29 = sadd.s32 4294967295, %s6193_s28   ;;  %s6193_s28 = sphi %s6289_s28, %s8689_s28   ;;  %s6189_s27 = sphi %s6287_s27, %s8691_s27   ;;  %s6185_s26 = sphi %s6285_s26, %s8693_s26   ;;  %s6181_s25 = sphi %s6283_s25, %s8692_s25  }
   0xb   : > { %8659 = sst [smem:[#allocation16_spill]] %s6189_s27  ;;  %s4559_s30 = sadd.s32 4294967294, %s6193_s28  }
   0xc   : > { %8660 = sst [smem:[#allocation17_spill]] %s6193_s28  ;;  %s6308_s14 = sadd.s32 1, %s6193_s28  }
   0xd   : > { %8661 = sst [smem:[#allocation18_spill]] %s6308_s14  ;;  %s314_s15 = sadd.s32 1, %s6189_s27 }
   0xe   : > { %s311_s16 = ssub.s32 %s6193_s28, %s6308_s14  ;;  %p324_p0 = scmp.ne.s32.totalorder %s6189_s27, %s6185_s26 }
   0xf   : > { %p312_p1 = scmp.eq.s32.totalorder %s311_s16, 0  ;;  %p325_p2 = scmp.eq.s32.totalorder %s6304_s29, 1 }
  0x10   : > { %p330_p3 = scmp.ne.s32.totalorder %s6185_s26, %s6181_s25  ;;  %p331_p4 = scmp.eq.s32.totalorder %s4559_s30, 1 }
  0x11   : > { %s6319_s17 = scalar_select %p312_p1, %s6189_s27, %s314_s15  }
  0x12   : > { %p6321_p5 = por %p325_p2, %p324_p0  ;;  %p6325_p6 = por %p331_p4, %p330_p3 }
  0x13   : > { %8662 = sst [smem:[#allocation19_spill]] %s6319_s17  ;;  %p4560_p7 = scmp.ge.s32.totalorder %s6193_s28, 1 }
  0x14   : > { %s8663_s18 = scalar_select %p6321_p5, 1, 0 }
  0x15   : > { %s8664_s19 = scalar_select %p6325_p6, 1, 0 }
  0x16   : > { %p338_p8 = scmp.lt.s32.totalorder %s6193_s28, 3  ;;  %p8642_p9 = scmp.eq.s32.totalorder %s6304_s29, 0 }
  0x17   : > { %8665 = sst [smem:[#allocation20_spill]] %s8664_s19  ;;  %s6195_s21 = smov [#allocation5]  }
  0x18   : > { %p6332_p10 = pnand %p4560_p7, %p338_p8  ;;  %s372_s22 = sshll.u32 %s6195_s21, 4  ;;  %s373_s22 = int_to_ptr.vmem [resolvable:$true] %s372_s22 }
  0x19   : > { %s6196_s24 = smov [#allocation2]   ;;  %s8668_s5 = sld [smem:[#allocation21_spill]] }
  0x1a   : > { %s8666_s20 = scalar_select %p6332_p10, 1, 0 }
  0x1b   : > { %p5627_p11 = pneg %p6332_p10  ;;  %s359_s30 = sshll.u32 %s6196_s24, 4  ;;  %s6344_s30 = int_to_ptr.vmem [resolvable:$true] %s359_s30 }
  0x1d   : > { %p6340_p12 = pnand %p8642_p9, %p5627_p11 }
  0x1f   : > { %s6007_s17 = scalar_lea.hbm %s8668_s5, 7168  ;;  %p6354_p0 = pneg %p6340_p12 }
  0x20   : > { %p6008_p13 = scmp.ne.s32.totalorder %s8668_s5, %s6007_s17  ;;  %p6014_p3 = scmp.lt.u32.totalorder %s6007_s17, %s8668_s5 }
  0x22   : > { %p6010_p1 = pnand %p6354_p0, %p6008_p13 }
  0x24   : > { %p6011_p2 = pneg %p6010_p1 }
  0x26   : > { %p6016_p4 = pnand %p6014_p3, %p6011_p2 }
  0x28   : > { %6019 = shalt.err (!%p6016_p4)
}
  0x29   : > { %s6020_s15 = scalar_lea.vmem %s373_s22, 7168  ;;  %p6028_p9 = scmp.lt.s32.totalorder %s373_s22, %s373_s22 }
  0x2a   : > { %p6021_p7 = scmp.ne.s32.totalorder %s373_s22, %s6020_s15  ;;  %p6029_p6 = scmp.lt.s32.totalorder %s6020_s15, %s6020_s15 }
  0x2c   : > { %p6023_p8 = pnand %p6021_p7, %p6354_p0  ;;  %p6030_p5 = por %p6029_p6, %p6028_p9 }
  0x2e   : > { %p6024_p11 = pneg %p6023_p8 }
  0x30   : > { %p6031_p10 = pnand %p6030_p5, %p6024_p11 }
  0x32   : > { %6034 = shalt.err (!%p6031_p10)
}
  0x33   : > { %s8648_s27 = smov 128   ;;  %s8650_s14 = smov 8  }
  0x34   : > { %5633 = dma.hbm_to_vmem [thread:$0]  (!%p6340_p12), %s8668_s5, 7168, %s373_s22, [#allocation6], %s8648_s27, %s8648_s27, %s8650_s14  }
  0x35   : > { %s6035_s25 = scalar_lea.hbm %s8628_s4, 3584 }
  0x36   : > { %p6036_p5 = scmp.ne.s32.totalorder %s8628_s4, %s6035_s25  ;;  %p6042_p10 = scmp.lt.u32.totalorder %s6035_s25, %s8628_s4 }
  0x38   : > { %p6038_p6 = pnand %p6036_p5, %p6354_p0 }
  0x3a   : > { %p6039_p9 = pneg %p6038_p6 }
  0x3c   : > { %p6044_p13 = pnand %p6042_p10, %p6039_p9 }
  0x3e   : > { %6047 = shalt.err (!%p6044_p13)
}
  0x3f   : > { %s6048_s22 = scalar_lea.vmem %s6344_s30, 3584  ;;  %p6056_p4 = scmp.lt.s32.totalorder %s6344_s30, %s6344_s30 }
  0x40   : > { %p6049_p1 = scmp.ne.s32.totalorder %s6344_s30, %s6048_s22  ;;  %p6057_p7 = scmp.lt.s32.totalorder %s6048_s22, %s6048_s22 }
  0x42   : > { %p6051_p2 = pnand %p6049_p1, %p6354_p0  ;;  %p6058_p8 = por %p6057_p7, %p6056_p4 }
  0x44   : > { %p6052_p3 = pneg %p6051_p2 }
  0x46   : > { %p6059_p11 = pnand %p6058_p8, %p6052_p3 }
  0x48   : > { %6062 = shalt.err (!%p6059_p11)
}
  0x49   : > { %s6199_s28 = smov 256   ;;  %s6200_s12 = smov 16  }
  0x4a   : > { %5630 = dma.hbm_to_vmem [thread:$0]  (!%p6340_p12), %s8628_s4, 3584, %s6344_s30, [#allocation3], %s6199_s28, %s6199_s28, %s6200_s12  }
  0x4b   : > { %s6201_s17 = smov [#allocation7]   ;;  %s6202_s16 = smov [#allocation8]  }
  0x4c   : > { %s385_s19 = sshll.u32 %s6201_s17, 4  ;;  %s407_s24 = sshll.u32 %s6202_s16, 4  ;;  %s386_s19 = int_to_ptr.vmem [resolvable:$true] %s385_s19  ;;  %s6396_s24 = int_to_ptr.vmem [resolvable:$true] %s407_s24 }
  0x4d   : > { %s6063_s27 = scalar_lea.hbm %s8630_s6, 5376 }
  0x4e   : > { %p6064_p5 = scmp.ne.s32.totalorder %s8630_s6, %s6063_s27  ;;  %p6070_p10 = scmp.lt.u32.totalorder %s6063_s27, %s8630_s6 }
  0x50   : > { %p6066_p6 = pnand %p6064_p5, %p6354_p0 }
  0x52   : > { %p6067_p9 = pneg %p6066_p6 }
  0x54   : > { %p6072_p13 = pnand %p6070_p10, %p6067_p9 }
  0x56   : > { %6075 = shalt.err (!%p6072_p13)
}
  0x57   : > { %s6076_s28 = scalar_lea.vmem %s386_s19, 5376  ;;  %p6084_p4 = scmp.lt.s32.totalorder %s386_s19, %s386_s19 }
  0x58   : > { %p6077_p1 = scmp.ne.s32.totalorder %s386_s19, %s6076_s28  ;;  %p6085_p7 = scmp.lt.s32.totalorder %s6076_s28, %s6076_s28 }
  0x5a   : > { %p6079_p2 = pnand %p6077_p1, %p6354_p0  ;;  %p6086_p8 = por %p6085_p7, %p6084_p4 }
  0x5c   : > { %p6080_p3 = pneg %p6079_p2 }
  0x5e   : > { %p6087_p11 = pnand %p6086_p8, %p6080_p3 }
  0x60   : > { %6090 = shalt.err (!%p6087_p11)
}
  0x61   : > { %s8670_s5 = smov 8   ;;  %s8671_s14 = smov 128  }
  0x62   : > { %5636 = dma.hbm_to_vmem [thread:$0]  (!%p6340_p12), %s8630_s6, 5376, %s386_s19, [#allocation6], %s8671_s14, %s8671_s14, %s8670_s5  }
  0x63   : > { %s6091_s16 = scalar_lea.hbm %s8634_s10, 7168 }
  0x64   : > { %p6092_p5 = scmp.ne.s32.totalorder %s8634_s10, %s6091_s16  ;;  %p6098_p10 = scmp.lt.u32.totalorder %s6091_s16, %s8634_s10 }
  0x66   : > { %p6094_p6 = pnand %p6092_p5, %p6354_p0 }
  0x68   : > { %p6095_p9 = pneg %p6094_p6 }
  0x6a   : > { %p6100_p13 = pnand %p6098_p10, %p6095_p9 }
  0x6c   : > { %6103 = shalt.err (!%p6100_p13)
}
  0x6d   : > { %s6104_s19 = scalar_lea.vmem %s6396_s24, 7168  ;;  %p6112_p4 = scmp.lt.s32.totalorder %s6396_s24, %s6396_s24 }
  0x6e   : > { %p6105_p1 = scmp.ne.s32.totalorder %s6396_s24, %s6104_s19  ;;  %p6113_p7 = scmp.lt.s32.totalorder %s6104_s19, %s6104_s19 }
  0x70   : > { %p6107_p2 = pnand %p6105_p1, %p6354_p0  ;;  %p6114_p8 = por %p6113_p7, %p6112_p4 }
  0x72   : > { %p6108_p3 = pneg %p6107_p2 }
  0x74   : > { %p6115_p11 = pnand %p6114_p8, %p6108_p3 }
  0x76   : > { %6118 = shalt.err (!%p6115_p11)
}
  0x77   : > { %5639 = dma.hbm_to_vmem [thread:$0]  (!%p6340_p12), %s8634_s10, 7168, %s6396_s24, [#allocation9], %s8671_s14, %s8671_s14, %s8670_s5  }
  0x78   : > { %p8672_p5 = scmp.ne.s32.totalorder %s8666_s20, 0 }
  0x79   : > { %p8673_p0 = scmp.eq.s32.totalorder (!%p8672_p5), %s6304_s29, 0 }
  0x7a   : > { %438 = sbr.rel (%p8672_p5) target bundleno = 2433 (0x981), region = 72 }
  0x81   : > { %6164 = dma.done.wait (%p8673_p0), [#allocation3], 3584   ;;  %p8674_p6 = pmov %p8673_p0 }
  0x82   : > { %p8675_p9 = pmov %p8673_p0 }
  0x83   : > { %6166 = vsyncadd (%p8674_p6), [#allocation3], 4294963712 }
  0x84   : > { %6168 = dma.done.wait (%p8675_p9), [#allocation6], 12544   ;;  %p8676_p10 = pmov %p8673_p0 }
  0x85   : > { %p8677_p13 = pmov %p8673_p0 }
  0x86   : > { %6170 = vsyncadd (%p8676_p10), [#allocation6], 4294954752 }
  0x87   : > { %6172 = dma.done.wait (%p8677_p13), [#allocation9], 7168   ;;  %p8678_p12 = pmov %p8673_p0 }
  0x88   : > { %s494_s20 = smul.u32 28, %s6304_s29  ;;  %v8652_v0 = vmov 1   ;;  %v6204_v1 = vmov 0   ;;  %v6467_v2 = vld [vmem:[%s8627_s3 + $0x10] sm:$0xff]  ;;  %v6472_v3 = vld [vmem:[%s8627_s3] sm:$0xff]  ;;  %v557_v4 = vlaneseq  ;;  %v6479_v5 = vld [vmem:[%s8627_s3 + $0x18] sm:$0xff] }
  0x89   : > { %6174 = vsyncadd (%p8678_p12), [#allocation9], 4294960128  ;;  %5703 = vset.pattern.permute.xlu1 %v8652_v0  ;;  %5702 = vset.pattern.permute.xlu0 %v8652_v0  ;;  %v589_v6 = vld [vmem:[%s8627_s3 + $0x8] sm:$0xff]  ;;  %v6500_v9 = vld [vmem:[%s8627_s3 + $0x20] sm:$0xff]  ;;  %s6205_s5 = smov 28   ;;  %vm1398_vm2 = vcmask 1041408  }
  0x8a   : > { %p495_p1 = scmp.lt.s32.totalorder %s494_s20, 55  ;;  %1437 = vmatprep.mubr.bf16.mxu0 %v6204_v1  ;;  %1507 = vmatprep.mubr.bf16.mxu1 %v6204_v1  ;;  %v6489_v7 = vshrl.u32 %v557_v4, 7  ;;  %v6495_v8 = vld [vmem:[%s8627_s3 + $0x28] sm:$0xff]  ;;  %v6516_v14 = vld [vmem:[%s8627_s3 + $0x38] sm:$0xff]  ;;  %v6521_v15 = vld [vmem:[%s8627_s3 + $0x30] sm:$0xff]  ;;  %vm1205_vm3 = vcmask 228352  }
  0x8b   : > { %850 = vperm.xlu1 %5703, %v6467_v2   ;;  %842 = vperm.xlu0 %5702, %v6472_v3   ;;  %v6532_v17 = vld [vmem:[%s8627_s3 + $0x78] sm:$0xff]  ;;  %v6539_v18 = vld [vmem:[%s8627_s3 + $0x70] sm:$0xff]  ;;  %v6546_v19 = vld [vmem:[%s8627_s3 + $0x48] sm:$0xff]  ;;  %vm1234_vm4 = vcmask 457728   ;;  %vm1355_vm5 = vcmask 687104   ;;  %vm1830_vm6 = vcmask 785408  }
  0x8c   : > { %s8695_s20 = smov (!%p495_p1, %s494_s20), 55  ;;  %vm812_vm0 = vcmp.lt.s32.totalorder %v6489_v7, 7  ;;  %v6551_v20 = vld [vmem:[%s8627_s3 + $0x40] sm:$0xff]  ;;  %v6558_v21 = vld [vmem:[%s8627_s3 + $0x88] sm:$0xff]  ;;  %v6570_v23 = vld [vmem:[%s8627_s3 + $0x58] sm:$0xff]  ;;  %vm559_vm1 = vcmp.lt.s32.totalorder %v6489_v7, 1 }
  0x8d   : > { %s4572_s14 = sshll.u32 %s8695_s20, 3  ;;  %v6563_v22 = vld [vmem:[%s8627_s3 + $0x80] sm:$0xff]  ;;  %v6575_v24 = vld [vmem:[%s8627_s3 + $0x50] sm:$0xff]  ;;  %v6582_v25 = vld [vmem:[%s8627_s3 + $0x98] sm:$0xff]  ;;  %s6208_s23 = smov 112   ;;  %vm2741_vm7 = vcmask 916480  }
  0x8e   : > { %s6487_s13 = scalar_lea.vmem %s8624_s0, %s4572_s14  ;;  %v6587_v26 = vld [vmem:[%s8627_s3 + $0x90] sm:$0xff]  ;;  %v6594_v27 = vld [vmem:[%s8627_s3 + $0x68] sm:$0xff]  ;;  %v6599_v28 = vld [vmem:[%s8627_s3 + $0x60] sm:$0xff]  ;;  %s6206_s14 = smov 56   ;;  %vm3055_vm8 = vcmask 654336   ;;  %vm6211_vm9 = vmmov 0  }
  0x8f   : > { %854 = vperm.xlu1 %5703, %v6479_v5   ;;  %846 = vperm.xlu0 %5702, %v589_v6   ;;  %v6503_v10 = vld [vmem:[%s6487_s13] sm:$0xff]  ;;  %v6506_v11 = vld [vmem:[%s6487_s13 + $0x8] sm:$0xff]  ;;  %v6618_v31 = vld [vmem:[%s8627_s3 + $0xb8] sm:$0xff]  ;;  %s6209_s21 = smov 96   ;;  %s491_s15 = sand.u32 1, %s6185_s26  }
  0x90   : > { %v784_v12 = vrot.slane %v6503_v10, 1  ;;  %v785_v13 = vrot.slane %v6506_v11, 1  ;;  %v6606_v29 = vld [vmem:[%s8627_s3 + $0xa8] sm:$0xff]  ;;  %v6611_v30 = vld [vmem:[%s8627_s3 + $0xa0] sm:$0xff]  ;;  %v5707_v32 = vpack.i.bf16 %v6506_v11, %v6503_v10  ;;  %v529_v33 = vrot.slane %v6503_v10, 7  ;;  %v6636_v36 = vld [vmem:[%s8627_s3 + $0xb0] sm:$0xff] }
  0x91   : > { %v530_v34 = vrot.slane %v6506_v11, 7  ;;  %v6643_v37 = vld [vmem:[%s8627_s3 + $0xc0] sm:$0xff]  ;;  %v6648_v38 = vld [vmem:[%s6487_s13 + $0xd8] sm:$0xff]  ;;  %v6656_v40 = vld [vmem:[%s6487_s13 + $0x10] sm:$0xff]  ;;  %s4571_s22 = sshll.u32 %s491_s15, 3  ;;  %s8682_s28 = sld [smem:[#allocation22_spill]] }
  0x92   : > { %v6527_v16 = vsel %vm812_vm0, %v784_v12, %v785_v13  ;;  %v6653_v39 = vld [vmem:[%s8627_s3 + $0xd8] sm:$0xff]  ;;  %v811_v41 = vrot.slane %v6648_v38, 1  ;;  %v531_v42 = vrot.slane %v6656_v40, 7  ;;  %v6686_v48 = vld [vmem:[%s8627_s3 + $0xc8] sm:$0xff]  ;;  %v6690_v49 = vld [vmem:[%s6487_s13 + $0x20] sm:$0xff]  ;;  %s4805_s12 = sshll.u32 %s6304_s29, 7 }
  0x93   : > { %862 = vperm.xlu1 %5703, %v6495_v8   ;;  %858 = vperm.xlu0 %5702, %v6500_v9   ;;  %v6631_v35 = vsel %vm559_vm1, %v529_v33, %v530_v34  ;;  %v6674_v45 = vld [vmem:[%s6487_s13 + $0x18] sm:$0xff]  ;;  %v6693_v50 = vld [vmem:[%s6487_s13 + $0x28] sm:$0xff]  ;;  %v533_v52 = vrot.slane %v6690_v49, 7  ;;  %v6719_v56 = vld [vmem:[%s8627_s3 + $0xd0] sm:$0xff]  ;;  %s493_s20 = scalar_lea.vmem [#allocation10], %s4571_s22  ;;  %p8684_p3 = scmp.ne.s32.totalorder %s8663_s18, 0 }
  0x94   : > { %v6666_v43 = vsel %vm812_vm0, %v811_v41, %v784_v12  ;;  %v6671_v44 = vsel %vm559_vm1, %v530_v34, %v531_v42  ;;  %v532_v46 = vrot.slane %v6674_v45, 7  ;;  %v5722_v51 = vpack.i.bf16 %v6693_v50, %v6690_v49  ;;  %v6734_v58 = vld [vmem:[%s6487_s13 + $0x30] sm:$0xff]  ;;  %v6737_v59 = vld [vmem:[%s6487_s13 + $0x38] sm:$0xff]  ;;  %v5927_v61 = vld [vmem:[%s8625_s1 + $0x4] ss:$8 sps:$4 sm:$0xff]   ;;  %s6212_s29 = smov [#allocation10]  }
  0x95   : > { %v534_v53 = vrot.slane %v6693_v50, 7  ;;  %v5714_v54 = vpack.i.bf16 %v6674_v45, %v6656_v40  ;;  %v5727_v60 = vpack.i.bf16 %v6737_v59, %v6734_v58  ;;  %v5929_v62 = vld [vmem:[%s8625_s1] ss:$8 sps:$4 sm:$0xff]   ;;  %1405 = vmatprep.subr.bf16.mxu0 %v5927_v61  ;;  %5529 = vmatprep.subr.bf16.mxu1 %v5927_v61  ;;  %v5930_v63 = vld [vmem:[%s8625_s1 + $0x14] ss:$8 sps:$4 sm:$0xff]   ;;  %s6123_s25 = sshll.u32 %s6212_s29, 4  ;;  %s6124_s25 = int_to_ptr.vmem [resolvable:$false] %s6123_s25 }
  0x96   : > { %v6681_v47 = vsel %vm559_vm1, %v531_v42, %v532_v46  ;;  %v6725_v57 = vsel %vm559_vm1, %v532_v46, %v533_v52  ;;  %1406 = vmatpush1.bf16.msra.mxu0 %v5929_v62  ;;  %5535 = vmatpush1.bf16.msra.mxu1 %v5929_v62  ;;  %v5935_v4 = vld [vmem:[%s8625_s1 + $0x20] ss:$8 sps:$4 sm:$0xff]   ;;  %v1287_v12 = vld [vmem:[%s8625_s1 + $0x50] sm:$0x33]  ;;  %s6125_s17 = scalar_lea.vmem %s6124_s25, 256 }
  0x97   : > { %870 = vperm.xlu1 %5703, %v6516_v14   ;;  %866 = vperm.xlu0 %5702, %v6521_v15   ;;  %v6711_v55 = vsel %vm559_vm1, %v533_v52, %v534_v53  ;;  %v6790_v52 = vld [vmem:[%s6487_s13 + $0x40] sm:$0xff] }
  0x98   : > { %1407 = vmatprep.subr.bf16.mxu0 %v5930_v63  ;;  %5530 = vmatprep.subr.bf16.mxu1 %v5930_v63 }
  0x9b   : > { %902 = vperm.xlu1 %5703, %v6532_v17   ;;  %898 = vperm.xlu0 %5702, %v6539_v18  }
  0x9f   : > { %878 = vperm.xlu1 %5703, %v6546_v19   ;;  %874 = vperm.xlu0 %5702, %v6551_v20  }
  0xa3   : > { %910 = vperm.xlu1 %5703, %v6558_v21   ;;  %906 = vperm.xlu0 %5702, %v6563_v22  }
  0xa7   : > { %886 = vperm.xlu1 %5703, %v6570_v23   ;;  %882 = vperm.xlu0 %5702, %v6575_v24  }
  0xab   : > { %918 = vperm.xlu1 %5703, %v6582_v25   ;;  %914 = vperm.xlu0 %5702, %v6587_v26  }
  0xaf   : > { %894 = vperm.xlu1 %5703, %v6594_v27   ;;  %890 = vperm.xlu0 %5702, %v6599_v28  }
  0xb3   : > { %926 = vperm.xlu1 %5703, %v6606_v29   ;;  %922 = vperm.xlu0 %5702, %v6611_v30  }
  0xb7   : > { %5704 = vset.pattern.permute.xlu1 %v6204_v1  ;;  %934 = vperm.xlu0 %5702, %v6618_v31  }
  0xb8   : > { %623 = vperm.xlu1 %5704, %v589_v6   ;;  %v5938_v6 = vld [vmem:[%s8625_s1 + $0x30] ss:$8 sps:$4 sm:$0xff]  }
  0xbb   : > { %5708 = vrot.lane.b32.xlu0 %v5707_v32, %s6205_s5 }
  0xbc   : > { %5705 = vset.pattern.permute.xlu1 %v8652_v0 }
  0xbd   : > { %930 = vperm.xlu1 %5705, %v6636_v36  }
  0xbf   : > { %938 = vperm.xlu0 %5702, %v6643_v37  }
  0xc1   : > { %5706 = vset.pattern.permute.xlu1 %v6204_v1 }
  0xc2   : > { %628 = vperm.xlu1 %5706, %v6467_v2   ;;  %v5932_v2 = vld [vmem:[%s8625_s1 + $0x10] ss:$8 sps:$4 sm:$0xff]  }
  0xc3   : > { %950 = vperm.xlu0 %5702, %v6653_v39   ;;  %1408 = vmatpush1.bf16.msra.mxu0 %v5932_v2 }
  0xc4   : > { %5536 = vmatpush1.bf16.msra.mxu1 %v5932_v2  ;;  %v792_v2 = vrot.slane %v6790_v52, 1 }
  0xc6   : > { %633 = vperm.xlu1 %5706, %v6479_v5   ;;  %v5936_v5 = vld [vmem:[%s8625_s1 + $0x34] ss:$8 sps:$4 sm:$0xff]  }
  0xc7   : > { %5720 = vset.pattern.permute.xlu0 %v6204_v1 }
  0xc8   : > { %618 = vperm.xlu0 %5720, %v6472_v3   ;;  %v5933_v3 = vld [vmem:[%s8625_s1 + $0x24] ss:$8 sps:$4 sm:$0xff]  }
  0xc9   : > { %1409 = vmatprep.subr.bf16.mxu0 %v5933_v3  ;;  %5531 = vmatprep.subr.bf16.mxu1 %v5933_v3  ;;  %v6805_v3 = vld [vmem:[%s6487_s13 + $0x80] sm:$0xff] }
  0xca   : > { %5712 = vset.pattern.permute.xlu1 %v8652_v0  ;;  %1410 = vmatpush1.bf16.msra.mxu0 %v5935_v4 }
  0xcb   : > { %942 = vperm.xlu1 %5712, %v6686_v48   ;;  %1411 = vmatprep.subr.bf16.mxu0 %v5936_v5 }
  0xcc   : > { %638 = vperm.xlu0 %5720, %v6500_v9   ;;  %5537 = vmatpush1.bf16.msra.mxu1 %v5935_v4  ;;  %v5941_v9 = vld [vmem:[%s8625_s1 + $0x40] ss:$8 sps:$4 sm:$0xff]   ;;  %v790_v4 = vrot.slane %v6734_v58, 1 }
  0xcd   : > { %5532 = vmatprep.subr.bf16.mxu1 %v5936_v5  ;;  %v789_v5 = vrot.slane %v6693_v50, 1 }
  0xce   : > { %1412 = vmatpush1.bf16.msra.mxu0 %v5938_v6 }
  0xcf   : > { %5713 = vset.pattern.permute.xlu1 %v6204_v1 }
  0xd0   : > { %643 = vperm.xlu1 %5713, %v6495_v8   ;;  %5723 = vrot.lane.b32.xlu0 %v5722_v51, %s6205_s5  ;;  %v5939_v8 = vld [vmem:[%s8625_s1 + $0x44] ss:$8 sps:$4 sm:$0xff]  }
  0xd1   : > { %1413 = vmatprep.subr.bf16.mxu0 %v5939_v8  ;;  %5538 = vmatpush1.bf16.msra.mxu1 %v5938_v6 }
  0xd2   : > { %5533 = vmatprep.subr.bf16.mxu1 %v5939_v8  ;;  %1414 = vmatpush1.bf16.msra.mxu0 %v5941_v9 }
  0xd4   : > { %5715 = vrot.lane.b32.xlu1 %v5714_v54, %s6205_s5  ;;  %688 = vperm.xlu0 %5720, %v6539_v18   ;;  %v787_v18 = vrot.slane %v6674_v45, 1  ;;  %v6793_v54 = vld [vmem:[%s6487_s13 + $0x70] sm:$0xff] }
  0xd5   : > { %5719 = vset.pattern.permute.xlu1 %v8652_v0  ;;  %5539 = vmatpush1.bf16.msra.mxu1 %v5941_v9 }
  0xd8   : > { %946 = vperm.xlu1 %5719, %v6719_v56   ;;  %663 = vperm.xlu0 %5720, %v6546_v19  }
  0xdc   : > { %5721 = vset.pattern.permute.xlu1 %v6204_v1  ;;  %703 = vperm.xlu0 %5720, %v6558_v21  }
  0xdd   : > { %648 = vperm.xlu1 %5721, %v6521_v15   ;;  %v4583_v15 = vcombine.low %v1287_v12, %v1287_v12 }
  0xdf   : > { %v1400_v19 = vsel %vm1398_vm2, %v4583_v15, 0  ;;  %v800_v15 = vrot.slane %v6805_v3, 1 }
  0xe0   : > { %673 = vperm.xlu0 %5720, %v6570_v23  }
  0xe1   : > { %653 = vperm.xlu1 %5721, %v6516_v14   ;;  %v4584_v14 = vcombine.high %v1287_v12, %v1287_v12 }
  0xe3   : > { %4585 = vmatprep.subr.msk.bf16.mxu0 %vm1398_vm2, %v4584_v14  ;;  %5534 = vmatprep.subr.msk.bf16.mxu1 %vm1398_vm2, %v4584_v14 }
  0xe4   : > { %1416 = vmatpush1.bf16.msra.mxu0 %v1400_v19  ;;  %5540 = vmatpush1.bf16.msra.mxu1 %v1400_v19  ;;  %v6822_v19 = vld [vmem:[%s6487_s13 + $0x50] sm:$0xff] }
  0xe5   : > { %693 = vperm.xlu1 %5721, %v6532_v17   ;;  %v786_v17 = vrot.slane %v6656_v40, 1 }
  0xe7   : > { %v838_v34 = vsel %vm812_vm0, %v785_v13, %v786_v17  ;;  %v791_v13 = vrot.slane %v6737_v59, 1 }
  0xe9   : > { %658 = vperm.xlu1 %5721, %v6551_v20   ;;  %v788_v20 = vrot.slane %v6690_v49, 1  ;;  %v832_v9 = vsel %vm812_vm0, %v791_v13, %v792_v2  ;;  %v833_v14 = vsel %vm812_vm0, %v790_v4, %v791_v13 }
  0xeb   : > { %v836_v32 = vsel %vm812_vm0, %v787_v18, %v788_v20 }
  0xed   : > { %5728 = vrot.lane.b32.xlu1 %v5727_v60, %s6205_s5  ;;  %v6796_v60 = vld [vmem:[%s6487_s13 + $0x78] sm:$0xff] }
  0xee   : > { %v799_v6 = vrot.slane %v6796_v60, 1 }
  0xf1   : > { %698 = vperm.xlu1 %5721, %v6563_v22   ;;  %v837_v22 = vsel %vm812_vm0, %v786_v17, %v787_v18  ;;  %v798_v17 = vrot.slane %v6793_v54, 1  ;;  %v6819_v18 = vld [vmem:[%s6487_s13 + $0x48] sm:$0xff] }
 0x10a   : > { %v851_v21 = vpop.permute.xlu1 %850  ;;  %v843_v23 = vpop.permute.xlu0 %842 }
 0x10b   : > { %v955_v40 = vmul.f32 %v851_v21, %v837_v22  ;;  %v953_v46 = vmul.f32 %v843_v23, %v6527_v16  ;;  %v5737_v16 = vpack.i.bf16 %v6796_v60, %v6793_v54  ;;  %v834_v21 = vsel %vm812_vm0, %v789_v5, %v790_v4 }
 0x10c   : > { %v835_v22 = vsel %vm812_vm0, %v788_v20, %v789_v5  ;;  %v5742_v20 = vpack.i.bf16 %v6819_v18, %v6790_v52 }
 0x10e   : > { %v855_v42 = vpop.permute.xlu1 %854  ;;  %v847_v45 = vpop.permute.xlu0 %846 }
 0x10f   : > { %v956_v49 = vmul.f32 %v855_v42, %v836_v32  ;;  %v954_v51 = vmul.f32 %v847_v45, %v838_v34  ;;  %v825_v42 = vsel %vm812_vm0, %v798_v17, %v799_v6  ;;  %v793_v45 = vrot.slane %v6819_v18, 1 }
 0x111   : > { %v5747_v61 = vpack.i.bf16 %v956_v49, %v955_v40  ;;  %v5732_v62 = vpack.i.bf16 %v954_v51, %v953_v46  ;;  %v794_v46 = vrot.slane %v6822_v19, 1  ;;  %v6841_v49 = vld [vmem:[%s6487_s13 + $0x88] sm:$0xff]  ;;  %v6844_v51 = vld [vmem:[%s6487_s13 + $0x90] sm:$0xff] }
 0x112   : > { %v863_v11 = vpop.permute.xlu1 %862  ;;  %v859_v63 = vpop.permute.xlu0 %858 }
 0x113   : > { %5748 = vrot.lane.b32.xlu0 %v5747_v61, %s6206_s14  ;;  %5733 = vrot.lane.b32.xlu1 %v5732_v62, %s6206_s14  ;;  %v958_v61 = vmul.f32 %v863_v11, %v834_v21  ;;  %v957_v62 = vmul.f32 %v859_v63, %v835_v22  ;;  %v6855_v11 = vld [vmem:[%s6487_s13 + $0x58] sm:$0xff]  ;;  %v6858_v63 = vld [vmem:[%s6487_s13 + $0x60] sm:$0xff] }
 0x116   : > { %v871_v8 = vpop.permute.xlu1 %870  ;;  %v867_v12 = vpop.permute.xlu0 %866 }
 0x117   : > { %713 = vperm.xlu0 %5720, %v6582_v25   ;;  %5738 = vrot.lane.b32.xlu1 %v5737_v16, %s6205_s5  ;;  %v960_v23 = vmul.f32 %v871_v8, %v832_v9  ;;  %v959_v32 = vmul.f32 %v867_v12, %v833_v14  ;;  %v824_v25 = vsel %vm812_vm0, %v799_v6, %v800_v15  ;;  %v801_v8 = vrot.slane %v6841_v49, 1 }
 0x118   : > { %v802_v9 = vrot.slane %v6844_v51, 1  ;;  %v5752_v12 = vpack.i.bf16 %v958_v61, %v957_v62 }
 0x119   : > { %v5767_v13 = vpack.i.bf16 %v960_v23, %v959_v32 }
 0x11a   : > { %v903_v34 = vpop.permute.xlu1 %902  ;;  %v899_v40 = vpop.permute.xlu0 %898 }
 0x11b   : > { %683 = vperm.xlu0 %5720, %v6594_v27   ;;  %668 = vperm.xlu1 %5721, %v6575_v24   ;;  %v968_v16 = vmul.f32 %v903_v34, %v824_v25  ;;  %v967_v4 = vmul.f32 %v899_v40, %v825_v42  ;;  %v830_v27 = vsel %vm812_vm0, %v793_v45, %v794_v46  ;;  %v795_v25 = vrot.slane %v6855_v11, 1 }
 0x11c   : > { %v831_v24 = vsel %vm812_vm0, %v792_v2, %v793_v45  ;;  %v822_v2 = vsel %vm812_vm0, %v801_v8, %v802_v9  ;;  %v823_v34 = vsel %vm812_vm0, %v800_v15, %v801_v8  ;;  %v796_v40 = vrot.slane %v6858_v63, 1 }
 0x11d   : > { %v5772_v14 = vpack.i.bf16 %v968_v16, %v967_v4  ;;  %v829_v15 = vsel %vm812_vm0, %v794_v46, %v795_v25  ;;  %v6875_v16 = vld [vmem:[%s6487_s13 + $0x98] sm:$0xff]  ;;  %v6878_v4 = vld [vmem:[%s6487_s13 + $0xa0] sm:$0xff] }
 0x11e   : > { %v879_v5 = vpop.permute.xlu1 %878  ;;  %v875_v6 = vpop.permute.xlu0 %874  ;;  %v828_v62 = vsel %vm812_vm0, %v795_v25, %v796_v40 }
 0x11f   : > { %5768 = vrot.lane.b32.xlu0 %v5767_v13, %s6206_s14  ;;  %5743 = vrot.lane.b32.xlu1 %v5742_v20, %s6205_s5  ;;  %v962_v21 = vmul.f32 %v879_v5, %v830_v27  ;;  %v961_v22 = vmul.f32 %v875_v6, %v831_v24  ;;  %v5757_v5 = vpack.i.bf16 %v6841_v49, %v6805_v3 }
 0x121   : > { %v5777_v42 = vpack.i.bf16 %v962_v21, %v961_v22 }
 0x122   : > { %v911_v23 = vpop.permute.xlu1 %910  ;;  %v907_v32 = vpop.permute.xlu0 %906 }
 0x123   : > { %5773 = vrot.lane.b32.xlu0 %v5772_v14, %s6206_s14  ;;  %5753 = vrot.lane.b32.xlu1 %v5752_v12, %s6206_s14  ;;  %v970_v45 = vmul.f32 %v911_v23, %v822_v2  ;;  %v969_v20 = vmul.f32 %v907_v32, %v823_v34  ;;  %v803_v12 = vrot.slane %v6875_v16, 1  ;;  %v804_v14 = vrot.slane %v6878_v4, 1 }
 0x124   : > { %v5762_v34 = vpack.i.bf16 %v6855_v11, %v6822_v19 }
 0x125   : > { %v5782_v27 = vpack.i.bf16 %v970_v45, %v969_v20  ;;  %v820_v22 = vsel %vm812_vm0, %v803_v12, %v804_v14  ;;  %v821_v23 = vsel %vm812_vm0, %v802_v9, %v803_v12 }
 0x126   : > { %v887_v61 = vpop.permute.xlu1 %886  ;;  %v883_v13 = vpop.permute.xlu0 %882 }
 0x127   : > { %5778 = vrot.lane.b32.xlu0 %v5777_v42, %s6206_s14  ;;  %708 = vperm.xlu1 %5721, %v6587_v26   ;;  %v964_v6 = vmul.f32 %v887_v61, %v828_v62  ;;  %v963_v24 = vmul.f32 %v883_v13, %v829_v15  ;;  %v6887_v26 = vld [vmem:[%s6487_s13 + $0x68] sm:$0xff]  ;;  %v6908_v13 = vld [vmem:[%s6487_s13 + $0xb0] sm:$0xff] }
 0x128   : > { %v797_v32 = vrot.slane %v6887_v26, 1  ;;  %v6905_v62 = vld [vmem:[%s6487_s13 + $0xa8] sm:$0xff] }
 0x129   : > { %v5787_v21 = vpack.i.bf16 %v964_v6, %v963_v24 }
 0x12a   : > { %v919_v8 = vpop.permute.xlu1 %918  ;;  %v915_v46 = vpop.permute.xlu0 %914  ;;  %v826_v45 = vsel %vm812_vm0, %v797_v32, %v798_v17  ;;  %v827_v9 = vsel %vm812_vm0, %v796_v40, %v797_v32  ;;  %v806_v17 = vrot.slane %v6908_v13, 1 }
 0x12b   : > { %5783 = vrot.lane.b32.xlu0 %v5782_v27, %s6206_s14  ;;  %5758 = vrot.lane.b32.xlu1 %v5757_v5, %s6205_s5  ;;  %v972_v25 = vmul.f32 %v919_v8, %v820_v22  ;;  %v971_v42 = vmul.f32 %v915_v46, %v821_v23  ;;  %v805_v27 = vrot.slane %v6905_v62, 1  ;;  %v6929_v22 = vld [vmem:[%s6487_s13 + $0xb8] sm:$0xff]  ;;  %v6932_v23 = vld [vmem:[%s6487_s13 + $0xc0] sm:$0xff] }
 0x12c   : > { %v807_v32 = vrot.slane %v6929_v22, 1 }
 0x12d   : > { %v818_v24 = vsel %vm812_vm0, %v805_v27, %v806_v17  ;;  %v819_v12 = vsel %vm812_vm0, %v804_v14, %v805_v27 }
 0x12e   : > { %v895_v2 = vpop.permute.xlu1 %894  ;;  %v891_v20 = vpop.permute.xlu0 %890 }
 0x12f   : > { %5788 = vrot.lane.b32.xlu0 %v5787_v21, %s6206_s14  ;;  %678 = vperm.xlu1 %5721, %v6599_v28   ;;  %v5797_v28 = vpack.i.bf16 %v972_v25, %v971_v42  ;;  %v966_v15 = vmul.f32 %v895_v2, %v826_v45  ;;  %v965_v5 = vmul.f32 %v891_v20, %v827_v9  ;;  %v6947_v20 = vld [vmem:[%s6487_s13 + $0xd0] sm:$0xff] }
 0x130   : > { %v817_v45 = vsel %vm812_vm0, %v806_v17, %v807_v32  ;;  %v810_v27 = vrot.slane %v6947_v20, 1 }
 0x131   : > { %v5807_v6 = vpack.i.bf16 %v966_v15, %v965_v5 }
 0x132   : > { %v927_v61 = vpop.permute.xlu1 %926  ;;  %v923_v8 = vpop.permute.xlu0 %922 }
 0x133   : > { %723 = vperm.xlu0 %5720, %v6606_v29   ;;  %5763 = vrot.lane.b32.xlu1 %v5762_v34, %s6205_s5  ;;  %v5792_v29 = vpack.i.bf16 %v6875_v16, %v6844_v51  ;;  %v974_v46 = vmul.f32 %v927_v61, %v818_v24  ;;  %v973_v21 = vmul.f32 %v923_v8, %v819_v12  ;;  %v808_v34 = vrot.slane %v6932_v23, 1 }
 0x134   : > { %v5822_v8 = vpack.i.bf16 %v6929_v22, %v6908_v13 }
 0x135   : > { %v5817_v25 = vpack.i.bf16 %v974_v46, %v973_v21  ;;  %v816_v9 = vsel %vm812_vm0, %v807_v32, %v808_v34 }
 0x136   : > { %v935_v14 = vpop.permute.xlu0 %934 }
 0x137   : > { %5798 = vrot.lane.b32.xlu0 %v5797_v28, %s6206_s14  ;;  %718 = vperm.xlu1 %5721, %v6611_v30   ;;  %v6916_v40 = vpop.permute.xlu1 %623  ;;  %v5802_v30 = vpack.i.bf16 %v6887_v26, %v6858_v63  ;;  %v6952_v28 = vld [vmem:[%s6487_s13 + $0xc8] sm:$0xff]  ;;  %v976_v17 = vmul.f32 %v935_v14, %v816_v9 }
 0x13a   : > { %v6954_v5 = vpop.permute.xlu0 %5708 }
 0x13b   : > { %5808 = vrot.lane.b32.xlu0 %v5807_v6, %s6206_s14  ;;  %5793 = vrot.lane.b32.xlu1 %v5792_v29, %s6205_s5 }
 0x13c   : > { %v931_v2 = vpop.permute.xlu1 %930 }
 0x13d   : > { %v975_v61 = vmul.f32 %v931_v2, %v817_v45 }
 0x13f   : > { %733 = vperm.xlu0 %5720, %v6618_v31   ;;  %5803 = vrot.lane.b32.xlu1 %v5802_v30, %s6205_s5  ;;  %v5812_v31 = vpack.i.bf16 %v6905_v62, %v6878_v4  ;;  %v5827_v29 = vpack.i.bf16 %v976_v17, %v975_v61 }
 0x141   : > { %v6938_v42 = vpop.permute.xlu1 %628 }
 0x143   : > { %5818 = vrot.lane.b32.xlu0 %v5817_v25, %s6206_s14  ;;  %728 = vperm.xlu1 %5721, %v6636_v36   ;;  %v809_v36 = vrot.slane %v6952_v28, 1  ;;  %v5842_v25 = vpack.i.bf16 %v6648_v38, %v6947_v20 }
 0x145   : > { %v634_v15 = vpop.permute.xlu1 %633  ;;  %v814_v24 = vsel %vm812_vm0, %v809_v36, %v810_v27  ;;  %v815_v12 = vsel %vm812_vm0, %v808_v34, %v809_v36  ;;  %v813_v34 = vsel %vm812_vm0, %v810_v27, %v811_v41 }
 0x146   : > { %v759_v10 = vmul.f32 %v634_v15, %v6681_v47 }
 0x147   : > { %743 = vperm.xlu0 %5720, %v6686_v48   ;;  %5813 = vrot.lane.b32.xlu1 %v5812_v31, %s6205_s5  ;;  %v939_v48 = vpop.permute.xlu0 %938 }
 0x148   : > { %v977_v46 = vmul.f32 %v939_v48, %v815_v12  ;;  %v8653_v12 = vrot.slane %v6648_v38, 7 }
 0x14a   : > { %v943_v6 = vpop.permute.xlu1 %942  ;;  %v587_v48 = vsel %vm559_vm1, %v8653_v12, %v529_v33 }
 0x14b   : > { %5828 = vrot.lane.b32.xlu0 %v5827_v29, %s6206_s14  ;;  %738 = vperm.xlu1 %5721, %v6643_v37   ;;  %v978_v30 = vmul.f32 %v943_v6, %v814_v24  ;;  %v5832_v37 = vpack.i.bf16 %v6952_v28, %v6932_v23  ;;  %v951_v32 = vpop.permute.xlu0 %950 }
 0x14c   : > { %v980_v45 = vmul.f32 %v951_v32, %v6666_v43  ;;  %v5710_v32 = vunpack.i.l.bf16 %v6954_v5 }
 0x14d   : > { %v5837_v2 = vpack.i.bf16 %v978_v30, %v977_v46 }
 0x14f   : > { %v6968_v21 = vpop.permute.xlu1 %643  ;;  %753 = vperm.xlu0 %5720, %v6653_v39   ;;  %5823 = vrot.lane.b32.xlu1 %v5822_v8, %s6205_s5  ;;  %v619_v9 = vpop.permute.xlu0 %618 }
 0x153   : > { %v5716_v14 = vpop.permute.xlu1 %5715  ;;  %5838 = vrot.lane.b32.xlu0 %v5837_v2, %s6206_s14  ;;  %748 = vperm.xlu1 %5721, %v6719_v56   ;;  %v639_v41 = vpop.permute.xlu0 %638  ;;  %v757_v2 = vmul.f32 %v6916_v40, %v6631_v35 }
 0x154   : > { %5853 = vset.pattern.permute.xlu0 %v8652_v0 }
 0x157   : > { %v947_v39 = vpop.permute.xlu1 %946  ;;  %5833 = vrot.lane.b32.xlu1 %v5832_v37, %s6205_s5  ;;  %v6992_v17 = vpop.permute.xlu0 %5723  ;;  %v5711_v37 = vunpack.i.h.bf16 %v6954_v5 }
 0x158   : > { %v979_v56 = vmul.f32 %v947_v39, %v813_v34  ;;  %5852 = vset.pattern.permute.xlu1 %v8652_v0  ;;  %v758_v34 = vmul.f32 %v6938_v42, %v6671_v44  ;;  %v756_v39 = vmul.f32 %v619_v9, %v587_v48 }
 0x159   : > { %v1207_v12 = vsel %vm1205_vm3, %v757_v2, %v5711_v37 }
 0x15a   : > { %v5847_v31 = vpack.i.bf16 %v980_v45, %v979_v56  ;;  %v5717_v45 = vunpack.i.l.bf16 %v5716_v14  ;;  %v1206_v5 = vsel %vm1205_vm3, %v756_v39, %v5710_v32  ;;  %v535_v32 = vrot.slane %v6734_v58, 7 }
 0x15b   : > { %5843 = vrot.lane.b32.xlu1 %v5842_v25, %s6205_s5  ;;  %v6996_v29 = vpop.permute.xlu0 %688  ;;  %v5718_v25 = vunpack.i.h.bf16 %v5716_v14  ;;  %v544_v39 = vrot.slane %v6796_v60, 7  ;;  %v5725_v58 = vunpack.i.l.bf16 %v6992_v17  ;;  %s4446_s5 = scalar_lea.sflag [#allocation4], %s491_s15 }
 0x15c   : > { %5848 = vrot.lane.b32.xlu0 %v5847_v31, %s6206_s14  ;;  %v6988_v61 = vpop.permute.xlu1 %648  ;;  %v1208_v44 = vsel %vm1205_vm3, %v758_v34, %v5717_v45  ;;  %v761_v45 = vmul.f32 %v6968_v21, %v6711_v55  ;;  %s8683_s14 = sld [smem:[#allocation23_spill]] }
 0x15d   : > { %v1209_v47 = vsel %vm1205_vm3, %v759_v10, %v5718_v25  ;;  %v543_v10 = vrot.slane %v6793_v54, 7  ;;  %v542_v25 = vrot.slane %v6887_v26, 7  ;;  %v581_v54 = vsel %vm559_vm1, %v534_v53, %v535_v32 }
 0x15e   : > { %v545_v53 = vrot.slane %v6805_v3, 7 }
 0x15f   : > { %v7000_v6 = vpop.permute.xlu0 %663  ;;  %v572_v55 = vsel %vm559_vm1, %v543_v10, %v544_v39 }
 0x160   : > { %v6990_v27 = vpop.permute.xlu1 %653 }
 0x162   : > { %s8582_s13 = scalar_lea.hbm %s8683_s14, %s4805_s12 }
 0x163   : > { %v7004_v8 = vpop.permute.xlu0 %703 }
 0x164   : > { %v6994_v36 = vpop.permute.xlu1 %693 }
 0x167   : > { %v7015_v46 = vpop.permute.xlu0 %673 }
 0x168   : > { %v6998_v43 = vpop.permute.xlu1 %658 }
 0x16c   : > { %v7002_v24 = vpop.permute.xlu1 %5728 }
 0x16d   : > { %v5730_v3 = vunpack.i.l.bf16 %v7002_v24 }
 0x170   : > { %v7013_v30 = vpop.permute.xlu1 %698 }
 0x185   : > { %v5749_v33 = vpop.permute.xlu0 %5748  ;;  %v5734_v56 = vpop.permute.xlu1 %5733 }
 0x186   : > { %v5751_v31 = vunpack.i.h.bf16 %v5749_v33  ;;  %v5750_v0 = vunpack.i.l.bf16 %v5749_v33  ;;  %v5736_v35 = vunpack.i.h.bf16 %v5734_v56  ;;  %v5735_v40 = vunpack.i.l.bf16 %v5734_v56 }
 0x187   : > { %v760_v56 = vmul.f32 %v639_v41, %v6725_v57  ;;  %v573_v57 = vsel %vm559_vm1, %v542_v25, %v543_v10  ;;  %v5731_v10 = vunpack.i.h.bf16 %v7002_v24 }
 0x188   : > { %v1238_v42 = vsel %vm1234_vm4, %v1209_v47, %v5751_v31  ;;  %v1237_v15 = vsel %vm1234_vm4, %v1208_v44, %v5750_v0  ;;  %v1235_v14 = vsel %vm1234_vm4, %v1206_v5, %v5735_v40  ;;  %v1236_v9 = vsel %vm1234_vm4, %v1207_v12, %v5736_v35 }
 0x189   : > { %v1264_v48 = vpack.c.bf16 %v1238_v42, %v1237_v15  ;;  %v1263_v33 = vpack.c.bf16 %v1236_v9, %v1235_v14  ;;  %v5739_v2 = vpop.permute.xlu1 %5738  ;;  %v536_v12 = vrot.slane %v6737_v59, 7  ;;  %v5726_v31 = vunpack.i.h.bf16 %v6992_v17 }
 0x18a   : > { %v5741_v21 = vunpack.i.h.bf16 %v5739_v2  ;;  %v5740_v41 = vunpack.i.l.bf16 %v5739_v2  ;;  %v1210_v17 = vsel %vm1205_vm3, %v760_v56, %v5725_v58  ;;  %v546_v5 = vrot.slane %v6841_v49, 7 }
 0x18b   : > { %4586 = vmatmul.mubr.msk.bf16.vlgmr.msra.gmra.mrb[0].mxu0 %vm1355_vm5, %v1263_v33  ;;  %v580_v60 = vsel %vm559_vm1, %v535_v32, %v536_v12  ;;  %v1211_v50 = vsel %vm1205_vm3, %v761_v45, %v5726_v31  ;;  %v762_v44 = vmul.f32 %v6988_v61, %v581_v54  ;;  %v771_v42 = vmul.f32 %v6994_v36, %v572_v55 }
 0x18c   : > { %1447 = vmatprep.mubr.bf16.mxu0 %v6204_v1  ;;  %v763_v47 = vmul.f32 %v6990_v27, %v580_v60  ;;  %v770_v15 = vmul.f32 %v6996_v29, %v573_v57  ;;  %v570_v24 = vsel %vm559_vm1, %v545_v53, %v546_v5 }
 0x18d   : > { %v1221_v45 = vsel %vm1205_vm3, %v771_v42, %v5741_v21  ;;  %v571_v21 = vsel %vm559_vm1, %v544_v39, %v545_v53  ;;  %v773_v42 = vmul.f32 %v7004_v8, %v570_v24 }
 0x18e   : > { %v1220_v61 = vsel %vm1205_vm3, %v770_v15, %v5740_v41  ;;  %v537_v41 = vrot.slane %v6790_v52, 7  ;;  %v772_v39 = vmul.f32 %v7013_v30, %v571_v21  ;;  %v539_v30 = vrot.slane %v6822_v19, 7 }
 0x193   : > { %4587 = vmatmul.mubr.msk.bf16.gmra.mrb[4].mxu0 %vm1355_vm5, %v1264_v48 }
 0x194   : > { %1457 = vmatprep.mubr.bf16.mxu0 %v6204_v1 }
 0x196   : > { %v7036_v37 = vpop.permute.xlu0 %713 }
 0x19a   : > { %v7039_v0 = vpop.permute.xlu0 %683  ;;  %v7041_v34 = vpop.permute.xlu1 %668 }
 0x19e   : > { %v5769_v35 = vpop.permute.xlu0 %5768  ;;  %v7052_v40 = vpop.permute.xlu1 %5743 }
 0x19f   : > { %v5771_v31 = vunpack.i.h.bf16 %v5769_v35  ;;  %v5770_v58 = vunpack.i.l.bf16 %v5769_v35  ;;  %v1213_v35 = vsel %vm1205_vm3, %v763_v47, %v5731_v10 }
 0x1a1   : > { %v1242_v52 = vsel %vm1234_vm4, %v1213_v35, %v5771_v31  ;;  %v547_v31 = vrot.slane %v6844_v51, 7 }
 0x1a2   : > { %v5774_v14 = vpop.permute.xlu0 %5773  ;;  %v5754_v9 = vpop.permute.xlu1 %5753 }
 0x1a3   : > { %v5776_v48 = vunpack.i.h.bf16 %v5774_v14  ;;  %v5775_v33 = vunpack.i.l.bf16 %v5774_v14  ;;  %v5756_v2 = vunpack.i.h.bf16 %v5754_v9  ;;  %v5755_v32 = vunpack.i.l.bf16 %v5754_v9 }
 0x1a5   : > { %v1249_v27 = vsel %vm1234_vm4, %v1220_v61, %v5775_v33  ;;  %v1250_v36 = vsel %vm1234_vm4, %v1221_v45, %v5776_v48  ;;  %v1240_v29 = vsel %vm1234_vm4, %v1211_v50, %v5756_v2  ;;  %v1239_v56 = vsel %vm1234_vm4, %v1210_v17, %v5755_v32 }
 0x1a6   : > { %v1270_v54 = vpack.c.bf16 %v1250_v36, %v1249_v27  ;;  %v1265_v60 = vpack.c.bf16 %v1240_v29, %v1239_v56  ;;  %v5779_v55 = vpop.permute.xlu0 %5778  ;;  %v7084_v57 = vpop.permute.xlu1 %708  ;;  %v538_v50 = vrot.slane %v6819_v18, 7  ;;  %v1212_v17 = vsel %vm1205_vm3, %v762_v44, %v5730_v3 }
 0x1a7   : > { %v1241_v18 = vsel %vm1234_vm4, %v1212_v17, %v5770_v58  ;;  %v579_v44 = vsel %vm559_vm1, %v536_v12, %v537_v41  ;;  %v540_v33 = vrot.slane %v6855_v11, 7  ;;  %v5746_v2 = vunpack.i.h.bf16 %v7052_v40 }
 0x1a8   : > { %4588 = vmatmul.mubr.msk.bf16.gmra.mrb[8].mxu0 %vm1355_vm5, %v1265_v60  ;;  %4593 = vmatmul.mubr.msk.bf16.vlgmr.msra.gmra.mrb[0].mxu1 %vm1355_vm5, %v1270_v54  ;;  %v578_v8 = vsel %vm559_vm1, %v537_v41, %v538_v50  ;;  %v1266_v3 = vpack.c.bf16 %v1242_v52, %v1241_v18  ;;  %v5745_v45 = vunpack.i.l.bf16 %v7052_v40  ;;  %v5781_v36 = vunpack.i.h.bf16 %v5779_v55 }
 0x1a9   : > { %1467 = vmatprep.mubr.bf16.mxu0 %v6204_v1  ;;  %1517 = vmatprep.mubr.bf16.mxu1 %v6204_v1  ;;  %v5780_v29 = vunpack.i.l.bf16 %v5779_v55  ;;  %v764_v11 = vmul.f32 %v6998_v43, %v579_v44  ;;  %v765_v56 = vmul.f32 %v7000_v6, %v578_v8  ;;  %v576_v40 = vsel %vm559_vm1, %v539_v30, %v540_v33 }
 0x1aa   : > { %v5784_v53 = vpop.permute.xlu0 %5783  ;;  %v5759_v15 = vpop.permute.xlu1 %5758  ;;  %v548_v6 = vrot.slane %v6875_v16, 7  ;;  %v577_v55 = vsel %vm559_vm1, %v538_v50, %v539_v30  ;;  %v767_v35 = vmul.f32 %v7015_v46, %v576_v40  ;;  %v541_v17 = vrot.slane %v6858_v63, 7 }
 0x1ab   : > { %v5786_v14 = vunpack.i.h.bf16 %v5784_v53  ;;  %v5785_v9 = vunpack.i.l.bf16 %v5784_v53  ;;  %v5761_v48 = vunpack.i.h.bf16 %v5759_v15  ;;  %v5760_v47 = vunpack.i.l.bf16 %v5759_v15 }
 0x1ac   : > { %v1215_v58 = vsel %vm1205_vm3, %v765_v56, %v5746_v2  ;;  %v1214_v54 = vsel %vm1205_vm3, %v764_v11, %v5745_v45  ;;  %v568_v16 = vsel %vm559_vm1, %v547_v31, %v548_v6  ;;  %v569_v50 = vsel %vm559_vm1, %v546_v5, %v547_v31 }
 0x1ad   : > { %v1223_v32 = vsel %vm1205_vm3, %v773_v42, %v5761_v48  ;;  %v1222_v10 = vsel %vm1205_vm3, %v772_v39, %v5760_v47  ;;  %v1243_v24 = vsel %vm1234_vm4, %v1214_v54, %v5780_v29  ;;  %v1244_v21 = vsel %vm1234_vm4, %v1215_v58, %v5781_v36 }
 0x1ae   : > { %v5789_v59 = vpop.permute.xlu0 %5788  ;;  %v679_v61 = vpop.permute.xlu1 %678  ;;  %v1251_v12 = vsel %vm1234_vm4, %v1222_v10, %v5785_v9  ;;  %v1252_v27 = vsel %vm1234_vm4, %v1223_v32, %v5786_v14  ;;  %v766_v42 = vmul.f32 %v7041_v34, %v577_v55  ;;  %v1267_v39 = vpack.c.bf16 %v1244_v21, %v1243_v24 }
 0x1af   : > { %v1271_v19 = vpack.c.bf16 %v1252_v27, %v1251_v12  ;;  %v5791_v63 = vunpack.i.h.bf16 %v5789_v59  ;;  %v5790_v46 = vunpack.i.l.bf16 %v5789_v59  ;;  %v775_v34 = vmul.f32 %v7036_v37, %v568_v16 }
 0x1b0   : > { %4589 = vmatmul.mubr.msk.bf16.gmra.mrb[12].mxu0 %vm1355_vm5, %v1266_v3  ;;  %v574_v49 = vsel %vm559_vm1, %v541_v17, %v542_v25  ;;  %v774_v14 = vmul.f32 %v7084_v57, %v569_v50  ;;  %v575_v30 = vsel %vm559_vm1, %v540_v33, %v541_v17  ;;  %v549_v33 = vrot.slane %v6878_v4, 7 }
 0x1b1   : > { %4594 = vmatmul.mubr.msk.bf16.gmra.mrb[4].mxu1 %vm1355_vm5, %v1271_v19  ;;  %1477 = vmatprep.mubr.bf16.mxu0 %v6204_v1  ;;  %v769_v25 = vmul.f32 %v7039_v0, %v574_v49  ;;  %v768_v12 = vmul.f32 %v679_v61, %v575_v30  ;;  %v550_v19 = vrot.slane %v6905_v62, 7  ;;  %v551_v17 = vrot.slane %v6908_v13, 7 }
 0x1b2   : > { %v7128_v60 = vpop.permute.xlu0 %723  ;;  %v5764_v43 = vpop.permute.xlu1 %5763  ;;  %1527 = vmatprep.mubr.bf16.mxu1 %v6204_v1  ;;  %v567_v54 = vsel %vm559_vm1, %v548_v6, %v549_v33 }
 0x1b3   : > { %v5766_v41 = vunpack.i.h.bf16 %v5764_v43  ;;  %v5765_v51 = vunpack.i.l.bf16 %v5764_v43  ;;  %v566_v58 = vsel %vm559_vm1, %v549_v33, %v550_v19 }
 0x1b4   : > { %v777_v21 = vmul.f32 %v7128_v60, %v566_v58 }
 0x1b5   : > { %v1217_v53 = vsel %vm1205_vm3, %v767_v35, %v5766_v41  ;;  %v1216_v15 = vsel %vm1205_vm3, %v766_v42, %v5765_v51  ;;  %v552_v42 = vrot.slane %v6929_v22, 7  ;;  %v565_v22 = vsel %vm559_vm1, %v550_v19, %v551_v17 }
 0x1b6   : > { %v5799_v52 = vpop.permute.xlu0 %5798  ;;  %v719_v18 = vpop.permute.xlu1 %718  ;;  %v1245_v44 = vsel %vm1234_vm4, %v1216_v15, %v5790_v46  ;;  %v1246_v8 = vsel %vm1234_vm4, %v1217_v53, %v5791_v63 }
 0x1b7   : > { %v5801_v2 = vunpack.i.h.bf16 %v5799_v52  ;;  %v5800_v37 = vunpack.i.l.bf16 %v5799_v52  ;;  %v1268_v3 = vpack.c.bf16 %v1246_v8, %v1245_v44  ;;  %v776_v41 = vmul.f32 %v719_v18, %v567_v54 }
 0x1b8   : > { %4590 = vmatmul.mubr.msk.bf16.gmra.mrb[16].mxu0 %vm1355_vm5, %v1267_v39  ;;  %v564_v13 = vsel %vm559_vm1, %v551_v17, %v552_v42  ;;  %v1292_v17 = vsub.s32 0, %v6489_v7 }
 0x1b9   : > { %1487 = vmatprep.mubr.bf16.mxu0 %v6204_v1 }
 0x1ba   : > { %v5809_v5 = vpop.permute.xlu0 %5808  ;;  %v5794_v9 = vpop.permute.xlu1 %5793 }
 0x1bb   : > { %v5796_v48 = vunpack.i.h.bf16 %v5794_v9  ;;  %v5795_v47 = vunpack.i.l.bf16 %v5794_v9  ;;  %v5811_v11 = vunpack.i.h.bf16 %v5809_v5  ;;  %v5810_v56 = vunpack.i.l.bf16 %v5809_v5 }
 0x1bc   : > { %v553_v9 = vrot.slane %v6932_v23, 7 }
 0x1bd   : > { %v1225_v26 = vsel %vm1205_vm3, %v775_v34, %v5796_v48  ;;  %v1224_v32 = vsel %vm1205_vm3, %v774_v14, %v5795_v47  ;;  %v554_v48 = vrot.slane %v6952_v28, 7 }
 0x1be   : > { %v734_v57 = vpop.permute.xlu0 %733  ;;  %v5804_v10 = vpop.permute.xlu1 %5803  ;;  %v1253_v45 = vsel %vm1234_vm4, %v1224_v32, %v5800_v37  ;;  %v1254_v59 = vsel %vm1234_vm4, %v1225_v26, %v5801_v2  ;;  %v555_v2 = vrot.slane %v6947_v20, 7  ;;  %v563_v23 = vsel %vm559_vm1, %v552_v42, %v553_v9  ;;  %v1288_v42 = vld [vmem:[%s8626_s2] sm:$0x3] }
 0x1bf   : > { %v5806_v27 = vunpack.i.h.bf16 %v5804_v10  ;;  %v5805_v36 = vunpack.i.l.bf16 %v5804_v10  ;;  %v1272_v29 = vpack.c.bf16 %v1254_v59, %v1253_v45  ;;  %v779_v46 = vmul.f32 %v734_v57, %v564_v13 }
 0x1c0   : > { %4591 = vmatmul.mubr.msk.bf16.gmra.mrb[20].mxu0 %vm1355_vm5, %v1268_v3  ;;  %v562_v57 = vsel %vm559_vm1, %v553_v9, %v554_v48  ;;  %v8679_v10 = vrot.slane %v6648_v38, 7  ;;  %v561_v33 = vsel %vm559_vm1, %v554_v48, %v555_v2 }
 0x1c1   : > { %v1219_v0 = vsel %vm1205_vm3, %v769_v25, %v5806_v27  ;;  %v1218_v40 = vsel %vm1205_vm3, %v768_v12, %v5805_v36  ;;  %4595 = vmatmul.mubr.msk.bf16.gmra.mrb[8].mxu1 %vm1355_vm5, %v1272_v29  ;;  %1497 = vmatprep.mubr.bf16.mxu0 %v6204_v1 }
 0x1c2   : > { %v5819_v61 = vpop.permute.xlu0 %5818  ;;  %v729_v31 = vpop.permute.xlu1 %728  ;;  %1537 = vmatprep.mubr.bf16.mxu1 %v6204_v1  ;;  %v1247_v4 = vsel %vm1234_vm4, %v1218_v40, %v5810_v56  ;;  %v1248_v62 = vsel %vm1234_vm4, %v1219_v0, %v5811_v11  ;;  %v560_v20 = vsel %vm559_vm1, %v555_v2, %v8679_v10 }
 0x1c3   : > { %v1269_v24 = vpack.c.bf16 %v1248_v62, %v1247_v4  ;;  %v5821_v39 = vunpack.i.h.bf16 %v5819_v61  ;;  %v5820_v52 = vunpack.i.l.bf16 %v5819_v61  ;;  %v778_v34 = vmul.f32 %v729_v31, %v565_v22 }
 0x1c6   : > { %v744_v43 = vpop.permute.xlu0 %743  ;;  %v5814_v55 = vpop.permute.xlu1 %5813 }
 0x1c7   : > { %v5816_v51 = vunpack.i.h.bf16 %v5814_v55  ;;  %v5815_v35 = vunpack.i.l.bf16 %v5814_v55  ;;  %v781_v45 = vmul.f32 %v744_v43, %v562_v57 }
 0x1c8   : > { %4592 = vmatmul.mubr.msk.bf16.gmra.mrb[24].mxu0 %vm1355_vm5, %v1269_v24 }
 0x1c9   : > { %v1227_v16 = vsel %vm1205_vm3, %v777_v21, %v5816_v51  ;;  %v1226_v6 = vsel %vm1205_vm3, %v776_v41, %v5815_v35  ;;  %v1803_v35 = vld [vmem:[#allocation2 + $0x8] sm:$0xff] }
 0x1ca   : > { %v5829_v50 = vpop.permute.xlu0 %5828  ;;  %v739_v53 = vpop.permute.xlu1 %738  ;;  %v1255_v15 = vsel %vm1234_vm4, %v1226_v6, %v5820_v52  ;;  %v1256_v60 = vsel %vm1234_vm4, %v1227_v16, %v5821_v39  ;;  %v8654_v39 = vsub.s32 1, %v6489_v7  ;;  %v7230_v52 = vrot.slane %v1288_v42, %v1292_v17 }
 0x1cb   : > { %v1273_v18 = vpack.c.bf16 %v1256_v60, %v1255_v15  ;;  %v5831_v47 = vunpack.i.h.bf16 %v5829_v50  ;;  %v5830_v44 = vunpack.i.l.bf16 %v5829_v50  ;;  %v780_v59 = vmul.f32 %v739_v53, %v563_v23 }
 0x1cc   : > { %v7234_v16 = vrot.slane %v1288_v42, %v8654_v39 }
 0x1cd   : > { %4596 = vmatmul.mubr.msk.bf16.gmra.mrb[12].mxu1 %vm1355_vm5, %v1273_v18 }
 0x1ce   : > { %v5824_v63 = vpop.permute.xlu1 %5823  ;;  %1547 = vmatprep.mubr.bf16.mxu1 %v6204_v1  ;;  %v754_v49 = vpop.permute.xlu0 %753 }
 0x1cf   : > { %v5826_v14 = vunpack.i.h.bf16 %v5824_v63  ;;  %v5825_v5 = vunpack.i.l.bf16 %v5824_v63  ;;  %v783_v38 = vmul.f32 %v754_v49, %v560_v20 }
 0x1d1   : > { %v1229_v8 = vsel %vm1205_vm3, %v779_v46, %v5826_v14  ;;  %v1228_v30 = vsel %vm1205_vm3, %v778_v34, %v5825_v5 }
 0x1d2   : > { %v749_v37 = vpop.permute.xlu1 %748  ;;  %v1257_v26 = vsel %vm1234_vm4, %v1228_v30, %v5830_v44  ;;  %v1258_v32 = vsel %vm1234_vm4, %v1229_v8, %v5831_v47  ;;  %v5839_v28 = vpop.permute.xlu0 %5838 }
 0x1d3   : > { %v1274_v25 = vpack.c.bf16 %v1258_v32, %v1257_v26  ;;  %v5841_v36 = vunpack.i.h.bf16 %v5839_v28  ;;  %v5840_v29 = vunpack.i.l.bf16 %v5839_v28  ;;  %v782_v61 = vmul.f32 %v749_v37, %v561_v33 }
 0x1d5   : > { %4597 = vmatmul.mubr.msk.bf16.gmra.mrb[16].mxu1 %vm1355_vm5, %v1274_v25 }
 0x1d6   : > { %v5834_v3 = vpop.permute.xlu1 %5833  ;;  %1557 = vmatprep.mubr.bf16.mxu1 %v6204_v1  ;;  %v5849_v31 = vpop.permute.xlu0 %5848 }
 0x1d7   : > { %v5836_v12 = vunpack.i.h.bf16 %v5834_v3  ;;  %v5835_v27 = vunpack.i.l.bf16 %v5834_v3  ;;  %v5851_v55 = vunpack.i.h.bf16 %v5849_v31  ;;  %v5850_v24 = vunpack.i.l.bf16 %v5849_v31 }
 0x1d9   : > { %v1231_v19 = vsel %vm1205_vm3, %v781_v45, %v5836_v12  ;;  %v1230_v11 = vsel %vm1205_vm3, %v780_v59, %v5835_v27 }
 0x1da   : > { %v5844_v56 = vpop.permute.xlu1 %5843  ;;  %v1259_v0 = vsel %vm1234_vm4, %v1230_v11, %v5840_v29  ;;  %v1260_v40 = vsel %vm1234_vm4, %v1231_v19, %v5841_v36 }
 0x1db   : > { %v5846_v4 = vunpack.i.h.bf16 %v5844_v56  ;;  %v5845_v62 = vunpack.i.l.bf16 %v5844_v56  ;;  %v1275_v58 = vpack.c.bf16 %v1260_v40, %v1259_v0 }
 0x1dd   : > { %v1233_v54 = vsel %vm1205_vm3, %v783_v38, %v5846_v4  ;;  %v1232_v43 = vsel %vm1205_vm3, %v782_v61, %v5845_v62  ;;  %4598 = vmatmul.mubr.msk.bf16.gmra.mrb[20].mxu1 %vm1355_vm5, %v1275_v58 }
 0x1de   : > { %1567 = vmatprep.mubr.bf16.mxu1 %v6204_v1  ;;  %v1261_v21 = vsel %vm1234_vm4, %v1232_v43, %v5850_v24  ;;  %v1262_v41 = vsel %vm1234_vm4, %v1233_v54, %v5851_v55 }
 0x1df   : > { %v1276_v51 = vpack.c.bf16 %v1262_v41, %v1261_v21 }
 0x1e5   : > { %4599 = vmatmul.mubr.msk.bf16.gmra.mrb[24].mxu1 %vm1355_vm5, %v1276_v51 }
 0x1e6   : > { %4600 = vmatprep.mubr.msk.f32.mxu1 %vm1830_vm6, %v1803_v35 }
 0x25e   : > { %v1439_v6 = vpop.f32.mrb[0].mxu0 }
 0x25f   : > { %v1440_v50 = vadd.f32 %v1439_v6, %v7230_v52  ;;  %v1441_v53 = vpop.f32.mrb[1].mxu0 }
 0x260   : > { %v1442_v15 = vadd.f32 %v1441_v53, %v7234_v16  ;;  %v1443_v60 = vpop.f32.mrb[2].mxu0 }
 0x261   : > { %v1578_v18 = vmax.f32 %v1440_v50, 0.0  ;;  %v1444_v13 = vadd.f32 %v1443_v60, %v7230_v52  ;;  %v1445_v22 = vpop.f32.mrb[3].mxu0 }
 0x262   : > { %v1579_v63 = vmax.f32 %v1442_v15, 0.0  ;;  %v1446_v46 = vadd.f32 %v1445_v22, %v7234_v16 }
 0x263   : > { %v1580_v34 = vmax.f32 %v1444_v13, 0.0  ;;  %v7240_v14 = vrot.slane %v1578_v18, 1 }
 0x264   : > { %v1581_v49 = vmax.f32 %v1446_v46, 0.0  ;;  %v7242_v9 = vrot.slane %v1579_v63, 1 }
 0x265   : > { %v1636_v5 = vrot.slane %v1580_v34, 1 }
 0x266   : > { %v1637_v48 = vrot.slane %v1581_v49, 1  ;;  %v1449_v47 = vpop.f32.mrb[4].mxu0 }
 0x267   : > { %v1742_v44 = vsel %vm812_vm0, %v7240_v14, %v1636_v5  ;;  %v1450_v8 = vadd.f32 %v1449_v47, %v7230_v52  ;;  %v1451_v30 = vpop.f32.mrb[5].mxu0 }
 0x268   : > { %v1746_v2 = vmax.f32 %v1578_v18, %v1742_v44  ;;  %v1452_v37 = vadd.f32 %v1451_v30, %v7234_v16  ;;  %v1453_v26 = vpop.f32.mrb[6].mxu0  ;;  %v1743_v32 = vsel %vm812_vm0, %v7242_v9, %v1637_v48 }
 0x269   : > { %v1582_v25 = vmax.f32 %v1450_v8, 0.0  ;;  %v1454_v57 = vadd.f32 %v1453_v26, %v7230_v52  ;;  %v1455_v23 = vpop.f32.mrb[7].mxu0  ;;  %v1747_v28 = vmax.f32 %v1579_v63, %v1743_v32 }
 0x26a   : > { %v1583_v10 = vmax.f32 %v1452_v37, 0.0  ;;  %v1456_v20 = vadd.f32 %v1455_v23, %v7234_v16 }
 0x26b   : > { %v1638_v3 = vrot.slane %v1582_v25, 1  ;;  %v1584_v45 = vmax.f32 %v1454_v57, 0.0 }
 0x26c   : > { %v1639_v59 = vrot.slane %v1583_v10, 1  ;;  %v1585_v12 = vmax.f32 %v1456_v20, 0.0 }
 0x26d   : > { %v1740_v27 = vsel %vm812_vm0, %v1636_v5, %v1638_v3  ;;  %v1640_v36 = vrot.slane %v1584_v45, 1 }
 0x26e   : > { %v1748_v29 = vmax.f32 %v1580_v34, %v1740_v27  ;;  %v1641_v33 = vrot.slane %v1585_v12, 1  ;;  %v1741_v19 = vsel %vm812_vm0, %v1637_v48, %v1639_v59 }
 0x26f   : > { %v1738_v11 = vsel %vm812_vm0, %v1638_v3, %v1640_v36  ;;  %v1749_v38 = vmax.f32 %v1581_v49, %v1741_v19 }
 0x270   : > { %v7260_v56 = vmax.f32 %v1582_v25, %v1738_v11  ;;  %v5132_v0 = vpack.c.bf16 %v1748_v29, %v1746_v2  ;;  %v1739_v40 = vsel %vm812_vm0, %v1639_v59, %v1641_v33 }
 0x271   : > { %v5130_v61 = vpack.c.bf16 %v1749_v38, %v1747_v28  ;;  %v7264_v31 = vmax.f32 %v1583_v10, %v1739_v40 }
 0x273   : > { %5131 = vmatprep.subr.bf16.mxu1 %v5130_v61 }
 0x274   : > { %5133 = vmatpush1.bf16.msra.mxu1 %v5132_v0 }
 0x27b   : > { %v1459_v4 = vpop.f32.mrb[8].mxu0  ;;  %v1509_v62 = vpop.f32.mrb[0].mxu1 }
 0x27c   : > { %v1460_v58 = vadd.f32 %v1459_v4, %v7230_v52  ;;  %v1510_v54 = vadd.f32 %v1509_v62, %v7230_v52  ;;  %v1461_v43 = vpop.f32.mrb[9].mxu0  ;;  %v1511_v55 = vpop.f32.mrb[1].mxu1 }
 0x27d   : > { %v7269_v24 = vadd.f32 %v1461_v43, %v7234_v16  ;;  %v7272_v21 = vadd.f32 %v1511_v55, %v7234_v16  ;;  %v1463_v41 = vpop.f32.mrb[10].mxu0  ;;  %v1513_v51 = vpop.f32.mrb[2].mxu1 }
 0x27e   : > { %v1586_v35 = vmax.f32 %v1460_v58, 0.0  ;;  %v1606_v42 = vmax.f32 %v1510_v54, 0.0  ;;  %v1464_v6 = vadd.f32 %v1463_v41, %v7230_v52  ;;  %v7276_v50 = vadd.f32 %v1513_v51, %v7230_v52  ;;  %v1465_v53 = vpop.f32.mrb[11].mxu0  ;;  %v1515_v15 = vpop.f32.mrb[3].mxu1 }
 0x27f   : > { %v1587_v60 = vmax.f32 %v7269_v24, 0.0  ;;  %v1607_v18 = vmax.f32 %v7272_v21, 0.0  ;;  %v7281_v13 = vadd.f32 %v1465_v53, %v7234_v16  ;;  %v7284_v22 = vadd.f32 %v1515_v15, %v7234_v16 }
 0x280   : > { %v1642_v63 = vrot.slane %v1586_v35, 1  ;;  %v1588_v46 = vmax.f32 %v1464_v6, 0.0  ;;  %v1608_v34 = vmax.f32 %v7276_v50, 0.0  ;;  %v7287_v49 = vrot.slane %v1606_v42, 1 }
 0x281   : > { %v7291_v5 = vrot.slane %v1587_v60, 1  ;;  %v1589_v48 = vmax.f32 %v7281_v13, 0.0  ;;  %v1609_v47 = vmax.f32 %v7284_v22, 0.0  ;;  %v7299_v8 = vrot.slane %v1607_v18, 1 }
 0x282   : > { %v1736_v44 = vsel %vm812_vm0, %v1640_v36, %v1642_v63  ;;  %v1644_v30 = vrot.slane %v1588_v46, 1  ;;  %v1664_v2 = vrot.slane %v1608_v34, 1 }
 0x283   : > { %v1752_v37 = vmax.f32 %v1584_v45, %v1736_v44  ;;  %v1645_v26 = vrot.slane %v1589_v48, 1  ;;  %v7305_v32 = vrot.slane %v1609_v47, 1  ;;  %v1469_v25 = vpop.f32.mrb[12].mxu0  ;;  %v1737_v57 = vsel %vm812_vm0, %v1641_v33, %v7291_v5 }
 0x284   : > { %v1734_v23 = vsel %vm812_vm0, %v1642_v63, %v1644_v30  ;;  %v1714_v28 = vsel %vm812_vm0, %v7287_v49, %v1664_v2  ;;  %v1470_v10 = vadd.f32 %v1469_v25, %v7230_v52  ;;  %v1471_v20 = vpop.f32.mrb[13].mxu0  ;;  %v1519_v3 = vpop.f32.mrb[4].mxu1  ;;  %v1753_v45 = vmax.f32 %v1585_v12, %v1737_v57 }
 0x285   : > { %v7316_v59 = vmax.f32 %v1586_v35, %v1734_v23  ;;  %v7318_v27 = vmax.f32 %v1606_v42, %v1714_v28  ;;  %v1472_v36 = vadd.f32 %v1471_v20, %v7234_v16  ;;  %v1520_v29 = vadd.f32 %v1519_v3, %v7230_v52  ;;  %v1473_v33 = vpop.f32.mrb[14].mxu0  ;;  %v1521_v19 = vpop.f32.mrb[5].mxu1 }
 0x286   : > { %v1590_v11 = vmax.f32 %v1470_v10, 0.0  ;;  %v7323_v38 = vadd.f32 %v1473_v33, %v7230_v52  ;;  %v7326_v0 = vadd.f32 %v1521_v19, %v7234_v16  ;;  %v1475_v40 = vpop.f32.mrb[15].mxu0  ;;  %v1523_v61 = vpop.f32.mrb[6].mxu1  ;;  %v5134_v12 = vpack.c.bf16 %v1753_v45, %v7264_v31 }
 0x287   : > { %v1591_v4 = vmax.f32 %v1472_v36, 0.0  ;;  %v1610_v62 = vmax.f32 %v1520_v29, 0.0  ;;  %v7330_v58 = vadd.f32 %v1475_v40, %v7234_v16  ;;  %v7333_v54 = vadd.f32 %v1523_v61, %v7230_v52  ;;  %v1525_v43 = vpop.f32.mrb[7].mxu1 }
 0x288   : > { %v1646_v55 = vrot.slane %v1590_v11, 1  ;;  %v1592_v41 = vmax.f32 %v7323_v38, 0.0  ;;  %v1611_v51 = vmax.f32 %v7326_v0, 0.0  ;;  %v7338_v35 = vadd.f32 %v1525_v43, %v7234_v16  ;;  %5135 = vmatprep.subr.bf16.mxu1 %v5134_v12 }
 0x289   : > { %v1647_v42 = vrot.slane %v1591_v4, 1  ;;  %v1666_v31 = vrot.slane %v1610_v62, 1  ;;  %v1593_v6 = vmax.f32 %v7330_v58, 0.0  ;;  %v1612_v50 = vmax.f32 %v7333_v54, 0.0 }
 0x28a   : > { %v1732_v53 = vsel %vm812_vm0, %v1644_v30, %v1646_v55  ;;  %v1648_v15 = vrot.slane %v1592_v41, 1  ;;  %v7346_v63 = vrot.slane %v1611_v51, 1  ;;  %v1613_v44 = vmax.f32 %v7338_v35, 0.0 }
 0x28b   : > { %v1756_v25 = vmax.f32 %v1588_v46, %v1732_v53  ;;  %v1712_v57 = vsel %vm812_vm0, %v1664_v2, %v1666_v31  ;;  %v1649_v23 = vrot.slane %v1593_v6, 1  ;;  %v7353_v28 = vrot.slane %v1612_v50, 1  ;;  %v1479_v10 = vpop.f32.mrb[16].mxu0 }
 0x28c   : > { %v7355_v20 = vmax.f32 %v1608_v34, %v1712_v57  ;;  %v1730_v30 = vsel %vm812_vm0, %v1646_v55, %v1648_v15  ;;  %v7361_v3 = vrot.slane %v1613_v44, 1  ;;  %v5136_v46 = vpack.c.bf16 %v1752_v37, %v7260_v56  ;;  %v1481_v45 = vpop.f32.mrb[17].mxu0 }
 0x28d   : > { %v7364_v36 = vmax.f32 %v1590_v11, %v1730_v30  ;;  %v1710_v2 = vsel %vm812_vm0, %v1666_v31, %v7353_v28  ;;  %v1480_v29 = vadd.f32 %v1479_v10, %v7230_v52  ;;  %v7371_v34 = vadd.f32 %v1481_v45, %v7234_v16  ;;  %v1483_v33 = vpop.f32.mrb[18].mxu0 }
 0x28e   : > { %v7373_v19 = vmax.f32 %v1610_v62, %v1710_v2  ;;  %5137 = vmatpush1.bf16.msra.mxu1 %v5136_v46  ;;  %v7376_v38 = vadd.f32 %v1483_v33, %v7230_v52  ;;  %v1485_v56 = vpop.f32.mrb[19].mxu0  ;;  %v1733_v37 = vsel %vm812_vm0, %v1645_v26, %v1647_v42  ;;  %v1735_v11 = vsel %vm812_vm0, %v7291_v5, %v1645_v26 }
 0x28f   : > { %v1594_v40 = vmax.f32 %v1480_v29, 0.0  ;;  %v1595_v61 = vmax.f32 %v7371_v34, 0.0  ;;  %v7385_v12 = vadd.f32 %v1485_v56, %v7234_v16  ;;  %v1755_v62 = vmax.f32 %v1587_v60, %v1735_v11 }
 0x290   : > { %v1596_v58 = vmax.f32 %v7376_v38, 0.0  ;;  %v1757_v43 = vmax.f32 %v1589_v48, %v1733_v37  ;;  %v5140_v55 = vpack.c.bf16 %v1756_v25, %v7316_v59  ;;  %v1731_v31 = vsel %vm812_vm0, %v1647_v42, %v1649_v23 }
 0x291   : > { %v1650_v5 = vrot.slane %v1594_v40, 1  ;;  %v1651_v26 = vrot.slane %v1595_v61, 1  ;;  %v1597_v53 = vmax.f32 %v7385_v12, 0.0  ;;  %v1759_v57 = vmax.f32 %v1591_v4, %v1731_v31 }
 0x292   : > { %v1652_v10 = vrot.slane %v1596_v58, 1  ;;  %v5138_v24 = vpack.c.bf16 %v1757_v43, %v1755_v62  ;;  %v7402_v60 = vsel %vm812_vm0, %v7305_v32, %v7346_v63  ;;  %v1715_v13 = vsel %vm812_vm0, %v7299_v8, %v7305_v32 }
 0x293   : > { %v1728_v48 = vsel %vm812_vm0, %v1648_v15, %v1650_v5  ;;  %v1653_v59 = vrot.slane %v1597_v53, 1  ;;  %v1489_v4 = vpop.f32.mrb[20].mxu0  ;;  %v1729_v42 = vsel %vm812_vm0, %v1649_v23, %v1651_v26  ;;  %v7416_v25 = vmax.f32 %v1607_v18, %v1715_v13 }
 0x294   : > { %v1760_v30 = vmax.f32 %v1592_v41, %v1728_v48  ;;  %v1726_v46 = vsel %vm812_vm0, %v1650_v5, %v1652_v10  ;;  %5139 = vmatprep.subr.bf16.mxu1 %v5138_v24  ;;  %v1490_v32 = vadd.f32 %v1489_v4, %v7230_v52  ;;  %v1491_v45 = vpop.f32.mrb[21].mxu0  ;;  %v1529_v15 = vpop.f32.mrb[8].mxu1  ;;  %v1761_v2 = vmax.f32 %v1593_v6, %v1729_v42 }
 0x295   : > { %v7421_v29 = vmax.f32 %v1594_v40, %v1726_v46  ;;  %5141 = vmatpush1.bf16.msra.mxu1 %v5140_v55  ;;  %v7424_v33 = vadd.f32 %v1491_v45, %v7234_v16  ;;  %v1530_v21 = vadd.f32 %v1529_v15, %v7230_v52  ;;  %v1493_v18 = vpop.f32.mrb[22].mxu0  ;;  %v1531_v23 = vpop.f32.mrb[9].mxu1  ;;  %v1727_v41 = vsel %vm812_vm0, %v1651_v26, %v1653_v59 }
 0x296   : > { %v1598_v38 = vmax.f32 %v1490_v32, 0.0  ;;  %v7430_v56 = vadd.f32 %v1493_v18, %v7230_v52  ;;  %v7433_v37 = vadd.f32 %v1531_v23, %v7234_v16  ;;  %v1495_v6 = vpop.f32.mrb[23].mxu0  ;;  %v1533_v11 = vpop.f32.mrb[10].mxu1  ;;  %v5142_v40 = vpack.c.bf16 %v1761_v2, %v1759_v57 }
 0x297   : > { %v1599_v62 = vmax.f32 %v7424_v33, 0.0  ;;  %v1614_v43 = vmax.f32 %v1530_v21, 0.0  ;;  %v7437_v55 = vadd.f32 %v1495_v6, %v7234_v16  ;;  %v7440_v31 = vadd.f32 %v1533_v11, %v7230_v52  ;;  %v1535_v5 = vpop.f32.mrb[11].mxu1 }
 0x298   : > { %v1654_v26 = vrot.slane %v1598_v38, 1  ;;  %v1600_v24 = vmax.f32 %v7430_v56, 0.0  ;;  %v1615_v13 = vmax.f32 %v7433_v37, 0.0  ;;  %v7445_v48 = vadd.f32 %v1535_v5, %v7234_v16  ;;  %5143 = vmatprep.subr.bf16.mxu1 %v5142_v40 }
 0x299   : > { %v1655_v57 = vrot.slane %v1599_v62, 1  ;;  %v1670_v4 = vrot.slane %v1614_v43, 1  ;;  %v1601_v42 = vmax.f32 %v7437_v55, 0.0  ;;  %v1616_v46 = vmax.f32 %v7440_v31, 0.0 }
 0x29a   : > { %v1724_v32 = vsel %vm812_vm0, %v1652_v10, %v1654_v26  ;;  %v1656_v45 = vrot.slane %v1600_v24, 1  ;;  %v7453_v15 = vrot.slane %v1615_v13, 1  ;;  %v1617_v2 = vmax.f32 %v7445_v48, 0.0 }
 0x29b   : > { %v1764_v33 = vmax.f32 %v1596_v58, %v1724_v32  ;;  %v1708_v21 = vsel %vm812_vm0, %v7353_v28, %v1670_v4  ;;  %v1657_v18 = vrot.slane %v1601_v42, 1  ;;  %v1672_v23 = vrot.slane %v1616_v46, 1  ;;  %v1499_v56 = vpop.f32.mrb[24].mxu0 }
 0x29c   : > { %v7465_v10 = vmax.f32 %v1612_v50, %v1708_v21  ;;  %v1722_v6 = vsel %vm812_vm0, %v1654_v26, %v1656_v45  ;;  %v7471_v58 = vrot.slane %v1617_v2, 1  ;;  %v5144_v28 = vpack.c.bf16 %v1760_v30, %v7364_v36  ;;  %v1501_v11 = vpop.f32.mrb[25].mxu0 }
 0x29d   : > { %v7474_v40 = vmax.f32 %v1598_v38, %v1722_v6  ;;  %v1706_v5 = vsel %vm812_vm0, %v1670_v4, %v1672_v23  ;;  %v1500_v32 = vadd.f32 %v1499_v56, %v7230_v52  ;;  %v7480_v54 = vadd.f32 %v1501_v11, %v7234_v16  ;;  %v1503_v50 = vpop.f32.mrb[26].mxu0 }
 0x29e   : > { %v7482_v21 = vmax.f32 %v1614_v43, %v1706_v5  ;;  %5145 = vmatpush1.bf16.msra.mxu1 %v5144_v28  ;;  %v1504_v26 = vadd.f32 %v1503_v50, %v7230_v52  ;;  %v1505_v39 = vpop.f32.mrb[27].mxu0  ;;  %v1725_v36 = vsel %vm812_vm0, %v1653_v59, %v1655_v57  ;;  %v1763_v30 = vmax.f32 %v1595_v61, %v1727_v41 }
 0x29f   : > { %v1602_v38 = vmax.f32 %v1500_v32, 0.0  ;;  %v1603_v4 = vmax.f32 %v7480_v54, 0.0  ;;  %v1506_v56 = vadd.f32 %v1505_v39, %v7234_v16  ;;  %v1765_v6 = vmax.f32 %v1597_v53, %v1725_v36 }
 0x2a0   : > { %v1604_v43 = vmax.f32 %v1504_v26, 0.0  ;;  %v1539_v11 = vpop.f32.mrb[12].mxu1  ;;  %v5148_v28 = vpack.c.bf16 %v1764_v33, %v7421_v29  ;;  %v1723_v5 = vsel %vm812_vm0, %v1655_v57, %v1657_v18  ;;  %v7499_v34 = vmax.f32 %v1609_v47, %v7402_v60 }
 0x2a1   : > { %v1658_v61 = vrot.slane %v1602_v38, 1  ;;  %v1659_v59 = vrot.slane %v1603_v4, 1  ;;  %v1605_v41 = vmax.f32 %v1506_v56, 0.0  ;;  %v1540_v39 = vadd.f32 %v1539_v11, %v7230_v52  ;;  %v1541_v32 = vpop.f32.mrb[13].mxu1 }
 0x2a2   : > { %v1660_v12 = vrot.slane %v1604_v43, 1  ;;  %v5146_v53 = vpack.c.bf16 %v1765_v6, %v1763_v30  ;;  %v7503_v54 = vadd.f32 %v1541_v32, %v7234_v16  ;;  %v1543_v29 = vpop.f32.mrb[14].mxu1  ;;  %v1767_v33 = vmax.f32 %v1599_v62, %v1723_v5 }
 0x2a3   : > { %v1720_v57 = vsel %vm812_vm0, %v1656_v45, %v1658_v61  ;;  %v1661_v50 = vrot.slane %v1605_v41, 1  ;;  %v1618_v22 = vmax.f32 %v1540_v39, 0.0  ;;  %v1544_v47 = vadd.f32 %v1543_v29, %v7230_v52  ;;  %v1545_v60 = vpop.f32.mrb[15].mxu1 }
 0x2a4   : > { %v1768_v26 = vmax.f32 %v1600_v24, %v1720_v57  ;;  %v1716_v36 = vsel %vm812_vm0, %v1660_v12, %v7287_v49  ;;  %v1718_v30 = vsel %vm812_vm0, %v1658_v61, %v1660_v12  ;;  %5147 = vmatprep.subr.bf16.mxu1 %v5146_v53  ;;  %v1619_v56 = vmax.f32 %v7503_v54, 0.0 }
 0x2a5   : > { %v1770_v62 = vmax.f32 %v1602_v38, %v1718_v30  ;;  %v1772_v6 = vmax.f32 %v1604_v43, %v1716_v36  ;;  %v1717_v45 = vsel %vm812_vm0, %v1661_v50, %v7299_v8  ;;  %v1674_v11 = vrot.slane %v1618_v22, 1  ;;  %5149 = vmatpush1.bf16.msra.mxu1 %v5148_v28 }
 0x2a6   : > { %v1773_v5 = vmax.f32 %v1605_v41, %v1717_v45  ;;  %v7519_v24 = vrot.slane %v1619_v56, 1  ;;  %v1620_v49 = vmax.f32 %v1544_v47, 0.0  ;;  %v7522_v39 = vadd.f32 %v1545_v60, %v7234_v16 }
 0x2a7   : > { %v5156_v61 = vpack.c.bf16 %v1772_v6, %v1770_v62  ;;  %v1704_v38 = vsel %vm812_vm0, %v1672_v23, %v1674_v11  ;;  %v1721_v43 = vsel %vm812_vm0, %v1657_v18, %v1659_v59  ;;  %v5152_v8 = vpack.c.bf16 %v1768_v26, %v7474_v40 }
 0x2a8   : > { %v7531_v28 = vmax.f32 %v1616_v46, %v1704_v38  ;;  %v1676_v41 = vrot.slane %v1620_v49, 1  ;;  %v1621_v32 = vmax.f32 %v7522_v39, 0.0  ;;  %v1549_v12 = vpop.f32.mrb[16].mxu1  ;;  %v1769_v53 = vmax.f32 %v1601_v42, %v1721_v43 }
 0x2a9   : > { %v1550_v29 = vadd.f32 %v1549_v12, %v7230_v52  ;;  %v1551_v57 = vpop.f32.mrb[17].mxu1  ;;  %v1719_v23 = vsel %vm812_vm0, %v1659_v59, %v1661_v50  ;;  %v5158_v18 = vpack.c.bf16 %v7499_v34, %v7416_v25  ;;  %v5160_v31 = vpack.c.bf16 %v7355_v20, %v7318_v27 }
 0x2aa   : > { %v1702_v46 = vsel %vm812_vm0, %v1674_v11, %v1676_v41  ;;  %v1677_v40 = vrot.slane %v1621_v32, 1  ;;  %v5150_v47 = vpack.c.bf16 %v1769_v53, %v1767_v33  ;;  %v7546_v55 = vadd.f32 %v1551_v57, %v7234_v16  ;;  %v1553_v42 = vpop.f32.mrb[18].mxu1 }
 0x2ab   : > { %v7548_v60 = vmax.f32 %v1618_v22, %v1702_v46  ;;  %v1622_v26 = vmax.f32 %v1550_v29, 0.0  ;;  %v7551_v59 = vadd.f32 %v1553_v42, %v7230_v52  ;;  %v1771_v50 = vmax.f32 %v1603_v4, %v1719_v23  ;;  %v1555_v25 = vpop.f32.mrb[19].mxu1  ;;  %v2228_v23 = vld [vmem:[#allocation5 + $0xe0] sm:$0xff] }
 0x2ac   : > { %5151 = vmatprep.subr.bf16.mxu1 %v5150_v47  ;;  %v1623_v27 = vmax.f32 %v7546_v55, 0.0  ;;  %v7555_v20 = vadd.f32 %v1555_v25, %v7234_v16  ;;  %v1709_v34 = vsel %vm812_vm0, %v7361_v3, %v7453_v15  ;;  %v1711_v33 = vsel %vm812_vm0, %v7346_v63, %v7361_v3 }
 0x2ad   : > { %v1678_v22 = vrot.slane %v1622_v26, 1  ;;  %5153 = vmatpush1.bf16.msra.mxu1 %v5152_v8  ;;  %v1624_v4 = vmax.f32 %v7551_v59, 0.0  ;;  %v5154_v36 = vpack.c.bf16 %v1773_v5, %v1771_v50  ;;  %v1779_v30 = vmax.f32 %v1611_v51, %v1711_v33 }
 0x2ae   : > { %v1679_v62 = vrot.slane %v1623_v27, 1  ;;  %v1625_v6 = vmax.f32 %v7555_v20, 0.0  ;;  %v1781_v45 = vmax.f32 %v1613_v44, %v1709_v34  ;;  %v5164_v11 = vpack.c.bf16 %v7465_v10, %v7373_v19 }
 0x2af   : > { %v1700_v63 = vsel %vm812_vm0, %v1676_v41, %v1678_v22  ;;  %v1680_v3 = vrot.slane %v1624_v4, 1  ;;  %5155 = vmatprep.subr.bf16.mxu1 %v5154_v36  ;;  %v1705_v0 = vsel %vm812_vm0, %v7471_v58, %v7519_v24  ;;  %v1707_v51 = vsel %vm812_vm0, %v7453_v15, %v7471_v58  ;;  %v2230_v36 = vld [vmem:[#allocation5 + $0xf0] sm:$0xff] }
 0x2b0   : > { %v7583_v35 = vmax.f32 %v1620_v49, %v1700_v63  ;;  %v1681_v44 = vrot.slane %v1625_v6, 1  ;;  %v1559_v5 = vpop.f32.mrb[20].mxu1  ;;  %v5162_v19 = vpack.c.bf16 %v1781_v45, %v1779_v30  ;;  %v1783_v10 = vmax.f32 %v1615_v13, %v1707_v51  ;;  %v2231_v30 = vld [vmem:[#allocation5 + $0xf8] sm:$0xff] }
 0x2b1   : > { %v1698_v39 = vsel %vm812_vm0, %v1678_v22, %v1680_v3  ;;  %5157 = vmatpush1.bf16.msra.mxu1 %v5156_v61  ;;  %v1560_v38 = vadd.f32 %v1559_v5, %v7230_v52  ;;  %v1561_v43 = vpop.f32.mrb[21].mxu1  ;;  %v1785_v8 = vmax.f32 %v1617_v2, %v1705_v0  ;;  %v5168_v15 = vpack.c.bf16 %v7531_v28, %v7482_v21 }
 0x2b2   : > { %v7594_v58 = vmax.f32 %v1622_v26, %v1698_v39  ;;  %5159 = vmatprep.subr.bf16.mxu1 %v5158_v18  ;;  %v1562_v49 = vadd.f32 %v1561_v43, %v7234_v16  ;;  %v1563_v37 = vpop.f32.mrb[22].mxu1  ;;  %v1701_v13 = vsel %vm812_vm0, %v1677_v40, %v1679_v62  ;;  %v1703_v61 = vsel %vm812_vm0, %v7519_v24, %v1677_v40  ;;  %v2229_v18 = vld [vmem:[#allocation5 + $0xe8] sm:$0xff]  ;;  %v2232_v39 = vld [vmem:[#allocation5 + $0x100] sm:$0xff] }
 0x2b3   : > { %v1626_v41 = vmax.f32 %v1560_v38, 0.0  ;;  %v7603_v48 = vadd.f32 %v1563_v37, %v7230_v52  ;;  %v1565_v2 = vpop.f32.mrb[23].mxu1  ;;  %v5166_v12 = vpack.c.bf16 %v1785_v8, %v1783_v10  ;;  %v1787_v21 = vmax.f32 %v1619_v56, %v1703_v61  ;;  %v2233_v38 = vld [vmem:[#allocation5 + $0x108] sm:$0xff] }
 0x2b4   : > { %v1627_v28 = vmax.f32 %v1562_v49, 0.0  ;;  %v7608_v53 = vadd.f32 %v1565_v2, %v7234_v16  ;;  %v1789_v29 = vmax.f32 %v1621_v32, %v1701_v13  ;;  %v5172_v57 = vpack.c.bf16 %v7583_v35, %v7548_v60  ;;  %v2235_v2 = vld [vmem:[#allocation5 + $0x118] sm:$0xff]  ;;  %v2236_v60 = vld [vmem:[#allocation5 + $0x120] sm:$0xff]  ;;  %v2237_v35 = vld [vmem:[#allocation5 + $0x128] sm:$0xff] }
 0x2b5   : > { %v1682_v24 = vrot.slane %v1626_v41, 1  ;;  %5161 = vmatpush1.bf16.msra.mxu1 %v5160_v31  ;;  %v1628_v46 = vmax.f32 %v7603_v48, 0.0  ;;  %v1699_v40 = vsel %vm812_vm0, %v1679_v62, %v1681_v44  ;;  %v6207_v42 = vmov 0.0|0.0   ;;  %v2234_v48 = vld [vmem:[#allocation5 + $0x110] sm:$0xff] }
 0x2b6   : > { %v1683_v47 = vrot.slane %v1627_v28, 1  ;;  %5163 = vmatprep.subr.bf16.mxu1 %v5162_v19  ;;  %v1629_v54 = vmax.f32 %v7608_v53, 0.0  ;;  %v5170_v56 = vpack.c.bf16 %v1789_v29, %v1787_v21  ;;  %v1791_v55 = vmax.f32 %v1623_v27, %v1699_v40  ;;  %5228 = vmatprep.subr.bf16.mxu0 %v6207_v42 }
 0x2b7   : > { %v1696_v32 = vsel %vm812_vm0, %v1680_v3, %v1682_v24  ;;  %v1684_v26 = vrot.slane %v1628_v46, 1  ;;  %v5229_v59 = vpack.c.bf16 %v2229_v18, %v2228_v23  ;;  %v5232_v10 = vpack.c.bf16 %v2231_v30, %v2230_v36  ;;  %v2243_v36 = vld [vmem:[#allocation5 + $0x158] sm:$0xff]  ;;  %v1804_v30 = vld [vmem:[#allocation2 + $0x10] sm:$0xff] }
 0x2b8   : > { %v7619_v31 = vmax.f32 %v1624_v4, %v1696_v32  ;;  %v1685_v50 = vrot.slane %v1629_v54, 1  ;;  %v1569_v25 = vpop.f32.mrb[24].mxu1  ;;  %v1697_v20 = vsel %vm812_vm0, %v1681_v44, %v1683_v47  ;;  %v5235_v13 = vpack.c.bf16 %v2233_v38, %v2232_v39  ;;  %v2023_v32 = vld [vmem:[#allocation5 + $0x8] sm:$0xff]  ;;  %v2246_v39 = vld [vmem:[#allocation5 + $0x170] sm:$0xff]  ;;  %v2247_v38 = vld [vmem:[#allocation5 + $0x178] sm:$0xff] }
 0x2b9   : > { %v1694_v34 = vsel %vm812_vm0, %v1682_v24, %v1684_v26  ;;  %5165 = vmatpush1.bf16.msra.mxu1 %v5164_v11  ;;  %v1570_v27 = vadd.f32 %v1569_v25, %v7230_v52  ;;  %v1571_v33 = vpop.f32.mrb[25].mxu1  ;;  %v1793_v22 = vmax.f32 %v1625_v6, %v1697_v20  ;;  %5230 = vmatpush1.bf16.msra.mxu0 %v5229_v59  ;;  %v2240_v59 = vld [vmem:[#allocation5 + $0x140] sm:$0xff]  ;;  %v1805_v20 = vld [vmem:[#allocation2 + $0x18] sm:$0xff] }
 0x2ba   : > { %v1794_v62 = vmax.f32 %v1626_v41, %v1694_v34  ;;  %5167 = vmatprep.subr.bf16.mxu1 %v5166_v12  ;;  %v1572_v4 = vadd.f32 %v1571_v33, %v7234_v16  ;;  %v1573_v45 = vpop.f32.mrb[26].mxu1  ;;  %v5176_v63 = vpack.c.bf16 %v7619_v31, %v7594_v58  ;;  %v1695_v3 = vsel %vm812_vm0, %v1683_v47, %v1685_v50  ;;  %v2241_v31 = vld [vmem:[#allocation5 + $0x148] sm:$0xff]  ;;  %v2024_v34 = vld [vmem:[#allocation5 + $0x10] sm:$0xff] }
 0x2bb   : > { %v1630_v0 = vmax.f32 %v1570_v27, 0.0  ;;  %v1574_v11 = vadd.f32 %v1573_v45, %v7230_v52  ;;  %v1575_v51 = vpop.f32.mrb[27].mxu1  ;;  %v5174_v44 = vpack.c.bf16 %v1793_v22, %v1791_v55  ;;  %v1795_v6 = vmax.f32 %v1627_v28, %v1695_v3  ;;  %5231 = vmatprep.subr.bf16.mxu0 %v6207_v42  ;;  %v2022_v55 = vld [vmem:[#allocation5] sm:$0xff]  ;;  %v2025_v27 = vld [vmem:[#allocation5 + $0x18] sm:$0xff]  ;;  %v2242_v22 = vld [vmem:[#allocation5 + $0x150] sm:$0xff] }
 0x2bc   : > { %v1631_v5 = vmax.f32 %v1572_v4, 0.0  ;;  %v1576_v19 = vadd.f32 %v1575_v51, %v7234_v16  ;;  %v5187_v25 = vpack.c.bf16 %v2023_v32, %v2022_v55  ;;  %v5247_v33 = vpack.c.bf16 %v2241_v31, %v2240_v59  ;;  %v1807_v4 = vld [vmem:[#allocation2 + $0x28] sm:$0xff]  ;;  %v2026_v45 = vld [vmem:[#allocation5 + $0x20] sm:$0xff] }
 0x2bd   : > { %v1686_v43 = vrot.slane %v1630_v0, 1  ;;  %5169 = vmatpush1.bf16.msra.mxu1 %v5168_v15  ;;  %v1632_v8 = vmax.f32 %v1574_v11, 0.0  ;;  %5233 = vmatpush1.bf16.msra.mxu0 %v5232_v10  ;;  %v5250_v3 = vpack.c.bf16 %v2243_v36, %v2242_v22  ;;  %v2245_v11 = vld [vmem:[#allocation5 + $0x168] sm:$0xff]  ;;  %v1806_v51 = vld [vmem:[#allocation2 + $0x20] sm:$0xff] }
 0x2be   : > { %v1687_v58 = vrot.slane %v1631_v5, 1  ;;  %5171 = vmatprep.subr.bf16.mxu1 %v5170_v56  ;;  %v1633_v49 = vmax.f32 %v1576_v19, 0.0  ;;  %5234 = vmatprep.subr.bf16.mxu0 %v6207_v42  ;;  %v2239_v56 = vld [vmem:[#allocation5 + $0x138] sm:$0xff]  ;;  %v1819_v32 = vld [vmem:[#allocation2 + $0x88] sm:$0xff]  ;;  %v1818_v31 = vld [vmem:[#allocation2 + $0x80] sm:$0xff] }
 0x2bf   : > { %v1692_v52 = vsel %vm812_vm0, %v1684_v26, %v1686_v43  ;;  %v1688_v37 = vrot.slane %v1632_v8, 1  ;;  %v2029_v19 = vld [vmem:[#allocation5 + $0x38] sm:$0xff]  ;;  %v2039_v59 = vld [vmem:[#allocation5 + $0x88] sm:$0xff]  ;;  %v2042_v36 = vld [vmem:[#allocation5 + $0xa0] sm:$0xff] }
 0x2c0   : > { %v1796_v61 = vmax.f32 %v1628_v46, %v1692_v52  ;;  %v1689_v41 = vrot.slane %v1633_v49, 1  ;;  %v1693_v16 = vsel %vm812_vm0, %v1685_v50, %v1687_v58  ;;  %v1802_v50 = vld [vmem:[#allocation2] sm:$0xff]  ;;  %v2031_v52 = vld [vmem:[#allocation5 + $0x48] sm:$0xff] }
 0x2c1   : > { %v1690_v15 = vsel %vm812_vm0, %v1686_v43, %v1688_v37  ;;  %v1744_v12 = vsel %vm812_vm0, %v1688_v37, %v7240_v14  ;;  %5173 = vmatpush1.bf16.msra.mxu1 %v5172_v57  ;;  %v1797_v21 = vmax.f32 %v1629_v54, %v1693_v16  ;;  %5236 = vmatpush1.bf16.msra.mxu0 %v5235_v13  ;;  %v2238_v54 = vld [vmem:[#allocation5 + $0x130] sm:$0xff]  ;;  %v2248_v13 = vld [vmem:[#allocation5 + $0x180] sm:$0xff]  ;;  %v1823_v22 = vld [vmem:[#allocation2 + $0xa8] sm:$0xff] }
 0x2c2   : > { %v1798_v28 = vmax.f32 %v1630_v0, %v1690_v15  ;;  %v1800_v53 = vmax.f32 %v1632_v8, %v1744_v12  ;;  %v1745_v29 = vsel %vm812_vm0, %v1689_v41, %v7242_v9  ;;  %5175 = vmatprep.subr.bf16.mxu1 %v5174_v44  ;;  %v5180_v23 = vpack.c.bf16 %v1796_v61, %v1794_v62  ;;  %v2244_v0 = vld [vmem:[#allocation5 + $0x160] sm:$0xff]  ;;  %v1808_v43 = vld [vmem:[#allocation2 + $0x30] sm:$0xff]  ;;  %v2249_v61 = vld [vmem:[#allocation5 + $0x188] sm:$0xff] }
 0x2c3   : > { %v1801_v18 = vmax.f32 %v1633_v49, %v1745_v29  ;;  %v5178_v24 = vpack.c.bf16 %v1797_v21, %v1795_v6  ;;  %v1691_v46 = vsel %vm812_vm0, %v1687_v58, %v1689_v41  ;;  %v5238_v14 = vpack.c.bf16 %v2235_v2, %v2234_v48  ;;  %5237 = vmatprep.subr.bf16.mxu0 %v6207_v42  ;;  %v1809_v6 = vld [vmem:[#allocation2 + $0x38] sm:$0xff]  ;;  %v1811_v58 = vld [vmem:[#allocation2 + $0x48] sm:$0xff]  ;;  %v2030_v49 = vld [vmem:[#allocation5 + $0x40] sm:$0xff] }
 0x2c4   : > { %v5184_v40 = vpack.c.bf16 %v1800_v53, %v1798_v28  ;;  %v1799_v47 = vmax.f32 %v1631_v5, %v1691_v46  ;;  %v5241_v9 = vpack.c.bf16 %v2237_v35, %v2236_v60  ;;  %v5244_v26 = vpack.c.bf16 %v2239_v56, %v2238_v54  ;;  %v2028_v5 = vld [vmem:[#allocation5 + $0x30] sm:$0xff]  ;;  %v1810_v41 = vld [vmem:[#allocation2 + $0x40] sm:$0xff]  ;;  %v1813_v48 = vld [vmem:[#allocation2 + $0x58] sm:$0xff] }
 0x2c5   : > { %5177 = vmatpush1.bf16.msra.mxu1 %v5176_v63  ;;  %5239 = vmatpush1.bf16.msra.mxu0 %v5238_v14  ;;  %v5190_v62 = vpack.c.bf16 %v2025_v27, %v2024_v34  ;;  %v2027_v63 = vld [vmem:[#allocation5 + $0x28] sm:$0xff]  ;;  %v5253_v10 = vpack.c.bf16 %v2245_v11, %v2244_v0  ;;  %v5196_v8 = vpack.c.bf16 %v2029_v19, %v2028_v5  ;;  %v2032_v2 = vld [vmem:[#allocation5 + $0x50] sm:$0xff]  ;;  %v2033_v15 = vld [vmem:[#allocation5 + $0x58] sm:$0xff] }
 0x2c6   : > { %5179 = vmatprep.subr.bf16.mxu1 %v5178_v24  ;;  %v5182_v57 = vpack.c.bf16 %v1801_v18, %v1799_v47  ;;  %5240 = vmatprep.subr.bf16.mxu0 %v6207_v42  ;;  %v5193_v44 = vpack.c.bf16 %v2027_v63, %v2026_v45  ;;  %v5256_v37 = vpack.c.bf16 %v2247_v38, %v2246_v39  ;;  %v2250_v21 = vld [vmem:[#allocation5 + $0x190] sm:$0xff]  ;;  %v2251_v28 = vld [vmem:[#allocation5 + $0x198] sm:$0xff]  ;;  %v2034_v18 = vld [vmem:[#allocation5 + $0x60] sm:$0xff] }
 0x2c7   : > { %v5199_v16 = vpack.c.bf16 %v2031_v52, %v2030_v49  ;;  %v5259_v12 = vpack.c.bf16 %v2249_v61, %v2248_v13  ;;  %v1812_v53 = vld [vmem:[#allocation2 + $0x50] sm:$0xff]  ;;  %v5202_v29 = vpack.c.bf16 %v2033_v15, %v2032_v2  ;;  %v2035_v24 = vld [vmem:[#allocation5 + $0x68] sm:$0xff]  ;;  %v5262_v46 = vpack.c.bf16 %v2251_v28, %v2250_v21  ;;  %v2252_v14 = vld [vmem:[#allocation5 + $0x1a0] sm:$0xff] }
 0x2c8   : > { %v1814_v47 = vld [vmem:[#allocation2 + $0x60] sm:$0xff]  ;;  %v5205_v60 = vpack.c.bf16 %v2035_v24, %v2034_v18  ;;  %v1817_v35 = vld [vmem:[#allocation2 + $0x78] sm:$0xff]  ;;  %v1816_v56 = vld [vmem:[#allocation2 + $0x70] sm:$0xff] }
 0x2c9   : > { %5181 = vmatpush1.bf16.msra.mxu1 %v5180_v23  ;;  %5242 = vmatpush1.bf16.msra.mxu0 %v5241_v9  ;;  %v1815_v23 = vld [vmem:[#allocation2 + $0x68] sm:$0xff]  ;;  %v2037_v9 = vld [vmem:[#allocation5 + $0x78] sm:$0xff]  ;;  %v1820_v27 = vld [vmem:[#allocation2 + $0x90] sm:$0xff] }
 0x2ca   : > { %5183 = vmatprep.subr.bf16.mxu1 %v5182_v57  ;;  %5243 = vmatprep.subr.bf16.mxu0 %v6207_v42  ;;  %v2036_v57 = vld [vmem:[#allocation5 + $0x70] sm:$0xff]  ;;  %v2041_v34 = vld [vmem:[#allocation5 + $0x98] sm:$0xff]  ;;  %v1826_v5 = vld [vmem:[#allocation2 + $0xc0] sm:$0xff] }
 0x2cb   : > { %v5208_v55 = vpack.c.bf16 %v2037_v9, %v2036_v57  ;;  %v1825_v45 = vld [vmem:[#allocation2 + $0xb8] sm:$0xff]  ;;  %v2044_v63 = vld [vmem:[#allocation5 + $0xb0] sm:$0xff]  ;;  %v2434_v13 = vld [vmem:[%s8632_s8 + $0x8] sm:$0xff] }
 0x2cc   : > { %v1824_v0 = vld [vmem:[#allocation2 + $0xb0] sm:$0xff]  ;;  %v2255_v49 = vld [vmem:[#allocation5 + $0x1b8] sm:$0xff]  ;;  %2564 = vperm.xlu0 %5853, %v2434_v13   ;;  %v2438_v2 = vld [vmem:[%s8632_s8 + $0x28] sm:$0xff] }
 0x2cd   : > { %5185 = vmatpush1.bf16.msra.mxu1 %v5184_v40  ;;  %5245 = vmatpush1.bf16.msra.mxu0 %v5244_v26  ;;  %v2253_v40 = vld [vmem:[#allocation5 + $0x1a8] sm:$0xff]  ;;  %v2038_v26 = vld [vmem:[#allocation5 + $0x80] sm:$0xff]  ;;  %v1828_v39 = vld [vmem:[#allocation2 + $0xd0] sm:$0xff] }
 0x2ce   : > { %5186 = vmatprep.subr.bf16.mxu1 %v6207_v42  ;;  %5246 = vmatprep.subr.bf16.mxu0 %v6207_v42  ;;  %v5265_v54 = vpack.c.bf16 %v2253_v40, %v2252_v14  ;;  %v2048_v38 = vld [vmem:[#allocation5 + $0xd0] sm:$0xff]  ;;  %v7720_v15 = vld [vmem:[%s8632_s8 + $0x40] sm:$0xff]  ;;  %v7737_v28 = vld [vmem:[%s8632_s8 + $0x48] sm:$0xff] }
 0x2cf   : > { %v2435_v61 = vld [vmem:[%s8632_s8 + $0x10] sm:$0xff] }
 0x2d0   : > { %1938 = vmatmul.mubr.f32.vlgmr.msra.gmra.mrb[28].mxu1 %v1802_v50  ;;  %v5211_v50 = vpack.c.bf16 %v2039_v59, %v2038_v26  ;;  %v7731_v21 = vld [vmem:[%s8632_s8 + $0x50] sm:$0xff] }
 0x2d1   : > { %4601 = vmatprep.mubr.msk.f32.mxu1 %vm1830_vm6, %v1805_v20  ;;  %5188 = vmatpush1.bf16.msra.mxu1 %v5187_v25  ;;  %v1821_v25 = vld [vmem:[#allocation2 + $0x98] sm:$0xff]  ;;  %v2040_v20 = vld [vmem:[#allocation5 + $0x90] sm:$0xff] }
 0x2d2   : > { %5189 = vmatprep.subr.bf16.mxu1 %v6207_v42  ;;  %5248 = vmatpush1.bf16.msra.mxu0 %v5247_v33  ;;  %v5214_v33 = vpack.c.bf16 %v2041_v34, %v2040_v20 }
 0x2d3   : > { %5249 = vmatprep.subr.bf16.mxu0 %v6207_v42 }
 0x2d4   : > { %1944 = vmatmul.mubr.f32.gmra.mrb[30].mxu1 %v1804_v30  ;;  %v2043_v30 = vld [vmem:[#allocation5 + $0xa8] sm:$0xff] }
 0x2d5   : > { %4602 = vmatprep.mubr.msk.f32.mxu1 %vm1830_vm6, %v1807_v4  ;;  %5191 = vmatpush1.bf16.msra.mxu1 %v5190_v62  ;;  %v1822_v62 = vld [vmem:[#allocation2 + $0xa0] sm:$0xff]  ;;  %v5217_v4 = vpack.c.bf16 %v2043_v30, %v2042_v36 }
 0x2d6   : > { %5192 = vmatprep.subr.bf16.mxu1 %v6207_v42  ;;  %5251 = vmatpush1.bf16.msra.mxu0 %v5250_v3  ;;  %v2045_v3 = vld [vmem:[#allocation5 + $0xb8] sm:$0xff] }
 0x2d7   : > { %5252 = vmatprep.subr.bf16.mxu0 %v6207_v42  ;;  %v5220_v11 = vpack.c.bf16 %v2045_v3, %v2044_v63  ;;  %v5946_v63 = vld [vmem:[#allocation7 + $0x4] ss:$8 sps:$4 sm:$0xff]   ;;  %v5949_v3 = vld [vmem:[#allocation7 + $0x14] ss:$8 sps:$4 sm:$0xff]  }
 0x2d8   : > { %1950 = vmatmul.mubr.f32.gmra.mrb[32].mxu1 %v1806_v51  ;;  %v1827_v51 = vld [vmem:[#allocation2 + $0xc8] sm:$0xff] }
 0x2d9   : > { %4603 = vmatprep.mubr.msk.f32.mxu1 %vm1830_vm6, %v1809_v6  ;;  %5194 = vmatpush1.bf16.msra.mxu1 %v5193_v44  ;;  %v2046_v44 = vld [vmem:[#allocation5 + $0xc0] sm:$0xff]  ;;  %v2047_v6 = vld [vmem:[#allocation5 + $0xc8] sm:$0xff] }
 0x2da   : > { %5195 = vmatprep.subr.bf16.mxu1 %v6207_v42  ;;  %5254 = vmatpush1.bf16.msra.mxu0 %v5253_v10  ;;  %v5223_v19 = vpack.c.bf16 %v2047_v6, %v2046_v44  ;;  %v1829_v10 = vld [vmem:[#allocation2 + $0xd8] sm:$0xff] }
 0x2db   : > { %5255 = vmatprep.subr.bf16.mxu0 %v6207_v42  ;;  %v5955_v44 = vld [vmem:[#allocation7 + $0x34] ss:$8 sps:$4 sm:$0xff]   ;;  %v5953_v6 = vld [vmem:[#allocation7 + $0x30] ss:$8 sps:$4 sm:$0xff]  }
 0x2dc   : > { %1956 = vmatmul.mubr.f32.gmra.mrb[34].mxu1 %v1808_v43  ;;  %v2049_v43 = vld [vmem:[#allocation5 + $0xd8] sm:$0xff] }
 0x2dd   : > { %4604 = vmatprep.mubr.msk.f32.mxu1 %vm1830_vm6, %v1811_v58  ;;  %5197 = vmatpush1.bf16.msra.mxu1 %v5196_v8  ;;  %v2254_v8 = vld [vmem:[#allocation5 + $0x1b0] sm:$0xff]  ;;  %v5226_v58 = vpack.c.bf16 %v2049_v43, %v2048_v38  ;;  %v5964_v38 = vld [vmem:[#allocation7 + $0x64] ss:$8 sps:$4 sm:$0xff]   ;;  %v5962_v43 = vld [vmem:[#allocation7 + $0x60] ss:$8 sps:$4 sm:$0xff]  }
 0x2de   : > { %5198 = vmatprep.subr.bf16.mxu1 %v6207_v42  ;;  %5257 = vmatpush1.bf16.msra.mxu0 %v5256_v37  ;;  %v5268_v52 = vpack.c.bf16 %v2255_v49, %v2254_v8  ;;  %v2433_v37 = vld [vmem:[%s8632_s8] sm:$0xff]  ;;  %v5967_v8 = vld [vmem:[#allocation7 + $0x74] ss:$8 sps:$4 sm:$0xff]  }
 0x2df   : > { %5258 = vmatprep.subr.bf16.mxu0 %v6207_v42  ;;  %2560 = vperm.xlu1 %5852, %v2433_v37   ;;  %v5970_v49 = vld [vmem:[#allocation7 + $0x84] ss:$8 sps:$4 sm:$0xff]  }
 0x2e0   : > { %1962 = vmatmul.mubr.f32.gmra.mrb[36].mxu1 %v1810_v41  ;;  %v7702_v41 = vld [vmem:[%s8632_s8 + $0x20] sm:$0xff] }
 0x2e1   : > { %4605 = vmatprep.mubr.msk.f32.mxu1 %vm1830_vm6, %v1813_v48  ;;  %5200 = vmatpush1.bf16.msra.mxu1 %v5199_v16  ;;  %v2436_v16 = vld [vmem:[%s8632_s8 + $0x18] sm:$0xff]  ;;  %v7711_v48 = vld [vmem:[%s8632_s8 + $0x30] sm:$0xff] }
 0x2e2   : > { %5201 = vmatprep.subr.bf16.mxu1 %v6207_v42  ;;  %5260 = vmatpush1.bf16.msra.mxu0 %v5259_v12  ;;  %v7725_v12 = vld [vmem:[%s8632_s8 + $0x38] sm:$0xff] }
 0x2e3   : > { %5261 = vmatprep.subr.bf16.mxu0 %v6207_v42  ;;  %2568 = vperm.xlu1 %5852, %v2435_v61  }
 0x2e4   : > { %1968 = vmatmul.mubr.f32.gmra.mrb[38].mxu1 %v1812_v53  ;;  %2576 = vperm.xlu0 %5853, %v7702_v41   ;;  %v7743_v53 = vld [vmem:[%s8632_s8 + $0x60] sm:$0xff] }
 0x2e5   : > { %4606 = vmatprep.mubr.msk.f32.mxu1 %vm1830_vm6, %v1815_v23  ;;  %5203 = vmatpush1.bf16.msra.mxu1 %v5202_v29  ;;  %v7749_v29 = vld [vmem:[%s8632_s8 + $0x58] sm:$0xff]  ;;  %v7756_v23 = vld [vmem:[%s8632_s8 + $0x68] sm:$0xff] }
 0x2e6   : > { %5204 = vmatprep.subr.bf16.mxu1 %v6207_v42  ;;  %5263 = vmatpush1.bf16.msra.mxu0 %v5262_v46 }
 0x2e7   : > { %5264 = vmatprep.subr.bf16.mxu0 %v6207_v42  ;;  %2572 = vperm.xlu1 %5852, %v2436_v16  }
 0x2e8   : > { %1974 = vmatmul.mubr.f32.gmra.mrb[40].mxu1 %v1814_v47  ;;  %2584 = vperm.xlu0 %5853, %v7711_v48  }
 0x2e9   : > { %4607 = vmatprep.mubr.msk.f32.mxu1 %vm1830_vm6, %v1817_v35  ;;  %5206 = vmatpush1.bf16.msra.mxu1 %v5205_v60 }
 0x2ea   : > { %5207 = vmatprep.subr.bf16.mxu1 %v6207_v42  ;;  %5266 = vmatpush1.bf16.msra.mxu0 %v5265_v54 }
 0x2eb   : > { %5267 = vmatprep.subr.bf16.mxu0 %v6207_v42  ;;  %2580 = vperm.xlu1 %5852, %v2438_v2  }
 0x2ec   : > { %1980 = vmatmul.mubr.f32.gmra.mrb[42].mxu1 %v1816_v56  ;;  %2592 = vperm.xlu0 %5853, %v7720_v15  }
 0x2ed   : > { %4608 = vmatprep.mubr.msk.f32.mxu1 %vm1830_vm6, %v1819_v32  ;;  %5209 = vmatpush1.bf16.msra.mxu1 %v5208_v55 }
 0x2ee   : > { %5210 = vmatprep.subr.bf16.mxu1 %v6207_v42  ;;  %5269 = vmatpush1.bf16.msra.mxu0 %v5268_v52  ;;  %v5968_v52 = vld [vmem:[#allocation7 + $0x80] ss:$8 sps:$4 sm:$0xff]  }
 0x2ef   : > { %2588 = vperm.xlu1 %5852, %v7725_v12  }
 0x2f0   : > { %1986 = vmatmul.mubr.f32.gmra.mrb[44].mxu1 %v1818_v31  ;;  %2600 = vperm.xlu0 %5853, %v7731_v21  }
 0x2f1   : > { %4609 = vmatprep.mubr.msk.f32.mxu1 %vm1830_vm6, %v1821_v25  ;;  %5212 = vmatpush1.bf16.msra.mxu1 %v5211_v50 }
 0x2f2   : > { %5213 = vmatprep.subr.bf16.mxu1 %v6207_v42 }
 0x2f3   : > { %2596 = vperm.xlu1 %5852, %v7737_v28  }
 0x2f4   : > { %1992 = vmatmul.mubr.f32.gmra.mrb[46].mxu1 %v1820_v27  ;;  %2608 = vperm.xlu0 %5853, %v7743_v53  }
 0x2f5   : > { %4610 = vmatprep.mubr.msk.f32.mxu1 %vm1830_vm6, %v1823_v22  ;;  %5215 = vmatpush1.bf16.msra.mxu1 %v5214_v33 }
 0x2f6   : > { %5216 = vmatprep.subr.bf16.mxu1 %v6207_v42 }
 0x2f7   : > { %2604 = vperm.xlu1 %5852, %v7749_v29  }
 0x2f8   : > { %1998 = vmatmul.mubr.f32.gmra.mrb[48].mxu1 %v1822_v62  ;;  %5854 = vset.pattern.permute.xlu0 %v6204_v1 }
 0x2f9   : > { %4611 = vmatprep.mubr.msk.f32.mxu1 %vm1830_vm6, %v1825_v45  ;;  %5218 = vmatpush1.bf16.msra.mxu1 %v5217_v4  ;;  %v5944_v45 = vld [vmem:[#allocation7] ss:$8 sps:$4 sm:$0xff]  }
 0x2fa   : > { %5219 = vmatprep.subr.bf16.mxu1 %v6207_v42  ;;  %2449 = vperm.xlu0 %5854, %v2433_v37   ;;  %v5973_v37 = vld [vmem:[#allocation7 + $0x94] ss:$8 sps:$4 sm:$0xff]  }
 0x2fb   : > { %2612 = vperm.xlu1 %5852, %v7756_v23  }
 0x2fc   : > { %2004 = vmatmul.mubr.f32.gmra.mrb[50].mxu1 %v1824_v0  ;;  %v5947_v0 = vld [vmem:[#allocation7 + $0x10] ss:$8 sps:$4 sm:$0xff]  }
 0x2fd   : > { %4612 = vmatprep.mubr.msk.f32.mxu1 %vm1830_vm6, %v1827_v51  ;;  %5221 = vmatpush1.bf16.msra.mxu1 %v5220_v11  ;;  %v5952_v11 = vld [vmem:[#allocation7 + $0x24] ss:$8 sps:$4 sm:$0xff]   ;;  %v5950_v51 = vld [vmem:[#allocation7 + $0x20] ss:$8 sps:$4 sm:$0xff]  }
 0x2fe   : > { %5222 = vmatprep.subr.bf16.mxu1 %v6207_v42  ;;  %2464 = vperm.xlu0 %5854, %v2436_v16   ;;  %v5974_v16 = vld [vmem:[#allocation7 + $0xa0] ss:$8 sps:$4 sm:$0xff]  }
 0x2ff   : > { %5855 = vset.pattern.permute.xlu1 %v6204_v1 }
 0x300   : > { %2010 = vmatmul.mubr.f32.gmra.mrb[52].mxu1 %v1826_v5  ;;  %2454 = vperm.xlu1 %5855, %v2434_v13   ;;  %v5958_v5 = vld [vmem:[#allocation7 + $0x44] ss:$8 sps:$4 sm:$0xff]   ;;  %v5971_v13 = vld [vmem:[#allocation7 + $0x90] ss:$8 sps:$4 sm:$0xff]  }
 0x301   : > { %4613 = vmatprep.mubr.msk.f32.mxu1 %vm1830_vm6, %v1829_v10  ;;  %5224 = vmatpush1.bf16.msra.mxu1 %v5223_v19  ;;  %v5956_v19 = vld [vmem:[#allocation7 + $0x40] ss:$8 sps:$4 sm:$0xff]   ;;  %v5961_v10 = vld [vmem:[#allocation7 + $0x54] ss:$8 sps:$4 sm:$0xff]  }
 0x302   : > { %5225 = vmatprep.subr.bf16.mxu1 %v6207_v42  ;;  %2474 = vperm.xlu0 %5854, %v2438_v2   ;;  %v5979_v2 = vld [vmem:[#allocation7 + $0xb4] ss:$8 sps:$4 sm:$0xff]  }
 0x304   : > { %2016 = vmatmul.mubr.f32.gmra.mrb[54].mxu1 %v1828_v39  ;;  %2459 = vperm.xlu1 %5855, %v2435_v61   ;;  %v5959_v39 = vld [vmem:[#allocation7 + $0x50] ss:$8 sps:$4 sm:$0xff]   ;;  %v5976_v61 = vld [vmem:[#allocation7 + $0xa4] ss:$8 sps:$4 sm:$0xff]  }
 0x305   : > { %5227 = vmatpush1.bf16.msra.mxu1 %v5226_v58  ;;  %v5965_v58 = vld [vmem:[#allocation7 + $0x70] ss:$8 sps:$4 sm:$0xff]  }
 0x306   : > { %3077 = vmatprep.subr.bf16.mxu1 %v5946_v63 }
 0x3a3   : > { %v1939_v18 = vpop.f32.mrb[28].mxu1 }
 0x3a4   : > { %v1941_v24 = vpop.f32.mrb[29].mxu1 }
 0x3a5   : > { %4614 = vmatprep.mubr.msk.f32.mxu1 %vm1830_vm6, %v1941_v24  ;;  %4628 = vmatprep.mubr.msk.f32.mxu0 %vm1830_vm6, %v1941_v24  ;;  %v5982_v24 = vld [vmem:[#allocation7 + $0xc4] ss:$8 sps:$4 sm:$0xff]  }
 0x3a6   : > { %2157 = vmatmul.mubr.f32.vlgmr.msra.gmra.mrb[56].mxu1 %v1939_v18  ;;  %2321 = vmatmul.mubr.f32.vlgmr.msra.gmra.mrb[28].mxu0 %v1939_v18  ;;  %v5977_v18 = vld [vmem:[#allocation7 + $0xb0] ss:$8 sps:$4 sm:$0xff]  }
 0x3a7   : > { %v1945_v46 = vpop.f32.mrb[30].mxu1  ;;  %3078 = vmatpush1.bf16.msra.mxu1 %v5944_v45 }
 0x3a8   : > { %v1947_v14 = vpop.f32.mrb[31].mxu1  ;;  %3079 = vmatprep.subr.bf16.mxu1 %v5949_v3 }
 0x3a9   : > { %4615 = vmatprep.mubr.msk.f32.mxu1 %vm1830_vm6, %v1947_v14  ;;  %4629 = vmatprep.mubr.msk.f32.mxu0 %vm1830_vm6, %v1947_v14  ;;  %v5983_v14 = vld [vmem:[#allocation7 + $0xd0] ss:$8 sps:$4 sm:$0xff]  }
 0x3aa   : > { %2162 = vmatmul.mubr.f32.gmra.mrb[58].mxu1 %v1945_v46  ;;  %2326 = vmatmul.mubr.f32.gmra.mrb[30].mxu0 %v1945_v46  ;;  %v5980_v46 = vld [vmem:[#allocation7 + $0xc0] ss:$8 sps:$4 sm:$0xff]  }
 0x3ab   : > { %v1951_v40 = vpop.f32.mrb[32].mxu1  ;;  %3080 = vmatpush1.bf16.msra.mxu1 %v5947_v0 }
 0x3ac   : > { %v1953_v47 = vpop.f32.mrb[33].mxu1  ;;  %3081 = vmatprep.subr.bf16.mxu1 %v5952_v11 }
 0x3ad   : > { %4616 = vmatprep.mubr.msk.f32.mxu1 %vm1830_vm6, %v1953_v47  ;;  %4630 = vmatprep.mubr.msk.f32.mxu0 %vm1830_vm6, %v1953_v47 }
 0x3ae   : > { %2167 = vmatmul.mubr.f32.gmra.mrb[60].mxu1 %v1951_v40  ;;  %2331 = vmatmul.mubr.f32.gmra.mrb[32].mxu0 %v1951_v40  ;;  %v5985_v40 = vld [vmem:[#allocation7 + $0xd4] ss:$8 sps:$4 sm:$0xff]  }
 0x3af   : > { %v1957_v60 = vpop.f32.mrb[34].mxu1  ;;  %3082 = vmatpush1.bf16.msra.mxu1 %v5950_v51  ;;  %v2565_v51 = vpop.permute.xlu0 %2564 }
 0x3b0   : > { %v1959_v35 = vpop.f32.mrb[35].mxu1  ;;  %3083 = vmatprep.subr.bf16.mxu1 %v5955_v44 }
 0x3b1   : > { %4617 = vmatprep.mubr.msk.f32.mxu1 %vm1830_vm6, %v1959_v35  ;;  %4631 = vmatprep.mubr.msk.f32.mxu0 %vm1830_vm6, %v1959_v35  ;;  %v5988_v35 = vld [vmem:[#allocation7 + $0xe4] ss:$8 sps:$4 sm:$0xff]  }
 0x3b2   : > { %2172 = vmatmul.mubr.f32.gmra.mrb[62].mxu1 %v1957_v60  ;;  %2336 = vmatmul.mubr.f32.gmra.mrb[34].mxu0 %v1957_v60 }
 0x3b3   : > { %v1963_v57 = vpop.f32.mrb[36].mxu1  ;;  %3084 = vmatpush1.bf16.msra.mxu1 %v5953_v6 }
 0x3b4   : > { %v1965_v9 = vpop.f32.mrb[37].mxu1  ;;  %3085 = vmatprep.subr.bf16.mxu1 %v5958_v5 }
 0x3b5   : > { %4618 = vmatprep.mubr.msk.f32.mxu1 %vm1830_vm6, %v1965_v9  ;;  %4632 = vmatprep.mubr.msk.f32.mxu0 %vm1830_vm6, %v1965_v9 }
 0x3b6   : > { %2177 = vmatmul.mubr.f32.gmra.mrb[64].mxu1 %v1963_v57  ;;  %2341 = vmatmul.mubr.f32.gmra.mrb[36].mxu0 %v1963_v57 }
 0x3b7   : > { %v1969_v54 = vpop.f32.mrb[38].mxu1  ;;  %3086 = vmatpush1.bf16.msra.mxu1 %v5956_v19 }
 0x3b8   : > { %v1971_v56 = vpop.f32.mrb[39].mxu1  ;;  %3087 = vmatprep.subr.bf16.mxu1 %v5961_v10 }
 0x3b9   : > { %4619 = vmatprep.mubr.msk.f32.mxu1 %vm1830_vm6, %v1971_v56  ;;  %4633 = vmatprep.mubr.msk.f32.mxu0 %vm1830_vm6, %v1971_v56  ;;  %v5986_v56 = vld [vmem:[#allocation7 + $0xe0] ss:$8 sps:$4 sm:$0xff]  }
 0x3ba   : > { %2182 = vmatmul.mubr.f32.gmra.mrb[66].mxu1 %v1969_v54  ;;  %2346 = vmatmul.mubr.f32.gmra.mrb[38].mxu0 %v1969_v54 }
 0x3bb   : > { %v1975_v55 = vpop.f32.mrb[40].mxu1  ;;  %3088 = vmatpush1.bf16.msra.mxu1 %v5959_v39 }
 0x3bc   : > { %v1977_v32 = vpop.f32.mrb[41].mxu1  ;;  %3089 = vmatprep.subr.bf16.mxu1 %v5964_v38 }
 0x3bd   : > { %4620 = vmatprep.mubr.msk.f32.mxu1 %vm1830_vm6, %v1977_v32  ;;  %4634 = vmatprep.mubr.msk.f32.mxu0 %vm1830_vm6, %v1977_v32 }
 0x3be   : > { %2187 = vmatmul.mubr.f32.gmra.mrb[68].mxu1 %v1975_v55  ;;  %2351 = vmatmul.mubr.f32.gmra.mrb[40].mxu0 %v1975_v55  ;;  %v2561_v55 = vpop.permute.xlu1 %2560 }
 0x3bf   : > { %v1981_v26 = vpop.f32.mrb[42].mxu1  ;;  %3090 = vmatpush1.bf16.msra.mxu1 %v5962_v43 }
 0x3c0   : > { %v1983_v59 = vpop.f32.mrb[43].mxu1  ;;  %3091 = vmatprep.subr.bf16.mxu1 %v5967_v8 }
 0x3c1   : > { %4621 = vmatprep.mubr.msk.f32.mxu1 %vm1830_vm6, %v1983_v59  ;;  %4635 = vmatprep.mubr.msk.f32.mxu0 %vm1830_vm6, %v1983_v59 }
 0x3c2   : > { %2192 = vmatmul.mubr.f32.gmra.mrb[70].mxu1 %v1981_v26  ;;  %2356 = vmatmul.mubr.f32.gmra.mrb[42].mxu0 %v1981_v26  ;;  %v2569_v11 = vpop.permute.xlu1 %2568 }
 0x3c3   : > { %v1987_v31 = vpop.f32.mrb[44].mxu1  ;;  %3092 = vmatpush1.bf16.msra.mxu1 %v5965_v58 }
 0x3c4   : > { %v1989_v50 = vpop.f32.mrb[45].mxu1  ;;  %3093 = vmatprep.subr.bf16.mxu1 %v5970_v49 }
 0x3c5   : > { %4622 = vmatprep.mubr.msk.f32.mxu1 %vm1830_vm6, %v1989_v50  ;;  %4636 = vmatprep.mubr.msk.f32.mxu0 %vm1830_vm6, %v1989_v50 }
 0x3c6   : > { %2197 = vmatmul.mubr.f32.gmra.mrb[72].mxu1 %v1987_v31  ;;  %2361 = vmatmul.mubr.f32.gmra.mrb[44].mxu0 %v1987_v31 }
 0x3c7   : > { %v1993_v25 = vpop.f32.mrb[46].mxu1  ;;  %3094 = vmatpush1.bf16.msra.mxu1 %v5968_v52 }
 0x3c8   : > { %v1995_v20 = vpop.f32.mrb[47].mxu1  ;;  %3095 = vmatprep.subr.bf16.mxu1 %v5973_v37 }
 0x3c9   : > { %4623 = vmatprep.mubr.msk.f32.mxu1 %vm1830_vm6, %v1995_v20  ;;  %4637 = vmatprep.mubr.msk.f32.mxu0 %vm1830_vm6, %v1995_v20 }
 0x3ca   : > { %2202 = vmatmul.mubr.f32.gmra.mrb[74].mxu1 %v1993_v25  ;;  %2366 = vmatmul.mubr.f32.gmra.mrb[46].mxu0 %v1993_v25 }
 0x3cb   : > { %v1999_v34 = vpop.f32.mrb[48].mxu1  ;;  %3096 = vmatpush1.bf16.msra.mxu1 %v5971_v13 }
 0x3cc   : > { %v2001_v27 = vpop.f32.mrb[49].mxu1  ;;  %3097 = vmatprep.subr.bf16.mxu1 %v5976_v61 }
 0x3cd   : > { %4624 = vmatprep.mubr.msk.f32.mxu1 %vm1830_vm6, %v2001_v27  ;;  %4638 = vmatprep.mubr.msk.f32.mxu0 %vm1830_vm6, %v2001_v27 }
 0x3ce   : > { %2207 = vmatmul.mubr.f32.gmra.mrb[76].mxu1 %v1999_v34  ;;  %2371 = vmatmul.mubr.f32.gmra.mrb[48].mxu0 %v1999_v34 }
 0x3cf   : > { %v2005_v33 = vpop.f32.mrb[50].mxu1  ;;  %3098 = vmatpush1.bf16.msra.mxu1 %v5974_v16 }
 0x3d0   : > { %v2007_v22 = vpop.f32.mrb[51].mxu1  ;;  %3099 = vmatprep.subr.bf16.mxu1 %v5979_v2 }
 0x3d1   : > { %4625 = vmatprep.mubr.msk.f32.mxu1 %vm1830_vm6, %v2007_v22  ;;  %4639 = vmatprep.mubr.msk.f32.mxu0 %vm1830_vm6, %v2007_v22  ;;  %v5989_v22 = vld [vmem:[#allocation7 + $0xf0] ss:$8 sps:$4 sm:$0xff]  }
 0x3d2   : > { %2212 = vmatmul.mubr.f32.gmra.mrb[78].mxu1 %v2005_v33  ;;  %2376 = vmatmul.mubr.f32.gmra.mrb[50].mxu0 %v2005_v33 }
 0x3d3   : > { %v2011_v36 = vpop.f32.mrb[52].mxu1  ;;  %3100 = vmatpush1.bf16.msra.mxu1 %v5977_v18 }
 0x3d4   : > { %v2013_v30 = vpop.f32.mrb[53].mxu1  ;;  %3101 = vmatprep.subr.bf16.mxu1 %v5982_v24 }
 0x3d5   : > { %4626 = vmatprep.mubr.msk.f32.mxu1 %vm1830_vm6, %v2013_v30  ;;  %4640 = vmatprep.mubr.msk.f32.mxu0 %vm1830_vm6, %v2013_v30 }
 0x3d6   : > { %2217 = vmatmul.mubr.f32.gmra.mrb[80].mxu1 %v2011_v36  ;;  %2381 = vmatmul.mubr.f32.gmra.mrb[52].mxu0 %v2011_v36  ;;  %v5991_v36 = vld [vmem:[#allocation7 + $0xf4] ss:$8 sps:$4 sm:$0xff]  }
 0x3d7   : > { %v2017_v62 = vpop.f32.mrb[54].mxu1  ;;  %3102 = vmatpush1.bf16.msra.mxu1 %v5980_v46 }
 0x3d8   : > { %v2019_v4 = vpop.f32.mrb[55].mxu1  ;;  %3103 = vmatprep.subr.bf16.mxu1 %v5985_v40  ;;  %v2573_v40 = vpop.permute.xlu1 %2572 }
 0x3d9   : > { %4627 = vmatprep.mubr.msk.f32.mxu1 %vm1830_vm6, %v2019_v4  ;;  %4641 = vmatprep.mubr.msk.f32.mxu0 %vm1830_vm6, %v2019_v4 }
 0x3da   : > { %2222 = vmatmul.mubr.f32.gmra.mrb[82].mxu1 %v2017_v62  ;;  %2386 = vmatmul.mubr.f32.gmra.mrb[54].mxu0 %v2017_v62 }
 0x3db   : > { %3104 = vmatpush1.bf16.msra.mxu1 %v5983_v14 }
 0x3dc   : > { %3105 = vmatprep.subr.bf16.mxu1 %v5988_v35 }
 0x3df   : > { %3106 = vmatpush1.bf16.msra.mxu1 %v5986_v56 }
 0x3e0   : > { %3107 = vmatprep.subr.bf16.mxu1 %v5991_v36 }
 0x3e3   : > { %3108 = vmatpush1.bf16.msra.mxu1 %v5989_v22 }
 0x479   : > { %v2158_v47 = vpop.f32.mrb[56].mxu1  ;;  %v2322_v60 = vpop.f32.mrb[28].mxu0 }
 0x47a   : > { %v7789_v57 = vmax.f32 %v2158_v47, %v2322_v60  ;;  %v2160_v9 = vpop.f32.mrb[57].mxu1  ;;  %v2324_v54 = vpop.f32.mrb[29].mxu0 }
 0x47c   : > { %v2405_v25 = vrot.slane %v7789_v57, 7  ;;  %v2531_v20 = vrot.slane %v7789_v57, 1 }
 0x47d   : > { %v2163_v32 = vpop.f32.mrb[58].mxu1  ;;  %v2327_v26 = vpop.f32.mrb[30].mxu0 }
 0x47e   : > { %v2392_v59 = vmax.f32 %v2163_v32, %v2327_v26  ;;  %v2165_v31 = vpop.f32.mrb[59].mxu1  ;;  %v2329_v50 = vpop.f32.mrb[31].mxu0 }
 0x480   : > { %v5856_v34 = vpack.i.bf16 %v2392_v59, %v7789_v57  ;;  %v2406_v27 = vrot.slane %v2392_v59, 7  ;;  %v2532_v33 = vrot.slane %v2392_v59, 1 }
 0x481   : > { %v2168_v30 = vpop.f32.mrb[60].mxu1  ;;  %v2332_v62 = vpop.f32.mrb[32].mxu0 }
 0x482   : > { %v2557_v4 = vsel %vm812_vm0, %v2531_v20, %v2532_v33  ;;  %v2393_v45 = vmax.f32 %v2168_v30, %v2332_v62  ;;  %v7802_v63 = vsel %vm559_vm1, %v2405_v25, %v2406_v27  ;;  %v2334_v3 = vpop.f32.mrb[33].mxu0  ;;  %5857 = vrot.lane.b32.xlu1 %v5856_v34, %s6208_s23  ;;  %v2170_v0 = vpop.f32.mrb[61].mxu1 }
 0x483   : > { %v2615_v58 = vmul.f32 %v2561_v55, %v2557_v4  ;;  %v2577_v3 = vpop.permute.xlu0 %2576 }
 0x484   : > { %v2407_v44 = vrot.slane %v2393_v45, 7  ;;  %v2533_v6 = vrot.slane %v2393_v45, 1 }
 0x485   : > { %v2173_v5 = vpop.f32.mrb[62].mxu1  ;;  %v2337_v19 = vpop.f32.mrb[34].mxu0 }
 0x486   : > { %v2556_v10 = vsel %vm812_vm0, %v2532_v33, %v2533_v6  ;;  %v2394_v39 = vmax.f32 %v2173_v5, %v2337_v19  ;;  %v7809_v38 = vsel %vm559_vm1, %v2406_v27, %v2407_v44  ;;  %v2339_v43 = vpop.f32.mrb[35].mxu0  ;;  %2469 = vperm.xlu1 %5855, %v7702_v41   ;;  %v2175_v8 = vpop.f32.mrb[63].mxu1 }
 0x487   : > { %v2616_v49 = vmul.f32 %v2565_v51, %v2556_v10 }
 0x488   : > { %v5861_v52 = vpack.i.bf16 %v2394_v39, %v2393_v45  ;;  %v2408_v37 = vrot.slane %v2394_v39, 7  ;;  %v2534_v13 = vrot.slane %v2394_v39, 1  ;;  %v2581_v45 = vpop.permute.xlu1 %2580 }
 0x489   : > { %v2178_v61 = vpop.f32.mrb[64].mxu1  ;;  %v2342_v16 = vpop.f32.mrb[36].mxu0  ;;  %v5866_v2 = vpack.i.bf16 %v2616_v49, %v2615_v58 }
 0x48a   : > { %v2555_v18 = vsel %vm812_vm0, %v2533_v6, %v2534_v13  ;;  %v2395_v24 = vmax.f32 %v2178_v61, %v2342_v16  ;;  %v7816_v46 = vsel %vm559_vm1, %v2407_v44, %v2408_v37  ;;  %v2344_v14 = vpop.f32.mrb[37].mxu0  ;;  %5862 = vrot.lane.b32.xlu1 %v5861_v52, %s6208_s23  ;;  %v2180_v41 = vpop.f32.mrb[65].mxu1 }
 0x48b   : > { %5867 = vrot.lane.b32.xlu0 %v5866_v2, %s6209_s21  ;;  %v2617_v59 = vmul.f32 %v2569_v11, %v2555_v18  ;;  %v2585_v41 = vpop.permute.xlu0 %2584 }
 0x48c   : > { %v2409_v47 = vrot.slane %v2395_v24, 7  ;;  %v2535_v60 = vrot.slane %v2395_v24, 1  ;;  %v2589_v14 = vpop.permute.xlu1 %2588 }
 0x48d   : > { %v2183_v35 = vpop.f32.mrb[66].mxu1  ;;  %v2347_v9 = vpop.f32.mrb[38].mxu0 }
 0x48e   : > { %v2554_v54 = vsel %vm812_vm0, %v2534_v13, %v2535_v60  ;;  %v2396_v56 = vmax.f32 %v2183_v35, %v2347_v9  ;;  %v2349_v55 = vpop.f32.mrb[39].mxu0  ;;  %2479 = vperm.xlu1 %5855, %v7711_v48   ;;  %v2185_v32 = vpop.f32.mrb[67].mxu1  ;;  %v7825_v26 = vsel %vm559_vm1, %v2408_v37, %v2409_v47  ;;  %v5994_v37 = vld [vmem:[#allocation7 + $0x104] ss:$8 sps:$4 sm:$0xff]  }
 0x48f   : > { %2484 = vperm.xlu0 %5854, %v7725_v12   ;;  %v2618_v31 = vmul.f32 %v2573_v40, %v2554_v54  ;;  %3180 = vmatprep.subr.bf16.mxu1 %v5994_v37 }
 0x490   : > { %v5871_v50 = vpack.i.bf16 %v2396_v56, %v2395_v24  ;;  %v2410_v34 = vrot.slane %v2396_v56, 7  ;;  %v2536_v27 = vrot.slane %v2396_v56, 1 }
 0x491   : > { %v2188_v33 = vpop.f32.mrb[68].mxu1  ;;  %v2352_v22 = vpop.f32.mrb[40].mxu0  ;;  %v5876_v36 = vpack.i.bf16 %v2618_v31, %v2617_v59 }
 0x492   : > { %v2553_v30 = vsel %vm812_vm0, %v2535_v60, %v2536_v27  ;;  %v2397_v62 = vmax.f32 %v2188_v33, %v2352_v22  ;;  %v7832_v48 = vsel %vm559_vm1, %v2409_v47, %v2410_v34  ;;  %v2354_v4 = vpop.f32.mrb[41].mxu0  ;;  %5872 = vrot.lane.b32.xlu1 %v5871_v50, %s6208_s23  ;;  %v2190_v12 = vpop.f32.mrb[69].mxu1 }
 0x493   : > { %5877 = vrot.lane.b32.xlu0 %v5876_v36, %s6209_s21  ;;  %v2619_v43 = vmul.f32 %v2577_v3, %v2553_v30 }
 0x494   : > { %v2411_v0 = vrot.slane %v2397_v62, 7  ;;  %v2537_v11 = vrot.slane %v2397_v62, 1 }
 0x495   : > { %v2193_v51 = vpop.f32.mrb[70].mxu1  ;;  %v2357_v44 = vpop.f32.mrb[42].mxu0 }
 0x496   : > { %v2552_v6 = vsel %vm812_vm0, %v2536_v27, %v2537_v11  ;;  %v2398_v5 = vmax.f32 %v2193_v51, %v2357_v44  ;;  %v2359_v19 = vpop.f32.mrb[43].mxu0  ;;  %2489 = vperm.xlu1 %5855, %v7720_v15   ;;  %v2195_v10 = vpop.f32.mrb[71].mxu1  ;;  %v7841_v39 = vsel %vm559_vm1, %v2410_v34, %v2411_v0 }
 0x497   : > { %2494 = vperm.xlu0 %5854, %v7737_v28   ;;  %v2620_v8 = vmul.f32 %v2581_v45, %v2552_v6  ;;  %v2593_v45 = vpop.permute.xlu0 %2592 }
 0x498   : > { %v5881_v58 = vpack.i.bf16 %v2398_v5, %v2397_v62  ;;  %v2412_v49 = vrot.slane %v2398_v5, 7  ;;  %v2538_v52 = vrot.slane %v2398_v5, 1 }
 0x499   : > { %v2198_v13 = vpop.f32.mrb[72].mxu1  ;;  %v2362_v61 = vpop.f32.mrb[44].mxu0  ;;  %v5886_v16 = vpack.i.bf16 %v2620_v8, %v2619_v43 }
 0x49a   : > { %v2551_v2 = vsel %vm812_vm0, %v2537_v11, %v2538_v52  ;;  %v2399_v15 = vmax.f32 %v2198_v13, %v2362_v61  ;;  %v2364_v18 = vpop.f32.mrb[45].mxu0  ;;  %5882 = vrot.lane.b32.xlu1 %v5881_v58, %s6208_s23  ;;  %v2200_v24 = vpop.f32.mrb[73].mxu1  ;;  %v7849_v28 = vsel %vm559_vm1, %v2411_v0, %v2412_v49 }
 0x49b   : > { %5887 = vrot.lane.b32.xlu0 %v5886_v16, %s6209_s21  ;;  %v2621_v59 = vmul.f32 %v2585_v41, %v2551_v2 }
 0x49c   : > { %v2413_v40 = vrot.slane %v2399_v15, 7  ;;  %v2539_v47 = vrot.slane %v2399_v15, 1 }
 0x49d   : > { %v2203_v60 = vpop.f32.mrb[74].mxu1  ;;  %v2367_v35 = vpop.f32.mrb[46].mxu0 }
 0x49e   : > { %v2550_v9 = vsel %vm812_vm0, %v2538_v52, %v2539_v47  ;;  %v2400_v54 = vmax.f32 %v2203_v60, %v2367_v35  ;;  %v2369_v56 = vpop.f32.mrb[47].mxu0  ;;  %2499 = vperm.xlu1 %5855, %v7731_v21   ;;  %v2205_v55 = vpop.f32.mrb[75].mxu1  ;;  %v7857_v32 = vsel %vm559_vm1, %v2412_v49, %v2413_v40 }
 0x49f   : > { %2504 = vperm.xlu0 %5854, %v7749_v29   ;;  %v2622_v31 = vmul.f32 %v2589_v14, %v2550_v9  ;;  %v2597_v29 = vpop.permute.xlu1 %2596  ;;  %v2601_v14 = vpop.permute.xlu0 %2600 }
 0x4a0   : > { %v5891_v50 = vpack.i.bf16 %v2400_v54, %v2399_v15  ;;  %v2414_v34 = vrot.slane %v2400_v54, 7  ;;  %v2540_v27 = vrot.slane %v2400_v54, 1 }
 0x4a1   : > { %v2208_v33 = vpop.f32.mrb[76].mxu1  ;;  %v2372_v22 = vpop.f32.mrb[48].mxu0  ;;  %v5896_v36 = vpack.i.bf16 %v2622_v31, %v2621_v59 }
 0x4a2   : > { %v2549_v30 = vsel %vm812_vm0, %v2539_v47, %v2540_v27  ;;  %v2401_v62 = vmax.f32 %v2208_v33, %v2372_v22  ;;  %v2374_v21 = vpop.f32.mrb[49].mxu0  ;;  %5892 = vrot.lane.b32.xlu1 %v5891_v50, %s6208_s23  ;;  %v2210_v4 = vpop.f32.mrb[77].mxu1  ;;  %v7865_v12 = vsel %vm559_vm1, %v2413_v40, %v2414_v34 }
 0x4a3   : > { %5897 = vrot.lane.b32.xlu0 %v5896_v36, %s6209_s21  ;;  %v2623_v43 = vmul.f32 %v2593_v45, %v2549_v30  ;;  %v2605_v24 = vpop.permute.xlu1 %2604  ;;  %v2609_v36 = vpop.permute.xlu0 %2608  ;;  %v8680_v45 = vmov 1  }
 0x4a4   : > { %v2415_v3 = vrot.slane %v2401_v62, 7  ;;  %v2541_v0 = vrot.slane %v2401_v62, 1 }
 0x4a5   : > { %v2213_v11 = vpop.f32.mrb[78].mxu1  ;;  %v2377_v51 = vpop.f32.mrb[50].mxu0 }
 0x4a6   : > { %v2548_v44 = vsel %vm812_vm0, %v2540_v27, %v2541_v0  ;;  %v2402_v6 = vmax.f32 %v2213_v11, %v2377_v51  ;;  %2509 = vperm.xlu1 %5855, %v7743_v53   ;;  %v2215_v5 = vpop.f32.mrb[79].mxu1  ;;  %v2379_v19 = vpop.f32.mrb[51].mxu0  ;;  %v7873_v10 = vsel %vm559_vm1, %v2414_v34, %v2415_v3 }
 0x4a7   : > { %v2624_v8 = vmul.f32 %v2597_v29, %v2548_v44  ;;  %v2613_v22 = vpop.permute.xlu1 %2612  ;;  %v2450_v57 = vpop.permute.xlu0 %2449 }
 0x4a8   : > { %v5906_v58 = vpack.i.bf16 %v2402_v6, %v2401_v62  ;;  %v2416_v49 = vrot.slane %v2402_v6, 7  ;;  %v2542_v52 = vrot.slane %v2402_v6, 1 }
 0x4a9   : > { %v2218_v37 = vpop.f32.mrb[80].mxu1  ;;  %v2382_v13 = vpop.f32.mrb[52].mxu0  ;;  %v5901_v61 = vpack.i.bf16 %v2624_v8, %v2623_v43 }
 0x4aa   : > { %v2547_v16 = vsel %vm812_vm0, %v2541_v0, %v2542_v52  ;;  %v2403_v2 = vmax.f32 %v2218_v37, %v2382_v13  ;;  %5907 = vrot.lane.b32.xlu1 %v5906_v58, %s6208_s23  ;;  %v2220_v53 = vpop.f32.mrb[81].mxu1  ;;  %v2384_v15 = vpop.f32.mrb[53].mxu0  ;;  %v7880_v18 = vsel %vm559_vm1, %v2415_v3, %v2416_v49 }
 0x4ab   : > { %5902 = vrot.lane.b32.xlu0 %v5901_v61, %s6209_s21  ;;  %v2625_v59 = vmul.f32 %v2601_v14, %v2547_v16  ;;  %v2455_v3 = vpop.permute.xlu1 %2454  ;;  %v2465_v51 = vpop.permute.xlu0 %2464  ;;  %v5997_v53 = vld [vmem:[#allocation7 + $0x114] ss:$8 sps:$4 sm:$0xff]   ;;  %v6000_v14 = vld [vmem:[#allocation7 + $0x124] ss:$8 sps:$4 sm:$0xff]  }
 0x4ac   : > { %v2417_v41 = vrot.slane %v2403_v2, 7  ;;  %v2543_v40 = vrot.slane %v2403_v2, 1  ;;  %v2518_v11 = vmul.f32 %v2455_v3, %v7802_v63 }
 0x4ad   : > { %v2223_v47 = vpop.f32.mrb[82].mxu1  ;;  %v2387_v60 = vpop.f32.mrb[54].mxu0 }
 0x4ae   : > { %v2546_v35 = vsel %vm812_vm0, %v2542_v52, %v2543_v40  ;;  %v2404_v9 = vmax.f32 %v2223_v47, %v2387_v60  ;;  %v2225_v54 = vpop.f32.mrb[83].mxu1  ;;  %v2389_v56 = vpop.f32.mrb[55].mxu0  ;;  %v7887_v55 = vsel %vm559_vm1, %v2416_v49, %v2417_v41  ;;  %v2520_v60 = vmul.f32 %v2465_v51, %v7816_v46 }
 0x4af   : > { %2514 = vperm.xlu0 %5854, %v7756_v23   ;;  %v2626_v31 = vmul.f32 %v2605_v24, %v2546_v35  ;;  %v2460_v0 = vpop.permute.xlu1 %2459  ;;  %v2475_v58 = vpop.permute.xlu0 %2474  ;;  %v5995_v24 = vld [vmem:[#allocation7 + $0x110] ss:$8 sps:$4 sm:$0xff]   ;;  %v6003_v54 = vld [vmem:[#allocation7 + $0x134] ss:$8 sps:$4 sm:$0xff]  }
 0x4b0   : > { %v5916_v50 = vpack.i.bf16 %v2404_v9, %v2403_v2  ;;  %v2418_v34 = vrot.slane %v2404_v9, 7  ;;  %v2544_v27 = vrot.slane %v2404_v9, 1  ;;  %v5992_v2 = vld [vmem:[#allocation7 + $0x100] ss:$8 sps:$4 sm:$0xff]   ;;  %v2519_v47 = vmul.f32 %v2460_v0, %v7809_v38 }
 0x4b1   : > { %v5911_v33 = vpack.i.bf16 %v2626_v31, %v2625_v59  ;;  %v6004_v38 = vld [vmem:[#allocation7 + $0x140] ss:$8 sps:$4 sm:$0xff]   ;;  %v2522_v46 = vmul.f32 %v2475_v58, %v7832_v48 }
 0x4b2   : > { %v2432_v30 = vsel %vm559_vm1, %v2418_v34, %v2405_v25  ;;  %v2545_v62 = vsel %vm812_vm0, %v2543_v40, %v2544_v27  ;;  %v2558_v23 = vsel %vm812_vm0, %v2544_v27, %v2531_v20  ;;  %5917 = vrot.lane.b32.xlu1 %v5916_v50, %s6208_s23  ;;  %v7903_v21 = vsel %vm559_vm1, %v2417_v41, %v2418_v34  ;;  %v5998_v40 = vld [vmem:[#allocation7 + $0x120] ss:$8 sps:$4 sm:$0xff]   ;;  %v6001_v34 = vld [vmem:[#allocation7 + $0x130] ss:$8 sps:$4 sm:$0xff]   ;;  %s4459_s23 = sshll.u32 %s493_s20, 4  ;;  %s8584_s23 = int_to_ptr.vmem [resolvable:$true] %s4459_s23 }
 0x4b3   : > { %5912 = vrot.lane.b32.xlu0 %v5911_v33, %s6209_s21  ;;  %v2627_v4 = vmul.f32 %v2609_v36, %v2545_v62  ;;  %v2628_v29 = vmul.f32 %v2613_v22, %v2558_v23  ;;  %v2517_v44 = vmul.f32 %v2450_v57, %v2432_v30  ;;  %v6006_v33 = vld [vmem:[#allocation7 + $0x144] ss:$8 sps:$4 sm:$0xff]   ;;  %s6119_s27 = scalar_lea.vmem %s8584_s23, 128  ;;  %p6126_p8 = scmp.lt.s32.totalorder %s8584_s23, %s6124_s25 }
 0x4b4   : > { %5926 = vset.pattern.permute.xlu0 %v8680_v45  ;;  %p6120_p2 = scmp.ne.s32.totalorder %s8584_s23, %s6119_s27  ;;  %p6127_p11 = scmp.lt.s32.totalorder %s6125_s17, %s6119_s27 }
 0x4b5   : > { %v5921_v25 = vpack.i.bf16 %v2628_v29, %v2627_v4 }
 0x4b6   : > { %p6121_p4 = pnand %p6120_p2, %p8684_p3  ;;  %p6128_p5 = por %p6127_p11, %p6126_p8 }
 0x4b7   : > { %5922 = vrot.lane.b32.xlu0 %v5921_v25, %s6209_s21 }
 0x4b8   : > { %p6122_p7 = pneg %p6121_p4 }
 0x4ba   : > { %p6129_p0 = pnand %p6128_p5, %p6122_p7 }
 0x4f4   : > { %v5858_v20 = vpop.permute.xlu1 %5857 }
 0x4f5   : > { %v5860_v6 = vunpack.i.h.bf16 %v5858_v20  ;;  %v5859_v5 = vunpack.i.l.bf16 %v5858_v20 }
 0x4f7   : > { %v2742_v19 = vsel %vm2741_vm7, %v2517_v44, %v5859_v5  ;;  %v2743_v43 = vsel %vm2741_vm7, %v2518_v11, %v5860_v6 }
 0x4f8   : > { %v2770_v8 = vpack.c.bf16 %v2743_v43, %v2742_v19 }
 0x4fd   : > { %v5868_v49 = vpop.permute.xlu0 %5867 }
 0x4fe   : > { %v5870_v52 = vunpack.i.h.bf16 %v5868_v49  ;;  %v5869_v37 = vunpack.i.l.bf16 %v5868_v49 }
 0x500   : > { %v7911_v13 = vpack.c.bf16 %v5870_v52, %v5869_v37  ;;  %v2756_v61 = vsel %vm1830_vm6, %v5859_v5, %v5869_v37  ;;  %v2757_v16 = vsel %vm1830_vm6, %v5860_v6, %v5870_v52 }
 0x501   : > { %v2771_v63 = vpack.c.bf16 %v2757_v16, %v2756_v61 }
 0x503   : > { %3109 = vmatprep.mubr.bf16.mxu1 %v2771_v63 }
 0x504   : > { %3110 = vmatmul.mubr.bf16.vlgmr.msra.gmra.mrb[84].mxu1 %v2770_v8 }
 0x505   : > { %v2470_v15 = vpop.permute.xlu1 %2469  ;;  %3181 = vmatpush1.bf16.msra.mxu1 %v5992_v2 }
 0x506   : > { %3182 = vmatprep.subr.bf16.mxu1 %v5997_v53  ;;  %v2521_v36 = vmul.f32 %v2470_v15, %v7825_v26 }
 0x509   : > { %v5863_v41 = vpop.permute.xlu1 %5862  ;;  %3183 = vmatpush1.bf16.msra.mxu1 %v5995_v24 }
 0x50a   : > { %v5865_v35 = vunpack.i.h.bf16 %v5863_v41  ;;  %v5864_v9 = vunpack.i.l.bf16 %v5863_v41  ;;  %3184 = vmatprep.subr.bf16.mxu1 %v6000_v14 }
 0x50c   : > { %v2744_v56 = vsel %vm2741_vm7, %v2519_v47, %v5864_v9  ;;  %v2745_v59 = vsel %vm2741_vm7, %v2520_v60, %v5865_v35 }
 0x50d   : > { %v2480_v31 = vpop.permute.xlu1 %2479  ;;  %v2773_v50 = vpack.c.bf16 %v2745_v59, %v2744_v56  ;;  %3185 = vmatpush1.bf16.msra.mxu1 %v5998_v40 }
 0x50e   : > { %v2485_v27 = vpop.permute.xlu0 %2484  ;;  %3186 = vmatprep.subr.bf16.mxu1 %v6003_v54  ;;  %v2523_v51 = vmul.f32 %v2480_v31, %v7841_v39 }
 0x50f   : > { %v2524_v44 = vmul.f32 %v2485_v27, %v7849_v28 }
 0x511   : > { %v5873_v22 = vpop.permute.xlu1 %5872  ;;  %3187 = vmatpush1.bf16.msra.mxu1 %v6001_v34 }
 0x512   : > { %v5875_v30 = vunpack.i.h.bf16 %v5873_v22  ;;  %v5874_v62 = vunpack.i.l.bf16 %v5873_v22  ;;  %v7921_v23 = vpop.permute.xlu0 %5877  ;;  %3188 = vmatprep.subr.bf16.mxu1 %v6006_v33 }
 0x513   : > { %v5880_v4 = vunpack.i.h.bf16 %v7921_v23  ;;  %v5879_v29 = vunpack.i.l.bf16 %v7921_v23 }
 0x514   : > { %v2746_v45 = vsel %vm2741_vm7, %v2521_v36, %v5874_v62  ;;  %v2747_v25 = vsel %vm2741_vm7, %v2522_v46, %v5875_v30 }
 0x515   : > { %v2490_v3 = vpop.permute.xlu1 %2489  ;;  %v2758_v48 = vsel %vm1830_vm6, %v5864_v9, %v5879_v29  ;;  %v2759_v26 = vsel %vm1830_vm6, %v5865_v35, %v5880_v4  ;;  %v2776_v57 = vpack.c.bf16 %v2747_v25, %v2746_v45  ;;  %3189 = vmatpush1.bf16.msra.mxu1 %v6004_v38 }
 0x516   : > { %v2495_v0 = vpop.permute.xlu0 %2494  ;;  %v2774_v20 = vpack.c.bf16 %v2759_v26, %v2758_v48  ;;  %5340 = vmatprep.subr.bf16.mxu1 %v6207_v42  ;;  %v2525_v2 = vmul.f32 %v2490_v3, %v7857_v32 }
 0x517   : > { %v2526_v53 = vmul.f32 %v2495_v0, %v7865_v12 }
 0x518   : > { %3119 = vmatprep.mubr.bf16.mxu1 %v2774_v20 }
 0x519   : > { %v5883_v11 = vpop.permute.xlu1 %5882  ;;  %3120 = vmatmul.mubr.bf16.gmra.mrb[88].mxu1 %v2773_v50 }
 0x51a   : > { %v5885_v6 = vunpack.i.h.bf16 %v5883_v11  ;;  %v5884_v5 = vunpack.i.l.bf16 %v5883_v11  ;;  %v7936_v19 = vpop.permute.xlu0 %5887 }
 0x51b   : > { %v5890_v43 = vunpack.i.h.bf16 %v7936_v19  ;;  %v5889_v8 = vunpack.i.l.bf16 %v7936_v19  ;;  %v6210_v19 = vmov 0.0  }
 0x51c   : > { %v2748_v58 = vsel %vm2741_vm7, %v2523_v51, %v5884_v5  ;;  %v2749_v49 = vsel %vm2741_vm7, %v2524_v44, %v5885_v6  ;;  %3487 = vmatprep.mubr.f32.mxu0 %v6210_v19 }
 0x51d   : > { %v2500_v52 = vpop.permute.xlu1 %2499  ;;  %v2760_v37 = vsel %vm1830_vm6, %v5874_v62, %v5889_v8  ;;  %v2761_v39 = vsel %vm1830_vm6, %v5875_v30, %v5890_v43  ;;  %v2779_v28 = vpack.c.bf16 %v2749_v49, %v2748_v58 }
 0x51e   : > { %v2505_v61 = vpop.permute.xlu0 %2504  ;;  %v2777_v16 = vpack.c.bf16 %v2761_v39, %v2760_v37  ;;  %v2527_v50 = vmul.f32 %v2500_v52, %v7873_v10 }
 0x51f   : > { %v2528_v22 = vmul.f32 %v2505_v61, %v7880_v18  ;;  %v2778_v61 = vpack.c.bf16 %v5890_v43, %v5889_v8  ;;  %v3680_v43 = vld [vmem:[#allocation8 + $0xe0] sm:$0xff]  ;;  %v3681_v8 = vld [vmem:[#allocation8 + $0xe8] sm:$0xff] }
 0x520   : > { %3129 = vmatprep.mubr.bf16.mxu1 %v2777_v16  ;;  %v5341_v16 = vpack.c.bf16 %v3681_v8, %v3680_v43 }
 0x521   : > { %v5893_v63 = vpop.permute.xlu1 %5892  ;;  %3130 = vmatmul.mubr.bf16.gmra.mrb[92].mxu1 %v2776_v57 }
 0x522   : > { %v5895_v15 = vunpack.i.h.bf16 %v5893_v63  ;;  %v5894_v24 = vunpack.i.l.bf16 %v5893_v63  ;;  %v7950_v14 = vpop.permute.xlu0 %5897  ;;  %v3682_v63 = vld [vmem:[#allocation8 + $0xf0] sm:$0xff] }
 0x523   : > { %v5900_v41 = vunpack.i.h.bf16 %v7950_v14  ;;  %v5899_v40 = vunpack.i.l.bf16 %v7950_v14 }
 0x524   : > { %v2750_v47 = vsel %vm2741_vm7, %v2525_v2, %v5894_v24  ;;  %v2751_v60 = vsel %vm2741_vm7, %v2526_v53, %v5895_v15  ;;  %v3683_v2 = vld [vmem:[#allocation8 + $0xf8] sm:$0xff] }
 0x525   : > { %v2510_v35 = vpop.permute.xlu1 %2509  ;;  %v2762_v9 = vsel %vm1830_vm6, %v5884_v5, %v5899_v40  ;;  %v2763_v54 = vsel %vm1830_vm6, %v5885_v6, %v5900_v41  ;;  %v2782_v32 = vpack.c.bf16 %v2751_v60, %v2750_v47  ;;  %v5344_v53 = vpack.c.bf16 %v3683_v2, %v3682_v63  ;;  %v3688_v47 = vld [vmem:[#allocation8 + $0x120] sm:$0xff]  ;;  %v3689_v60 = vld [vmem:[#allocation8 + $0x128] sm:$0xff] }
 0x526   : > { %v5903_v56 = vpop.permute.xlu0 %5902  ;;  %v2780_v12 = vpack.c.bf16 %v2763_v54, %v2762_v9  ;;  %v2529_v10 = vmul.f32 %v2510_v35, %v7887_v55  ;;  %v5353_v35 = vpack.c.bf16 %v3689_v60, %v3688_v47  ;;  %v3690_v9 = vld [vmem:[#allocation8 + $0x130] sm:$0xff]  ;;  %v3691_v54 = vld [vmem:[#allocation8 + $0x138] sm:$0xff]  ;;  %v3704_v63 = vld [vmem:[#allocation8 + $0x1a0] sm:$0xff] }
 0x527   : > { %v5905_v59 = vunpack.i.h.bf16 %v5903_v56  ;;  %v5904_v31 = vunpack.i.l.bf16 %v5903_v56  ;;  %v3692_v56 = vld [vmem:[#allocation8 + $0x140] sm:$0xff]  ;;  %v3705_v2 = vld [vmem:[#allocation8 + $0x1a8] sm:$0xff] }
 0x528   : > { %3139 = vmatprep.mubr.bf16.mxu1 %v2780_v12  ;;  %v3693_v12 = vld [vmem:[#allocation8 + $0x148] sm:$0xff]  ;;  %v5377_v60 = vpack.c.bf16 %v3705_v2, %v3704_v63 }
 0x529   : > { %v5908_v34 = vpop.permute.xlu1 %5907  ;;  %3140 = vmatmul.mubr.bf16.gmra.mrb[96].mxu1 %v2779_v28  ;;  %v2764_v27 = vsel %vm1830_vm6, %v5894_v24, %v5904_v31  ;;  %v2765_v33 = vsel %vm1830_vm6, %v5895_v15, %v5905_v59  ;;  %v2775_v28 = vpack.c.bf16 %v5880_v4, %v5879_v29  ;;  %v2784_v23 = vpack.c.bf16 %v5905_v59, %v5904_v31  ;;  %v3684_v15 = vld [vmem:[#allocation8 + $0x100] sm:$0xff]  ;;  %v3685_v24 = vld [vmem:[#allocation8 + $0x108] sm:$0xff]  ;;  %v3694_v31 = vld [vmem:[#allocation8 + $0x150] sm:$0xff] }
 0x52a   : > { %v5910_v38 = vunpack.i.h.bf16 %v5908_v34  ;;  %v5909_v46 = vunpack.i.l.bf16 %v5908_v34  ;;  %v2783_v36 = vpack.c.bf16 %v2765_v33, %v2764_v27  ;;  %v5347_v14 = vpack.c.bf16 %v3685_v24, %v3684_v15  ;;  %v2833_v27 = vld [vmem:[%s8631_s7] sm:$0x3]  ;;  %v3696_v33 = vld [vmem:[#allocation8 + $0x160] sm:$0xff] }
 0x52b   : > { %v5359_v59 = vpack.c.bf16 %v3693_v12, %v3692_v56 }
 0x52c   : > { %3149 = vmatprep.mubr.bf16.mxu1 %v2783_v36  ;;  %v2752_v30 = vsel %vm2741_vm7, %v2527_v50, %v5909_v46  ;;  %v2753_v62 = vsel %vm2741_vm7, %v2528_v22, %v5910_v38  ;;  %v3695_v50 = vld [vmem:[#allocation8 + $0x158] sm:$0xff]  ;;  %v3697_v22 = vld [vmem:[#allocation8 + $0x168] sm:$0xff]  ;;  %v8681_v36 = vsub.s32 1, %v6489_v7 }
 0x52d   : > { %v5918_v45 = vpop.permute.xlu1 %5917  ;;  %v2785_v25 = vpack.c.bf16 %v2753_v62, %v2752_v30  ;;  %v5362_v34 = vpack.c.bf16 %v3695_v50, %v3694_v31  ;;  %v3698_v62 = vld [vmem:[#allocation8 + $0x170] sm:$0xff]  ;;  %v3396_v7 = vld [vmem:[%s8633_s9 + $0x8] sm:$0xff] }
 0x52e   : > { %v5920_v3 = vunpack.i.h.bf16 %v5918_v45  ;;  %v5919_v48 = vunpack.i.l.bf16 %v5918_v45  ;;  %v2515_v26 = vpop.permute.xlu0 %2514  ;;  %v8012_v30 = vrot.slane %v2833_v27, %v8681_v36  ;;  %v3699_v45 = vld [vmem:[#allocation8 + $0x178] sm:$0xff] }
 0x52f   : > { %v2530_v57 = vmul.f32 %v2515_v26, %v7903_v21 }
 0x530   : > { %v2754_v0 = vsel %vm2741_vm7, %v2529_v10, %v5919_v48 }
 0x531   : > { %3150 = vmatmul.mubr.bf16.gmra.mrb[100].mxu1 %v2782_v32  ;;  %v2755_v18 = vsel %vm2741_vm7, %v2530_v57, %v5920_v3  ;;  %v5356_v32 = vpack.c.bf16 %v3691_v54, %v3690_v9  ;;  %v3700_v57 = vld [vmem:[#allocation8 + $0x180] sm:$0xff] }
 0x532   : > { %v5913_v20 = vpop.permute.xlu0 %5912  ;;  %v2788_v11 = vpack.c.bf16 %v2755_v18, %v2754_v0  ;;  %v3701_v0 = vld [vmem:[#allocation8 + $0x188] sm:$0xff] }
 0x533   : > { %v5915_v51 = vunpack.i.h.bf16 %v5913_v20  ;;  %v5914_v44 = vunpack.i.l.bf16 %v5913_v20 }
 0x535   : > { %v2766_v6 = vsel %vm1830_vm6, %v5909_v46, %v5914_v44  ;;  %v2767_v5 = vsel %vm1830_vm6, %v5910_v38, %v5915_v51  ;;  %v2787_v4 = vpack.c.bf16 %v5915_v51, %v5914_v44  ;;  %v8008_v38 = vrot.slane %v2833_v27, %v1292_v17 }
 0x536   : > { %v5923_v58 = vpop.permute.xlu0 %5922  ;;  %v2786_v55 = vpack.c.bf16 %v2767_v5, %v2766_v6  ;;  %v5365_v46 = vpack.c.bf16 %v3697_v22, %v3696_v33  ;;  %v5371_v5 = vpack.c.bf16 %v3701_v0, %v3700_v57 }
 0x537   : > { %v5925_v49 = vunpack.i.h.bf16 %v5923_v58  ;;  %v5924_v52 = vunpack.i.l.bf16 %v5923_v58 }
 0x538   : > { %3159 = vmatprep.mubr.bf16.mxu1 %v2786_v55  ;;  %v3702_v55 = vld [vmem:[#allocation8 + $0x190] sm:$0xff] }
 0x539   : > { %3160 = vmatmul.mubr.bf16.gmra.mrb[104].mxu1 %v2785_v25  ;;  %v2768_v21 = vsel %vm1830_vm6, %v5919_v48, %v5924_v52  ;;  %v2769_v37 = vsel %vm1830_vm6, %v5920_v3, %v5925_v49  ;;  %v2790_v29 = vpack.c.bf16 %v5925_v49, %v5924_v52  ;;  %v5368_v48 = vpack.c.bf16 %v3699_v45, %v3698_v62  ;;  %v3703_v49 = vld [vmem:[#allocation8 + $0x198] sm:$0xff] }
 0x53a   : > { %v2789_v39 = vpack.c.bf16 %v2769_v37, %v2768_v21 }
 0x53c   : > { %3169 = vmatprep.mubr.bf16.mxu1 %v2789_v39 }
 0x541   : > { %3170 = vmatmul.mubr.bf16.gmra.mrb[108].mxu1 %v2788_v11 }
 0x542   : > { %3212 = vmatprep.mubr.bf16.mxu1 %v6204_v1 }
 0x549   : > { %4684 = vmatmul.mubr.msk.bf16.vlgmr.msra.gmra.mrb[84].mxu1 %vm3055_vm8, %v7911_v13  ;;  %v2781_v13 = vpack.c.bf16 %v5900_v41, %v5899_v40  ;;  %v3687_v41 = vld [vmem:[#allocation8 + $0x118] sm:$0xff] }
 0x54a   : > { %3222 = vmatprep.mubr.bf16.mxu1 %v6204_v1  ;;  %5342 = vmatpush1.bf16.msra.mxu1 %v5341_v16 }
 0x54b   : > { %5343 = vmatprep.subr.bf16.mxu1 %v6207_v42 }
 0x54e   : > { %5345 = vmatpush1.bf16.msra.mxu1 %v5344_v53 }
 0x54f   : > { %5346 = vmatprep.subr.bf16.mxu1 %v6207_v42 }
 0x551   : > { %4685 = vmatmul.mubr.msk.bf16.gmra.mrb[88].mxu1 %vm3055_vm8, %v2775_v28 }
 0x552   : > { %3232 = vmatprep.mubr.bf16.mxu1 %v6204_v1  ;;  %5348 = vmatpush1.bf16.msra.mxu1 %v5347_v14 }
 0x553   : > { %5349 = vmatprep.subr.bf16.mxu1 %v6207_v42 }
 0x559   : > { %4686 = vmatmul.mubr.msk.bf16.gmra.mrb[92].mxu1 %vm3055_vm8, %v2778_v61 }
 0x55a   : > { %3242 = vmatprep.mubr.bf16.mxu1 %v6204_v1 }
 0x561   : > { %4687 = vmatmul.mubr.msk.bf16.gmra.mrb[96].mxu1 %vm3055_vm8, %v2781_v13 }
 0x562   : > { %3252 = vmatprep.mubr.bf16.mxu1 %v6204_v1 }
 0x569   : > { %4688 = vmatmul.mubr.msk.bf16.gmra.mrb[100].mxu1 %vm3055_vm8, %v2784_v23 }
 0x56a   : > { %3262 = vmatprep.mubr.bf16.mxu1 %v6204_v1 }
 0x571   : > { %4689 = vmatmul.mubr.msk.bf16.gmra.mrb[104].mxu1 %vm3055_vm8, %v2787_v4  ;;  %v5374_v4 = vpack.c.bf16 %v3703_v49, %v3702_v55 }
 0x572   : > { %3272 = vmatprep.mubr.bf16.mxu1 %v6204_v1  ;;  %v3686_v1 = vld [vmem:[#allocation8 + $0x110] sm:$0xff] }
 0x573   : > { %v5350_v40 = vpack.c.bf16 %v3687_v41, %v3686_v1 }
 0x575   : > { %5351 = vmatpush1.bf16.msra.mxu1 %v5350_v40 }
 0x576   : > { %5352 = vmatprep.subr.bf16.mxu1 %v6207_v42 }
 0x579   : > { %4690 = vmatmul.mubr.msk.bf16.gmra.mrb[108].mxu1 %vm3055_vm8, %v2790_v29 }
 0x57a   : > { %5354 = vmatpush1.bf16.msra.mxu1 %v5353_v35 }
 0x57b   : > { %5355 = vmatprep.subr.bf16.mxu1 %v6207_v42 }
 0x57e   : > { %5357 = vmatpush1.bf16.msra.mxu1 %v5356_v32 }
 0x57f   : > { %5358 = vmatprep.subr.bf16.mxu1 %v6207_v42 }
 0x582   : > { %5360 = vmatpush1.bf16.msra.mxu1 %v5359_v59 }
 0x583   : > { %5361 = vmatprep.subr.bf16.mxu1 %v6207_v42 }
 0x586   : > { %5363 = vmatpush1.bf16.msra.mxu1 %v5362_v34 }
 0x587   : > { %5364 = vmatprep.subr.bf16.mxu1 %v6207_v42 }
 0x58a   : > { %5366 = vmatpush1.bf16.msra.mxu1 %v5365_v46 }
 0x58b   : > { %5367 = vmatprep.subr.bf16.mxu1 %v6207_v42 }
 0x58e   : > { %5369 = vmatpush1.bf16.msra.mxu1 %v5368_v48 }
 0x58f   : > { %5370 = vmatprep.subr.bf16.mxu1 %v6207_v42 }
 0x592   : > { %5372 = vmatpush1.bf16.msra.mxu1 %v5371_v5 }
 0x593   : > { %5373 = vmatprep.subr.bf16.mxu1 %v6207_v42 }
 0x596   : > { %5375 = vmatpush1.bf16.msra.mxu1 %v5374_v4 }
 0x597   : > { %5376 = vmatprep.subr.bf16.mxu1 %v6207_v42 }
 0x59a   : > { %5378 = vmatpush1.bf16.msra.mxu1 %v5377_v60 }
 0x59b   : > { %5379 = vmatprep.subr.bf16.mxu1 %v6207_v42 }
 0x61c   : > { %v3214_v25 = vpop.f32.mrb[84].mxu1 }
 0x61d   : > { %v5541_v10 = vadd.f32 %v3214_v25, %v8008_v38  ;;  %v3216_v3 = vpop.f32.mrb[85].mxu1 }
 0x61e   : > { %v5542_v26 = vadd.f32 %v3216_v3, %v8012_v30  ;;  %v3218_v17 = vpop.f32.mrb[86].mxu1 }
 0x61f   : > { %v3283_v18 = vmax.f32 %v5541_v10, 0.0  ;;  %v5543_v20 = vadd.f32 %v3218_v17, %v8008_v38  ;;  %v3220_v11 = vpop.f32.mrb[87].mxu1 }
 0x620   : > { %v3284_v51 = vmax.f32 %v5542_v26, 0.0  ;;  %v5544_v44 = vadd.f32 %v3220_v11, %v8012_v30 }
 0x621   : > { %v3285_v6 = vmax.f32 %v5543_v20, 0.0  ;;  %v8021_v52 = vrot.slane %v3283_v18, 1 }
 0x622   : > { %v3286_v58 = vmax.f32 %v5544_v44, 0.0  ;;  %v8023_v37 = vrot.slane %v3284_v51, 1 }
 0x623   : > { %v3313_v21 = vrot.slane %v3285_v6, 1 }
 0x624   : > { %v3314_v39 = vrot.slane %v3286_v58, 1  ;;  %v3224_v28 = vpop.f32.mrb[88].mxu1 }
 0x625   : > { %v3363_v61 = vsel %vm812_vm0, %v8021_v52, %v3313_v21  ;;  %v5545_v13 = vadd.f32 %v3224_v28, %v8008_v38  ;;  %v3226_v23 = vpop.f32.mrb[89].mxu1 }
 0x626   : > { %v3367_v29 = vmax.f32 %v3283_v18, %v3363_v61  ;;  %v5546_v43 = vadd.f32 %v3226_v23, %v8012_v30  ;;  %v3228_v8 = vpop.f32.mrb[90].mxu1  ;;  %v3364_v16 = vsel %vm812_vm0, %v8023_v37, %v3314_v39 }
 0x627   : > { %v3287_v53 = vmax.f32 %v5545_v13, 0.0  ;;  %v5547_v15 = vadd.f32 %v3228_v8, %v8008_v38  ;;  %v3230_v24 = vpop.f32.mrb[91].mxu1  ;;  %v3368_v14 = vmax.f32 %v3284_v51, %v3364_v16 }
 0x628   : > { %v3288_v1 = vmax.f32 %v5546_v43, 0.0  ;;  %v5548_v41 = vadd.f32 %v3230_v24, %v8012_v30 }
 0x629   : > { %v3315_v40 = vrot.slane %v3287_v53, 1  ;;  %v3289_v47 = vmax.f32 %v5547_v15, 0.0 }
 0x62a   : > { %v3316_v35 = vrot.slane %v3288_v1, 1  ;;  %v3290_v9 = vmax.f32 %v5548_v41, 0.0 }
 0x62b   : > { %v3361_v54 = vsel %vm812_vm0, %v3313_v21, %v3315_v40  ;;  %v3317_v32 = vrot.slane %v3289_v47, 1 }
 0x62c   : > { %v3369_v56 = vmax.f32 %v3285_v6, %v3361_v54  ;;  %v3318_v12 = vrot.slane %v3290_v9, 1  ;;  %v3234_v59 = vpop.f32.mrb[92].mxu1  ;;  %v3362_v31 = vsel %vm812_vm0, %v3314_v39, %v3316_v35 }
 0x62d   : > { %v3359_v50 = vsel %vm812_vm0, %v3315_v40, %v3317_v32  ;;  %v5549_v34 = vadd.f32 %v3234_v59, %v8008_v38  ;;  %v3236_v27 = vpop.f32.mrb[93].mxu1  ;;  %v3370_v33 = vmax.f32 %v3286_v58, %v3362_v31 }
 0x62e   : > { %v3371_v22 = vmax.f32 %v3287_v53, %v3359_v50  ;;  %v5550_v46 = vadd.f32 %v3236_v27, %v8012_v30  ;;  %v3238_v36 = vpop.f32.mrb[94].mxu1  ;;  %v5272_v62 = vpack.c.bf16 %v3369_v56, %v3367_v29  ;;  %v3360_v45 = vsel %vm812_vm0, %v3316_v35, %v3318_v12 }
 0x62f   : > { %v3291_v25 = vmax.f32 %v5549_v34, 0.0  ;;  %v5551_v10 = vadd.f32 %v3238_v36, %v8008_v38  ;;  %v3240_v3 = vpop.f32.mrb[95].mxu1  ;;  %v5270_v48 = vpack.c.bf16 %v3370_v33, %v3368_v14  ;;  %v3372_v26 = vmax.f32 %v3288_v1, %v3360_v45 }
 0x630   : > { %v3292_v17 = vmax.f32 %v5550_v46, 0.0  ;;  %v5552_v57 = vadd.f32 %v3240_v3, %v8012_v30 }
 0x631   : > { %v3319_v0 = vrot.slane %v3291_v25, 1  ;;  %v3293_v18 = vmax.f32 %v5551_v10, 0.0  ;;  %5271 = vmatprep.subr.bf16.mxu0 %v5270_v48 }
 0x632   : > { %v3320_v20 = vrot.slane %v3292_v17, 1  ;;  %v3294_v11 = vmax.f32 %v5552_v57, 0.0  ;;  %5273 = vmatpush1.bf16.msra.mxu0 %v5272_v62 }
 0x633   : > { %v3357_v51 = vsel %vm812_vm0, %v3317_v32, %v3319_v0  ;;  %v3321_v44 = vrot.slane %v3293_v18, 1 }
 0x634   : > { %v3373_v6 = vmax.f32 %v3289_v47, %v3357_v51  ;;  %v3322_v5 = vrot.slane %v3294_v11, 1  ;;  %v3244_v58 = vpop.f32.mrb[96].mxu1  ;;  %v3358_v55 = vsel %vm812_vm0, %v3318_v12, %v3320_v20 }
 0x635   : > { %v3355_v49 = vsel %vm812_vm0, %v3319_v0, %v3321_v44  ;;  %v5553_v21 = vadd.f32 %v3244_v58, %v8008_v38  ;;  %v3246_v39 = vpop.f32.mrb[97].mxu1  ;;  %v3374_v28 = vmax.f32 %v3290_v9, %v3358_v55 }
 0x636   : > { %v3375_v61 = vmax.f32 %v3291_v25, %v3355_v49  ;;  %v5554_v13 = vadd.f32 %v3246_v39, %v8012_v30  ;;  %v3248_v23 = vpop.f32.mrb[98].mxu1  ;;  %v5276_v4 = vpack.c.bf16 %v3373_v6, %v3371_v22  ;;  %v3356_v29 = vsel %vm812_vm0, %v3320_v20, %v3322_v5 }
 0x637   : > { %v3295_v43 = vmax.f32 %v5553_v21, 0.0  ;;  %v5555_v8 = vadd.f32 %v3248_v23, %v8008_v38  ;;  %v3250_v16 = vpop.f32.mrb[99].mxu1  ;;  %v5274_v63 = vpack.c.bf16 %v3374_v28, %v3372_v26  ;;  %v3376_v2 = vmax.f32 %v3292_v17, %v3356_v29 }
 0x638   : > { %v3296_v53 = vmax.f32 %v5554_v13, 0.0  ;;  %v5556_v15 = vadd.f32 %v3250_v16, %v8012_v30 }
 0x639   : > { %v3323_v24 = vrot.slane %v3295_v43, 1  ;;  %v3297_v14 = vmax.f32 %v5555_v8, 0.0  ;;  %5275 = vmatprep.subr.bf16.mxu0 %v5274_v63 }
 0x63a   : > { %v3324_v1 = vrot.slane %v3296_v53, 1  ;;  %v3298_v41 = vmax.f32 %v5556_v15, 0.0  ;;  %5277 = vmatpush1.bf16.msra.mxu0 %v5276_v4 }
 0x63b   : > { %v3353_v40 = vsel %vm812_vm0, %v3321_v44, %v3323_v24  ;;  %v3325_v47 = vrot.slane %v3297_v14, 1 }
 0x63c   : > { %v3377_v60 = vmax.f32 %v3293_v18, %v3353_v40  ;;  %v3326_v35 = vrot.slane %v3298_v41, 1  ;;  %v3254_v9 = vpop.f32.mrb[100].mxu1  ;;  %v3354_v54 = vsel %vm812_vm0, %v3322_v5, %v3324_v1 }
 0x63d   : > { %v3351_v32 = vsel %vm812_vm0, %v3323_v24, %v3325_v47  ;;  %v5557_v56 = vadd.f32 %v3254_v9, %v8008_v38  ;;  %v3256_v12 = vpop.f32.mrb[101].mxu1  ;;  %v3378_v59 = vmax.f32 %v3294_v11, %v3354_v54 }
 0x63e   : > { %v3379_v31 = vmax.f32 %v3295_v43, %v3351_v32  ;;  %v5558_v50 = vadd.f32 %v3256_v12, %v8012_v30  ;;  %v3258_v34 = vpop.f32.mrb[102].mxu1  ;;  %v5280_v27 = vpack.c.bf16 %v3377_v60, %v3375_v61  ;;  %v3352_v33 = vsel %vm812_vm0, %v3324_v1, %v3326_v35 }
 0x63f   : > { %v3299_v22 = vmax.f32 %v5557_v56, 0.0  ;;  %v5559_v46 = vadd.f32 %v3258_v34, %v8008_v38  ;;  %v3260_v36 = vpop.f32.mrb[103].mxu1  ;;  %v5278_v62 = vpack.c.bf16 %v3378_v59, %v3376_v2  ;;  %v3380_v45 = vmax.f32 %v3296_v53, %v3352_v33 }
 0x640   : > { %v3300_v25 = vmax.f32 %v5558_v50, 0.0  ;;  %v5560_v10 = vadd.f32 %v3260_v36, %v8012_v30 }
 0x641   : > { %v3327_v3 = vrot.slane %v3299_v22, 1  ;;  %v3301_v48 = vmax.f32 %v5559_v46, 0.0  ;;  %5279 = vmatprep.subr.bf16.mxu0 %v5278_v62 }
 0x642   : > { %v3328_v26 = vrot.slane %v3300_v25, 1  ;;  %v3302_v17 = vmax.f32 %v5560_v10, 0.0  ;;  %5281 = vmatpush1.bf16.msra.mxu0 %v5280_v27 }
 0x643   : > { %v3349_v57 = vsel %vm812_vm0, %v3325_v47, %v3327_v3  ;;  %v3329_v0 = vrot.slane %v3301_v48, 1 }
 0x644   : > { %v3381_v18 = vmax.f32 %v3297_v14, %v3349_v57  ;;  %v3330_v20 = vrot.slane %v3302_v17, 1  ;;  %v3264_v11 = vpop.f32.mrb[104].mxu1  ;;  %v3350_v51 = vsel %vm812_vm0, %v3326_v35, %v3328_v26 }
 0x645   : > { %v3347_v44 = vsel %vm812_vm0, %v3327_v3, %v3329_v0  ;;  %v5561_v6 = vadd.f32 %v3264_v11, %v8008_v38  ;;  %v3266_v5 = vpop.f32.mrb[105].mxu1  ;;  %v3382_v58 = vmax.f32 %v3298_v41, %v3350_v51 }
 0x646   : > { %v3383_v55 = vmax.f32 %v3299_v22, %v3347_v44  ;;  %v5562_v49 = vadd.f32 %v3266_v5, %v8012_v30  ;;  %v3268_v21 = vpop.f32.mrb[106].mxu1  ;;  %v5284_v39 = vpack.c.bf16 %v3381_v18, %v3379_v31  ;;  %v3348_v28 = vsel %vm812_vm0, %v3328_v26, %v3330_v20 }
 0x647   : > { %v3303_v61 = vmax.f32 %v5561_v6, 0.0  ;;  %v5563_v13 = vadd.f32 %v3268_v21, %v8008_v38  ;;  %v3270_v23 = vpop.f32.mrb[107].mxu1  ;;  %v5282_v4 = vpack.c.bf16 %v3382_v58, %v3380_v45  ;;  %v3384_v29 = vmax.f32 %v3300_v25, %v3348_v28  ;;  %v3395_v21 = vld [vmem:[%s8633_s9] sm:$0xff]  ;;  %v3533_v28 = vld [vmem:[#allocation8 + $0x18] sm:$0xff] }
 0x648   : > { %v3304_v43 = vmax.f32 %v5562_v49, 0.0  ;;  %v5564_v8 = vadd.f32 %v3270_v23, %v8012_v30  ;;  %v3530_v49 = vld [vmem:[#allocation8] sm:$0xff]  ;;  %v3535_v23 = vld [vmem:[#allocation8 + $0x28] sm:$0xff] }
 0x649   : > { %v3331_v16 = vrot.slane %v3303_v61, 1  ;;  %v3305_v63 = vmax.f32 %v5563_v13, 0.0  ;;  %5283 = vmatprep.subr.bf16.mxu0 %v5282_v4  ;;  %v3534_v13 = vld [vmem:[#allocation8 + $0x20] sm:$0xff] }
 0x64a   : > { %v3332_v2 = vrot.slane %v3304_v43, 1  ;;  %v3306_v53 = vmax.f32 %v5564_v8, 0.0  ;;  %5285 = vmatpush1.bf16.msra.mxu0 %v5284_v39  ;;  %v3532_v39 = vld [vmem:[#allocation8 + $0x10] sm:$0xff]  ;;  %v3397_v4 = vld [vmem:[%s8633_s9 + $0x10] sm:$0xff]  ;;  %v3537_v8 = vld [vmem:[#allocation8 + $0x38] sm:$0xff] }
 0x64b   : > { %v3345_v15 = vsel %vm812_vm0, %v3329_v0, %v3331_v16  ;;  %v3333_v24 = vrot.slane %v3305_v63, 1 }
 0x64c   : > { %v3385_v14 = vmax.f32 %v3301_v48, %v3345_v15  ;;  %v3334_v1 = vrot.slane %v3306_v53, 1  ;;  %v3274_v41 = vpop.f32.mrb[108].mxu1  ;;  %v3346_v40 = vsel %vm812_vm0, %v3330_v20, %v3332_v2  ;;  %v3399_v15 = vld [vmem:[%s8633_s9 + $0x20] sm:$0xff] }
 0x64d   : > { %v3343_v47 = vsel %vm812_vm0, %v3331_v16, %v3333_v24  ;;  %v5565_v60 = vadd.f32 %v3274_v41, %v8008_v38  ;;  %v3276_v35 = vpop.f32.mrb[109].mxu1  ;;  %v3386_v9 = vmax.f32 %v3302_v17, %v3346_v40  ;;  %v3398_v16 = vld [vmem:[%s8633_s9 + $0x18] sm:$0xff]  ;;  %v3400_v41 = vld [vmem:[%s8633_s9 + $0x28] sm:$0xff] }
 0x64e   : > { %v3387_v54 = vmax.f32 %v3303_v61, %v3343_v47  ;;  %v5566_v32 = vadd.f32 %v3276_v35, %v8012_v30  ;;  %v3278_v56 = vpop.f32.mrb[110].mxu1  ;;  %v5288_v12 = vpack.c.bf16 %v3385_v14, %v3383_v55  ;;  %v3344_v59 = vsel %vm812_vm0, %v3332_v2, %v3334_v1  ;;  %v3538_v2 = vld [vmem:[#allocation8 + $0x40] sm:$0xff]  ;;  %v3540_v14 = vld [vmem:[#allocation8 + $0x50] sm:$0xff] }
 0x64f   : > { %v3307_v31 = vmax.f32 %v5565_v60, 0.0  ;;  %v5567_v50 = vadd.f32 %v3278_v56, %v8008_v38  ;;  %v3280_v34 = vpop.f32.mrb[111].mxu1  ;;  %v5286_v27 = vpack.c.bf16 %v3386_v9, %v3384_v29  ;;  %v3388_v33 = vmax.f32 %v3304_v43, %v3344_v59  ;;  %v3536_v43 = vld [vmem:[#allocation8 + $0x30] sm:$0xff]  ;;  %v3542_v47 = vld [vmem:[#allocation8 + $0x60] sm:$0xff]  ;;  %v3543_v60 = vld [vmem:[#allocation8 + $0x68] sm:$0xff] }
 0x650   : > { %v3308_v22 = vmax.f32 %v5566_v32, 0.0  ;;  %v5568_v46 = vadd.f32 %v3280_v34, %v8012_v30  ;;  %v5302_v61 = vpack.c.bf16 %v3533_v28, %v3532_v39  ;;  %v5305_v29 = vpack.c.bf16 %v3535_v23, %v3534_v13  ;;  %v3401_v35 = vld [vmem:[%s8633_s9 + $0x30] sm:$0xff]  ;;  %v3545_v32 = vld [vmem:[#allocation8 + $0x78] sm:$0xff]  ;;  %v3547_v59 = vld [vmem:[#allocation8 + $0x88] sm:$0xff] }
 0x651   : > { %v3335_v36 = vrot.slane %v3307_v31, 1  ;;  %v3309_v62 = vmax.f32 %v5567_v50, 0.0  ;;  %5287 = vmatprep.subr.bf16.mxu0 %v5286_v27  ;;  %v5317_v9 = vpack.c.bf16 %v3543_v60, %v3542_v47  ;;  %v3548_v50 = vld [vmem:[#allocation8 + $0x90] sm:$0xff]  ;;  %v3549_v34 = vld [vmem:[#allocation8 + $0x98] sm:$0xff]  ;;  %v4718_v28 = vld [vmem:[%s8635_s11 + $0x90] sm:$0xff] }
 0x652   : > { %v3336_v45 = vrot.slane %v3308_v22, 1  ;;  %v3310_v25 = vmax.f32 %v5568_v46, 0.0  ;;  %5289 = vmatpush1.bf16.msra.mxu0 %v5288_v12  ;;  %v3546_v12 = vld [vmem:[#allocation8 + $0x80] sm:$0xff]  ;;  %v5326_v27 = vpack.c.bf16 %v3549_v34, %v3548_v50  ;;  %v3820_v13 = vld [vmem:[%s8635_s11 + $0x20] sm:$0xff]  ;;  %v3821_v23 = vld [vmem:[%s8635_s11 + $0x28] sm:$0xff] }
 0x653   : > { %v3341_v10 = vsel %vm812_vm0, %v3333_v24, %v3335_v36  ;;  %v3337_v3 = vrot.slane %v3309_v62, 1  ;;  %v3824_v47 = vld [vmem:[%s8635_s11 + $0x40] sm:$0xff]  ;;  %v3825_v60 = vld [vmem:[%s8635_s11 + $0x48] sm:$0xff] }
 0x654   : > { %v3389_v48 = vmax.f32 %v3305_v63, %v3341_v10  ;;  %v3338_v26 = vrot.slane %v3310_v25, 1  ;;  %v3342_v38 = vsel %vm812_vm0, %v3334_v1, %v3336_v45  ;;  %v5308_v63 = vpack.c.bf16 %v3537_v8, %v3536_v43  ;;  %v3541_v1 = vld [vmem:[#allocation8 + $0x58] sm:$0xff]  ;;  %v3555_v10 = vld [vmem:[#allocation8 + $0xc8] sm:$0xff]  ;;  %v4720_v8 = vld [vmem:[%s8635_s11 + $0xa0] sm:$0xff] }
 0x655   : > { %v3339_v17 = vsel %vm812_vm0, %v3335_v36, %v3337_v3  ;;  %v3365_v30 = vsel %vm812_vm0, %v3337_v3, %v8021_v52  ;;  %v3390_v57 = vmax.f32 %v3306_v53, %v3342_v38  ;;  %v3531_v52 = vld [vmem:[#allocation8 + $0x8] sm:$0xff]  ;;  %v5314_v40 = vpack.c.bf16 %v3541_v1, %v3540_v14  ;;  %v3552_v36 = vld [vmem:[#allocation8 + $0xb0] sm:$0xff]  ;;  %v4722_v1 = vld [vmem:[%s8635_s11 + $0xb0] sm:$0xff] }
 0x656   : > { %v3391_v0 = vmax.f32 %v3307_v31, %v3339_v17  ;;  %v3393_v18 = vmax.f32 %v3309_v62, %v3365_v30  ;;  %v3366_v20 = vsel %vm812_vm0, %v3338_v26, %v8023_v37  ;;  %v5292_v11 = vpack.c.bf16 %v3389_v48, %v3387_v54  ;;  %v3539_v53 = vld [vmem:[#allocation8 + $0x48] sm:$0xff]  ;;  %v3544_v54 = vld [vmem:[#allocation8 + $0x70] sm:$0xff]  ;;  %v3553_v62 = vld [vmem:[#allocation8 + $0xb8] sm:$0xff] }
 0x657   : > { %v3394_v51 = vmax.f32 %v3310_v25, %v3366_v20  ;;  %v5290_v44 = vpack.c.bf16 %v3390_v57, %v3388_v33  ;;  %v3340_v6 = vsel %vm812_vm0, %v3336_v45, %v3338_v26  ;;  %v5299_v37 = vpack.c.bf16 %v3531_v52, %v3530_v49  ;;  %v3550_v33 = vld [vmem:[#allocation8 + $0xa0] sm:$0xff]  ;;  %v3556_v48 = vld [vmem:[#allocation8 + $0xd0] sm:$0xff]  ;;  %v3557_v26 = vld [vmem:[#allocation8 + $0xd8] sm:$0xff] }
 0x658   : > { %v5296_v5 = vpack.c.bf16 %v3393_v18, %v3391_v0  ;;  %v3392_v58 = vmax.f32 %v3308_v22, %v3340_v6  ;;  %v5311_v24 = vpack.c.bf16 %v3539_v53, %v3538_v2  ;;  %v5320_v56 = vpack.c.bf16 %v3545_v32, %v3544_v54  ;;  %v3551_v22 = vld [vmem:[#allocation8 + $0xa8] sm:$0xff]  ;;  %v3554_v25 = vld [vmem:[#allocation8 + $0xc0] sm:$0xff]  ;;  %v3706_v38 = vld [vmem:[#allocation8 + $0x1b0] sm:$0xff] }
 0x659   : > { %5291 = vmatprep.subr.bf16.mxu0 %v5290_v44  ;;  %v5323_v31 = vpack.c.bf16 %v3547_v59, %v3546_v12  ;;  %v5329_v46 = vpack.c.bf16 %v3551_v22, %v3550_v33  ;;  %v5332_v45 = vpack.c.bf16 %v3553_v62, %v3552_v36  ;;  %v5335_v3 = vpack.c.bf16 %v3555_v10, %v3554_v25  ;;  %v3707_v30 = vld [vmem:[#allocation8 + $0x1b8] sm:$0xff]  ;;  %v4714_v0 = vld [vmem:[%s8635_s11 + $0x70] sm:$0xff]  ;;  %v4715_v18 = vld [vmem:[%s8635_s11 + $0x78] sm:$0xff] }
 0x65a   : > { %5293 = vmatpush1.bf16.msra.mxu0 %v5292_v11  ;;  %v5294_v55 = vpack.c.bf16 %v3394_v51, %v3392_v58  ;;  %v5338_v17 = vpack.c.bf16 %v3557_v26, %v3556_v48  ;;  %v5380_v57 = vpack.c.bf16 %v3707_v30, %v3706_v38  ;;  %v3816_v20 = vld [vmem:[%s8635_s11] sm:$0xff]  ;;  %v3817_v11 = vld [vmem:[%s8635_s11 + $0x8] sm:$0xff]  ;;  %v5404_v44 = vpack.c.bf16 %v4715_v18, %v4714_v0  ;;  %v3818_v49 = vld [vmem:[%s8635_s11 + $0x10] sm:$0xff] }
 0x65b   : > { %v5383_v6 = vpack.c.bf16 %v3817_v11, %v3816_v20  ;;  %v3819_v52 = vld [vmem:[%s8635_s11 + $0x18] sm:$0xff]  ;;  %v5389_v43 = vpack.c.bf16 %v3821_v23, %v3820_v13  ;;  %v3822_v2 = vld [vmem:[%s8635_s11 + $0x30] sm:$0xff]  ;;  %v5395_v54 = vpack.c.bf16 %v3825_v60, %v3824_v47  ;;  %v4725_v12 = vld [vmem:[%s8635_s11 + $0xc8] sm:$0xff] }
 0x65c   : > { %5295 = vmatprep.subr.bf16.mxu0 %v5294_v55  ;;  %5381 = vmatpush1.bf16.msra.mxu1 %v5380_v57  ;;  %v4717_v55 = vld [vmem:[%s8635_s11 + $0x88] sm:$0xff]  ;;  %v5386_v39 = vpack.c.bf16 %v3819_v52, %v3818_v49  ;;  %v3823_v53 = vld [vmem:[%s8635_s11 + $0x38] sm:$0xff]  ;;  %v3826_v33 = vld [vmem:[%s8635_s11 + $0x50] sm:$0xff] }
 0x65d   : > { %5382 = vmatprep.subr.bf16.mxu1 %v6207_v42  ;;  %v5392_v14 = vpack.c.bf16 %v3823_v53, %v3822_v2  ;;  %v3827_v22 = vld [vmem:[%s8635_s11 + $0x58] sm:$0xff]  ;;  %v3828_v25 = vld [vmem:[%s8635_s11 + $0x60] sm:$0xff]  ;;  %v3829_v10 = vld [vmem:[%s8635_s11 + $0x68] sm:$0xff] }
 0x65e   : > { %5297 = vmatpush1.bf16.msra.mxu0 %v5296_v5  ;;  %v4716_v5 = vld [vmem:[%s8635_s11 + $0x80] sm:$0xff]  ;;  %v5398_v36 = vpack.c.bf16 %v3827_v22, %v3826_v33  ;;  %v4727_v62 = vld [vmem:[%s8635_s11 + $0xd8] sm:$0xff]  ;;  %v4730_v0 = vld [vmem:[%s8635_s11 + $0xe8] sm:$0xff] }
 0x65f   : > { %5298 = vmatprep.subr.bf16.mxu0 %v6207_v42  ;;  %v4729_v57 = vld [vmem:[%s8635_s11 + $0xe0] sm:$0xff] }
 0x660   : > { %v5425_v11 = vpack.c.bf16 %v4730_v0, %v4729_v57  ;;  %v4752_v0 = vld [vmem:[%s8635_s11 + $0x190] sm:$0xff] }
 0x661   : > { %4691 = vmatmul.mubr.msk.f32.vlgmr.msra.gmra.mrb[56].mxu0 %vm2741_vm7, %v3395_v21 }
 0x662   : > { %3493 = vmatprep.mubr.f32.mxu0 %v6210_v19  ;;  %5300 = vmatpush1.bf16.msra.mxu0 %v5299_v37  ;;  %v5407_v37 = vpack.c.bf16 %v4717_v55, %v4716_v5  ;;  %v4731_v5 = vld [vmem:[%s8635_s11 + $0xf0] sm:$0xff] }
 0x663   : > { %5301 = vmatprep.subr.bf16.mxu0 %v6207_v42 }
 0x665   : > { %4692 = vmatmul.mubr.msk.f32.gmra.mrb[58].mxu0 %vm2741_vm7, %v3396_v7 }
 0x666   : > { %3499 = vmatprep.mubr.f32.mxu0 %v6210_v19  ;;  %5303 = vmatpush1.bf16.msra.mxu0 %v5302_v61  ;;  %v4719_v61 = vld [vmem:[%s8635_s11 + $0x98] sm:$0xff] }
 0x667   : > { %5304 = vmatprep.subr.bf16.mxu0 %v6207_v42 }
 0x669   : > { %4693 = vmatmul.mubr.msk.f32.gmra.mrb[60].mxu0 %vm2741_vm7, %v3397_v4 }
 0x66a   : > { %3505 = vmatprep.mubr.f32.mxu0 %v6210_v19  ;;  %5306 = vmatpush1.bf16.msra.mxu0 %v5305_v29  ;;  %v5410_v29 = vpack.c.bf16 %v4719_v61, %v4718_v28 }
 0x66b   : > { %5307 = vmatprep.subr.bf16.mxu0 %v6207_v42 }
 0x66d   : > { %4694 = vmatmul.mubr.msk.f32.gmra.mrb[62].mxu0 %vm2741_vm7, %v3398_v16 }
 0x66e   : > { %3511 = vmatprep.mubr.f32.mxu0 %v6210_v19  ;;  %5309 = vmatpush1.bf16.msra.mxu0 %v5308_v63  ;;  %v4721_v63 = vld [vmem:[%s8635_s11 + $0xa8] sm:$0xff] }
 0x66f   : > { %5310 = vmatprep.subr.bf16.mxu0 %v6207_v42 }
 0x671   : > { %4695 = vmatmul.mubr.msk.f32.gmra.mrb[64].mxu0 %vm2741_vm7, %v3399_v15 }
 0x672   : > { %3517 = vmatprep.mubr.f32.mxu0 %v6210_v19  ;;  %5312 = vmatpush1.bf16.msra.mxu0 %v5311_v24  ;;  %v5413_v24 = vpack.c.bf16 %v4721_v63, %v4720_v8 }
 0x673   : > { %5313 = vmatprep.subr.bf16.mxu0 %v6207_v42 }
 0x675   : > { %4696 = vmatmul.mubr.msk.f32.gmra.mrb[66].mxu0 %vm2741_vm7, %v3400_v41 }
 0x676   : > { %3523 = vmatprep.mubr.f32.mxu0 %v6210_v19  ;;  %5315 = vmatpush1.bf16.msra.mxu0 %v5314_v40  ;;  %v4723_v40 = vld [vmem:[%s8635_s11 + $0xb8] sm:$0xff] }
 0x677   : > { %5316 = vmatprep.subr.bf16.mxu0 %v6207_v42 }
 0x679   : > { %4697 = vmatmul.mubr.msk.f32.gmra.mrb[68].mxu0 %vm2741_vm7, %v3401_v35 }
 0x67a   : > { %5318 = vmatpush1.bf16.msra.mxu0 %v5317_v9  ;;  %v5416_v9 = vpack.c.bf16 %v4723_v40, %v4722_v1 }
 0x67b   : > { %5319 = vmatprep.subr.bf16.mxu0 %v6207_v42 }
 0x67e   : > { %5321 = vmatpush1.bf16.msra.mxu0 %v5320_v56  ;;  %v4724_v56 = vld [vmem:[%s8635_s11 + $0xc0] sm:$0xff] }
 0x67f   : > { %5322 = vmatprep.subr.bf16.mxu0 %v6207_v42 }
 0x682   : > { %5324 = vmatpush1.bf16.msra.mxu0 %v5323_v31  ;;  %v5419_v31 = vpack.c.bf16 %v4725_v12, %v4724_v56 }
 0x683   : > { %5325 = vmatprep.subr.bf16.mxu0 %v6207_v42 }
 0x686   : > { %5327 = vmatpush1.bf16.msra.mxu0 %v5326_v27 }
 0x687   : > { %5328 = vmatprep.subr.bf16.mxu0 %v6207_v42 }
 0x68a   : > { %5330 = vmatpush1.bf16.msra.mxu0 %v5329_v46  ;;  %v4726_v46 = vld [vmem:[%s8635_s11 + $0xd0] sm:$0xff] }
 0x68b   : > { %5331 = vmatprep.subr.bf16.mxu0 %v6207_v42 }
 0x68e   : > { %5333 = vmatpush1.bf16.msra.mxu0 %v5332_v45  ;;  %v5422_v45 = vpack.c.bf16 %v4727_v62, %v4726_v46  ;;  %v4745_v62 = vld [vmem:[%s8635_s11 + $0x158] sm:$0xff] }
 0x68f   : > { %5334 = vmatprep.subr.bf16.mxu0 %v6207_v42 }
 0x692   : > { %5336 = vmatpush1.bf16.msra.mxu0 %v5335_v3  ;;  %v5401_v3 = vpack.c.bf16 %v3829_v10, %v3828_v25  ;;  %v4746_v25 = vld [vmem:[%s8635_s11 + $0x160] sm:$0xff]  ;;  %v4747_v10 = vld [vmem:[%s8635_s11 + $0x168] sm:$0xff] }
 0x693   : > { %5337 = vmatprep.subr.bf16.mxu0 %v6207_v42 }
 0x696   : > { %5339 = vmatpush1.bf16.msra.mxu0 %v5338_v17 }
 0x697   : > { %5403 = vmatprep.subr.bf16.mxu0 %v6207_v42 }
 0x734   : > { %v3489_v51 = vpop.f32.mrb[56].mxu0 }
 0x735   : > { %v3491_v58 = vpop.f32.mrb[57].mxu0 }
 0x736   : > { %4698 = vmatprep.mubr.msk.f32.mxu0 %vm1830_vm6, %v3491_v58  ;;  %4705 = vmatprep.mubr.msk.f32.mxu1 %vm1830_vm6, %v3491_v58  ;;  %v4732_v58 = vld [vmem:[%s8635_s11 + $0xf8] sm:$0xff] }
 0x737   : > { %3644 = vmatmul.mubr.f32.vlgmr.msra.gmra.mrb[70].mxu0 %v3489_v51  ;;  %3773 = vmatmul.mubr.f32.vlgmr.msra.gmra.mrb[112].mxu1 %v3489_v51  ;;  %v5428_v55 = vpack.c.bf16 %v4732_v58, %v4731_v5  ;;  %v4757_v5 = vld [vmem:[%s8635_s11 + $0x1b8] sm:$0xff] }
 0x738   : > { %v3495_v21 = vpop.f32.mrb[58].mxu0  ;;  %5405 = vmatpush3.bf16.msra.mxu0 %v5404_v44  ;;  %5384 = vmatpush3.bf16.msra.mxu1 %v5383_v6 }
 0x739   : > { %v3497_v7 = vpop.f32.mrb[59].mxu0  ;;  %5406 = vmatprep.subr.bf16.mxu0 %v6207_v42  ;;  %5385 = vmatprep.subr.bf16.mxu1 %v6207_v42 }
 0x73a   : > { %4699 = vmatprep.mubr.msk.f32.mxu0 %vm1830_vm6, %v3497_v7  ;;  %4706 = vmatprep.mubr.msk.f32.mxu1 %vm1830_vm6, %v3497_v7 }
 0x73b   : > { %3649 = vmatmul.mubr.f32.gmra.mrb[72].mxu0 %v3495_v21  ;;  %3778 = vmatmul.mubr.f32.gmra.mrb[114].mxu1 %v3495_v21  ;;  %v4733_v21 = vld [vmem:[%s8635_s11 + $0x100] sm:$0xff] }
 0x73c   : > { %v3501_v4 = vpop.f32.mrb[60].mxu0  ;;  %5408 = vmatpush3.bf16.msra.mxu0 %v5407_v37  ;;  %5387 = vmatpush3.bf16.msra.mxu1 %v5386_v39  ;;  %v4734_v37 = vld [vmem:[%s8635_s11 + $0x108] sm:$0xff] }
 0x73d   : > { %v3503_v16 = vpop.f32.mrb[61].mxu0  ;;  %5409 = vmatprep.subr.bf16.mxu0 %v6207_v42  ;;  %5388 = vmatprep.subr.bf16.mxu1 %v6207_v42  ;;  %v5431_v61 = vpack.c.bf16 %v4734_v37, %v4733_v21  ;;  %v4761_v21 = vld [vmem:[%s8635_s11 + $0x1d0] sm:$0xff]  ;;  %v4762_v37 = vld [vmem:[%s8635_s11 + $0x1d8] sm:$0xff] }
 0x73e   : > { %4700 = vmatprep.mubr.msk.f32.mxu0 %vm1830_vm6, %v3503_v16  ;;  %4707 = vmatprep.mubr.msk.f32.mxu1 %vm1830_vm6, %v3503_v16 }
 0x73f   : > { %3654 = vmatmul.mubr.f32.gmra.mrb[74].mxu0 %v3501_v4  ;;  %3783 = vmatmul.mubr.f32.gmra.mrb[116].mxu1 %v3501_v4  ;;  %v4735_v4 = vld [vmem:[%s8635_s11 + $0x110] sm:$0xff] }
 0x740   : > { %v3507_v15 = vpop.f32.mrb[62].mxu0  ;;  %5411 = vmatpush3.bf16.msra.mxu0 %v5410_v29  ;;  %5390 = vmatpush3.bf16.msra.mxu1 %v5389_v43  ;;  %v4736_v29 = vld [vmem:[%s8635_s11 + $0x118] sm:$0xff] }
 0x741   : > { %v3509_v41 = vpop.f32.mrb[63].mxu0  ;;  %5412 = vmatprep.subr.bf16.mxu0 %v6207_v42  ;;  %5391 = vmatprep.subr.bf16.mxu1 %v6207_v42  ;;  %v5434_v63 = vpack.c.bf16 %v4736_v29, %v4735_v4  ;;  %v4767_v29 = vld [vmem:[%s8635_s11 + $0x200] sm:$0xff] }
 0x742   : > { %4701 = vmatprep.mubr.msk.f32.mxu0 %vm1830_vm6, %v3509_v41  ;;  %4708 = vmatprep.mubr.msk.f32.mxu1 %vm1830_vm6, %v3509_v41 }
 0x743   : > { %3659 = vmatmul.mubr.f32.gmra.mrb[76].mxu0 %v3507_v15  ;;  %3788 = vmatmul.mubr.f32.gmra.mrb[118].mxu1 %v3507_v15  ;;  %v4737_v15 = vld [vmem:[%s8635_s11 + $0x120] sm:$0xff] }
 0x744   : > { %v3513_v35 = vpop.f32.mrb[64].mxu0  ;;  %5414 = vmatpush3.bf16.msra.mxu0 %v5413_v24  ;;  %5393 = vmatpush3.bf16.msra.mxu1 %v5392_v14  ;;  %v4738_v24 = vld [vmem:[%s8635_s11 + $0x128] sm:$0xff] }
 0x745   : > { %v3515_v32 = vpop.f32.mrb[65].mxu0  ;;  %5415 = vmatprep.subr.bf16.mxu0 %v6207_v42  ;;  %5394 = vmatprep.subr.bf16.mxu1 %v6207_v42  ;;  %v5437_v40 = vpack.c.bf16 %v4738_v24, %v4737_v15  ;;  %v4771_v24 = vld [vmem:[%s8635_s11 + $0x220] sm:$0xff] }
 0x746   : > { %4702 = vmatprep.mubr.msk.f32.mxu0 %vm1830_vm6, %v3515_v32  ;;  %4709 = vmatprep.mubr.msk.f32.mxu1 %vm1830_vm6, %v3515_v32 }
 0x747   : > { %3664 = vmatmul.mubr.f32.gmra.mrb[78].mxu0 %v3513_v35  ;;  %3793 = vmatmul.mubr.f32.gmra.mrb[120].mxu1 %v3513_v35  ;;  %v4739_v35 = vld [vmem:[%s8635_s11 + $0x130] sm:$0xff] }
 0x748   : > { %v3519_v59 = vpop.f32.mrb[66].mxu0  ;;  %5417 = vmatpush3.bf16.msra.mxu0 %v5416_v9  ;;  %5396 = vmatpush3.bf16.msra.mxu1 %v5395_v54  ;;  %v4740_v9 = vld [vmem:[%s8635_s11 + $0x138] sm:$0xff] }
 0x749   : > { %v3521_v50 = vpop.f32.mrb[67].mxu0  ;;  %5418 = vmatprep.subr.bf16.mxu0 %v6207_v42  ;;  %5397 = vmatprep.subr.bf16.mxu1 %v6207_v42  ;;  %v5440_v12 = vpack.c.bf16 %v4740_v9, %v4739_v35  ;;  %v4775_v35 = vld [vmem:[%s8635_s11 + $0x238] sm:$0xff] }
 0x74a   : > { %4703 = vmatprep.mubr.msk.f32.mxu0 %vm1830_vm6, %v3521_v50  ;;  %4710 = vmatprep.mubr.msk.f32.mxu1 %vm1830_vm6, %v3521_v50  ;;  %v4741_v50 = vld [vmem:[%s8635_s11 + $0x140] sm:$0xff] }
 0x74b   : > { %3669 = vmatmul.mubr.f32.gmra.mrb[80].mxu0 %v3519_v59  ;;  %3798 = vmatmul.mubr.f32.gmra.mrb[122].mxu1 %v3519_v59 }
 0x74c   : > { %v3525_v34 = vpop.f32.mrb[68].mxu0  ;;  %5420 = vmatpush3.bf16.msra.mxu0 %v5419_v31  ;;  %5399 = vmatpush3.bf16.msra.mxu1 %v5398_v36  ;;  %v4744_v36 = vld [vmem:[%s8635_s11 + $0x150] sm:$0xff] }
 0x74d   : > { %v3527_v27 = vpop.f32.mrb[69].mxu0  ;;  %5421 = vmatprep.subr.bf16.mxu0 %v6207_v42  ;;  %5400 = vmatprep.subr.bf16.mxu1 %v6207_v42 }
 0x74e   : > { %4704 = vmatprep.mubr.msk.f32.mxu0 %vm1830_vm6, %v3527_v27  ;;  %4711 = vmatprep.mubr.msk.f32.mxu1 %vm1830_vm6, %v3527_v27 }
 0x74f   : > { %3674 = vmatmul.mubr.f32.gmra.mrb[82].mxu0 %v3525_v34  ;;  %3803 = vmatmul.mubr.f32.gmra.mrb[124].mxu1 %v3525_v34  ;;  %v4742_v34 = vld [vmem:[%s8635_s11 + $0x148] sm:$0xff] }
 0x750   : > { %5423 = vmatpush3.bf16.msra.mxu0 %v5422_v45  ;;  %4972 = vmatprep.mubr.msk.f32.mxu0 %vm6211_vm9, %v6210_v19  ;;  %v5443_v46 = vpack.c.bf16 %v4742_v34, %v4741_v50  ;;  %v5446_v45 = vpack.c.bf16 %v4745_v62, %v4744_v36  ;;  %v4778_v50 = vld [vmem:[%s8635_s11 + $0x250] sm:$0xff]  ;;  %v4779_v34 = vld [vmem:[%s8635_s11 + $0x258] sm:$0xff]  ;;  %v4784_v62 = vld [vmem:[%s8635_s11 + $0x280] sm:$0xff] }
 0x751   : > { %5424 = vmatprep.subr.bf16.mxu0 %v6207_v42  ;;  %4941 = vmatprep.mubr.msk.f32.mxu1 %vm6211_vm9, %v6210_v19 }
 0x752   : > { %5402 = vmatpush3.bf16.msra.mxu1 %v5401_v3  ;;  %v5449_v3 = vpack.c.bf16 %v4747_v10, %v4746_v25  ;;  %v4786_v10 = vld [vmem:[%s8635_s11 + $0x290] sm:$0xff] }
 0x80a   : > { %v3645_v48 = vpop.f32.mrb[70].mxu0  ;;  %v3774_v26 = vpop.f32.mrb[112].mxu1 }
 0x80b   : > { %v3808_v38 = vmax.f32 %v3645_v48, %v3774_v26  ;;  %v3647_v17 = vpop.f32.mrb[71].mxu0  ;;  %v3776_v30 = vpop.f32.mrb[113].mxu1  ;;  %v4748_v48 = vld [vmem:[%s8635_s11 + $0x170] sm:$0xff]  ;;  %v4749_v26 = vld [vmem:[%s8635_s11 + $0x178] sm:$0xff] }
 0x80c   : > { %v4750_v17 = vld [vmem:[%s8635_s11 + $0x180] sm:$0xff]  ;;  %v4751_v30 = vld [vmem:[%s8635_s11 + $0x188] sm:$0xff] }
 0x80d   : > { %4942 = vmatmul.mubr.msk.f32.vlgmr.msra.gmra.mrb[126].mxu1 %vm2741_vm7, %v3808_v38  ;;  %v5452_v38 = vpack.c.bf16 %v4749_v26, %v4748_v48  ;;  %v5455_v57 = vpack.c.bf16 %v4751_v30, %v4750_v17  ;;  %v4789_v26 = vld [vmem:[%s8635_s11 + $0x2a0] sm:$0xff]  ;;  %v4791_v30 = vld [vmem:[%s8635_s11 + $0x2b0] sm:$0xff] }
 0x80e   : > { %v3650_v18 = vpop.f32.mrb[72].mxu0  ;;  %v3779_v20 = vpop.f32.mrb[114].mxu1 }
 0x80f   : > { %v3809_v51 = vmax.f32 %v3650_v18, %v3779_v20  ;;  %v3652_v44 = vpop.f32.mrb[73].mxu0  ;;  %v3781_v6 = vpop.f32.mrb[115].mxu1  ;;  %v4753_v18 = vld [vmem:[%s8635_s11 + $0x198] sm:$0xff] }
 0x810   : > { %v5458_v20 = vpack.c.bf16 %v4753_v18, %v4752_v0  ;;  %v4756_v6 = vld [vmem:[%s8635_s11 + $0x1b0] sm:$0xff]  ;;  %v4793_v18 = vld [vmem:[%s8635_s11 + $0x2c0] sm:$0xff] }
 0x811   : > { %4973 = vmatmul.mubr.msk.f32.vlgmr.msra.gmra.mrb[84].mxu0 %vm2741_vm7, %v3809_v51  ;;  %v4755_v51 = vld [vmem:[%s8635_s11 + $0x1a8] sm:$0xff]  ;;  %v5464_v58 = vpack.c.bf16 %v4757_v5, %v4756_v6  ;;  %v4799_v6 = vld [vmem:[%s8635_s11 + $0x2f0] sm:$0xff]  ;;  %v4800_v5 = vld [vmem:[%s8635_s11 + $0x2f8] sm:$0xff] }
 0x812   : > { %5426 = vmatpush3.bf16.msra.mxu0 %v5425_v11  ;;  %v3655_v49 = vpop.f32.mrb[74].mxu0  ;;  %v3784_v52 = vpop.f32.mrb[116].mxu1  ;;  %5003 = vmatprep.mubr.msk.f32.mxu0 %vm6211_vm9, %v6210_v19  ;;  %v4754_v11 = vld [vmem:[%s8635_s11 + $0x1a0] sm:$0xff] }
 0x813   : > { %5427 = vmatprep.subr.bf16.mxu0 %v6207_v42  ;;  %v3810_v39 = vmax.f32 %v3655_v49, %v3784_v52  ;;  %v3657_v28 = vpop.f32.mrb[75].mxu0  ;;  %v3786_v7 = vpop.f32.mrb[117].mxu1  ;;  %v5461_v44 = vpack.c.bf16 %v4755_v51, %v4754_v11  ;;  %v4760_v49 = vld [vmem:[%s8635_s11 + $0x1c8] sm:$0xff] }
 0x814   : > { %v4763_v28 = vld [vmem:[%s8635_s11 + $0x1e0] sm:$0xff]  ;;  %v4764_v7 = vld [vmem:[%s8635_s11 + $0x1e8] sm:$0xff] }
 0x815   : > { %v4798_v51 = vld [vmem:[%s8635_s11 + $0x2e8] sm:$0xff] }
 0x816   : > { %5429 = vmatpush3.bf16.msra.mxu0 %v5428_v55  ;;  %v8300_v13 = vpop.f32.mrb[76].mxu0  ;;  %v8302_v23 = vpop.f32.mrb[118].mxu1  ;;  %v4759_v55 = vld [vmem:[%s8635_s11 + $0x1c0] sm:$0xff] }
 0x817   : > { %5430 = vmatprep.subr.bf16.mxu0 %v6207_v42  ;;  %v3811_v43 = vmax.f32 %v8300_v13, %v8302_v23  ;;  %v3662_v8 = vpop.f32.mrb[77].mxu0  ;;  %v3791_v16 = vpop.f32.mrb[119].mxu1  ;;  %v5467_v52 = vpack.c.bf16 %v4760_v49, %v4759_v55  ;;  %v4765_v13 = vld [vmem:[%s8635_s11 + $0x1f0] sm:$0xff]  ;;  %v4766_v23 = vld [vmem:[%s8635_s11 + $0x1f8] sm:$0xff]  ;;  %v4801_v55 = vld [vmem:[%s8635_s11 + $0x300] sm:$0xff] }
 0x818   : > { %v5476_v4 = vpack.c.bf16 %v4766_v23, %v4765_v13  ;;  %v4769_v16 = vld [vmem:[%s8635_s11 + $0x210] sm:$0xff]  ;;  %v4802_v49 = vld [vmem:[%s8635_s11 + $0x308] sm:$0xff] }
 0x81a   : > { %5432 = vmatpush3.bf16.msra.mxu0 %v5431_v61  ;;  %v8313_v2 = vpop.f32.mrb[78].mxu0  ;;  %v8315_v53 = vpop.f32.mrb[120].mxu1  ;;  %v5473_v61 = vpack.c.bf16 %v4764_v7, %v4763_v28 }
 0x81b   : > { %5433 = vmatprep.subr.bf16.mxu0 %v6207_v42  ;;  %v3812_v14 = vmax.f32 %v8313_v2, %v8315_v53  ;;  %v3667_v1 = vpop.f32.mrb[79].mxu0  ;;  %v3796_v41 = vpop.f32.mrb[121].mxu1  ;;  %v4780_v2 = vld [vmem:[%s8635_s11 + $0x260] sm:$0xff]  ;;  %v4781_v53 = vld [vmem:[%s8635_s11 + $0x268] sm:$0xff] }
 0x81c   : > { %v4772_v1 = vld [vmem:[%s8635_s11 + $0x228] sm:$0xff] }
 0x81d   : > { %v5485_v41 = vpack.c.bf16 %v4772_v1, %v4771_v24 }
 0x81e   : > { %5435 = vmatpush3.bf16.msra.mxu0 %v5434_v63  ;;  %v8326_v47 = vpop.f32.mrb[80].mxu0  ;;  %v8328_v60 = vpop.f32.mrb[122].mxu1  ;;  %v4770_v63 = vld [vmem:[%s8635_s11 + $0x218] sm:$0xff] }
 0x81f   : > { %5436 = vmatprep.subr.bf16.mxu0 %v6207_v42  ;;  %v3813_v54 = vmax.f32 %v8326_v47, %v8328_v60  ;;  %v3672_v32 = vpop.f32.mrb[81].mxu0  ;;  %v3801_v56 = vpop.f32.mrb[123].mxu1  ;;  %v5482_v15 = vpack.c.bf16 %v4770_v63, %v4769_v16  ;;  %v4795_v47 = vld [vmem:[%s8635_s11 + $0x2d0] sm:$0xff] }
 0x820   : > { %v4776_v32 = vld [vmem:[%s8635_s11 + $0x240] sm:$0xff]  ;;  %v4777_v56 = vld [vmem:[%s8635_s11 + $0x248] sm:$0xff] }
 0x822   : > { %5438 = vmatpush3.bf16.msra.mxu0 %v5437_v40  ;;  %v8339_v59 = vpop.f32.mrb[82].mxu0  ;;  %v8341_v31 = vpop.f32.mrb[124].mxu1  ;;  %v4774_v40 = vld [vmem:[%s8635_s11 + $0x230] sm:$0xff] }
 0x823   : > { %5439 = vmatprep.subr.bf16.mxu0 %v6207_v42  ;;  %v3814_v27 = vmax.f32 %v8339_v59, %v8341_v31  ;;  %v3677_v33 = vpop.f32.mrb[83].mxu0  ;;  %v3806_v22 = vpop.f32.mrb[125].mxu1  ;;  %v5488_v9 = vpack.c.bf16 %v4775_v35, %v4774_v40 }
 0x824   : > { %v5494_v33 = vpack.c.bf16 %v4779_v34, %v4778_v50  ;;  %v4782_v22 = vld [vmem:[%s8635_s11 + $0x270] sm:$0xff] }
 0x826   : > { %5441 = vmatpush3.bf16.msra.mxu0 %v5440_v12  ;;  %v5491_v12 = vpack.c.bf16 %v4777_v56, %v4776_v32 }
 0x827   : > { %5442 = vmatprep.subr.bf16.mxu0 %v6207_v42 }
 0x82a   : > { %5444 = vmatpush3.bf16.msra.mxu0 %v5443_v46  ;;  %v4783_v46 = vld [vmem:[%s8635_s11 + $0x278] sm:$0xff] }
 0x82b   : > { %5445 = vmatprep.subr.bf16.mxu0 %v6207_v42  ;;  %v5500_v36 = vpack.c.bf16 %v4783_v46, %v4782_v22 }
 0x82d   : > { %5004 = vmatmul.mubr.msk.f32.vlgmr.msra.gmra.mrb[84].mxu0 %vm2741_vm7, %v3810_v39  ;;  %v5470_v39 = vpack.c.bf16 %v4762_v37, %v4761_v21 }
 0x82e   : > { %5447 = vmatpush3.bf16.msra.mxu0 %v5446_v45  ;;  %5034 = vmatprep.mubr.msk.f32.mxu0 %vm6211_vm9, %v6210_v19  ;;  %v4785_v45 = vld [vmem:[%s8635_s11 + $0x288] sm:$0xff] }
 0x82f   : > { %5448 = vmatprep.subr.bf16.mxu0 %v6207_v42  ;;  %v5503_v25 = vpack.c.bf16 %v4785_v45, %v4784_v62 }
 0x832   : > { %5450 = vmatpush3.bf16.msra.mxu0 %v5449_v3  ;;  %v4787_v3 = vld [vmem:[%s8635_s11 + $0x298] sm:$0xff] }
 0x833   : > { %5451 = vmatprep.subr.bf16.mxu0 %v6207_v42  ;;  %v5506_v48 = vpack.c.bf16 %v4787_v3, %v4786_v10 }
 0x836   : > { %5453 = vmatpush3.bf16.msra.mxu0 %v5452_v38  ;;  %v4790_v38 = vld [vmem:[%s8635_s11 + $0x2a8] sm:$0xff] }
 0x837   : > { %5454 = vmatprep.subr.bf16.mxu0 %v6207_v42  ;;  %v5509_v17 = vpack.c.bf16 %v4790_v38, %v4789_v26 }
 0x83a   : > { %5456 = vmatpush3.bf16.msra.mxu0 %v5455_v57  ;;  %v4792_v57 = vld [vmem:[%s8635_s11 + $0x2b8] sm:$0xff] }
 0x83b   : > { %5457 = vmatprep.subr.bf16.mxu0 %v6207_v42  ;;  %v5512_v0 = vpack.c.bf16 %v4792_v57, %v4791_v30 }
 0x83e   : > { %5459 = vmatpush3.bf16.msra.mxu0 %v5458_v20  ;;  %v4794_v20 = vld [vmem:[%s8635_s11 + $0x2c8] sm:$0xff] }
 0x83f   : > { %5460 = vmatprep.subr.bf16.mxu0 %v6207_v42  ;;  %v5515_v11 = vpack.c.bf16 %v4794_v20, %v4793_v18 }
 0x842   : > { %5462 = vmatpush3.bf16.msra.mxu0 %v5461_v44 }
 0x843   : > { %5463 = vmatprep.subr.bf16.mxu0 %v6207_v42 }
 0x846   : > { %5465 = vmatpush3.bf16.msra.mxu0 %v5464_v58  ;;  %v5524_v58 = vpack.c.bf16 %v4800_v5, %v4799_v6 }
 0x847   : > { %5466 = vmatprep.subr.bf16.mxu0 %v6207_v42 }
 0x849   : > { %5035 = vmatmul.mubr.msk.f32.vlgmr.msra.gmra.mrb[84].mxu0 %vm2741_vm7, %v3811_v43  ;;  %v4768_v43 = vld [vmem:[%s8635_s11 + $0x208] sm:$0xff] }
 0x84a   : > { %5468 = vmatpush3.bf16.msra.mxu0 %v5467_v52  ;;  %5065 = vmatprep.mubr.msk.f32.mxu0 %vm6211_vm9, %v6210_v19  ;;  %v5479_v8 = vpack.c.bf16 %v4768_v43, %v4767_v29  ;;  %v5527_v52 = vpack.c.bf16 %v4802_v49, %v4801_v55 }
 0x84b   : > { %5469 = vmatprep.subr.bf16.mxu0 %v6207_v42 }
 0x84e   : > { %5471 = vmatpush3.bf16.msra.mxu0 %v5470_v39  ;;  %v4713_v39 = vld [vmem:[%s8682_s28] ss:$0 sm:$0xff] }
 0x84f   : > { %5472 = vmatprep.subr.bf16.mxu0 %v6207_v42 }
 0x852   : > { %5474 = vmatpush3.bf16.msra.mxu0 %v5473_v61 }
 0x853   : > { %5475 = vmatprep.subr.bf16.mxu0 %v6207_v42 }
 0x856   : > { %5477 = vmatpush3.bf16.msra.mxu0 %v5476_v4 }
 0x857   : > { %5478 = vmatprep.subr.bf16.mxu0 %v6207_v42 }
 0x85a   : > { %5480 = vmatpush3.bf16.msra.mxu0 %v5479_v8 }
 0x85b   : > { %5481 = vmatprep.subr.bf16.mxu0 %v6207_v42 }
 0x85e   : > { %5483 = vmatpush3.bf16.msra.mxu0 %v5482_v15 }
 0x85f   : > { %5484 = vmatprep.subr.bf16.mxu0 %v6207_v42 }
 0x862   : > { %5486 = vmatpush3.bf16.msra.mxu0 %v5485_v41 }
 0x863   : > { %5487 = vmatprep.subr.bf16.mxu0 %v6207_v42 }
 0x865   : > { %5066 = vmatmul.mubr.msk.f32.vlgmr.msra.gmra.mrb[84].mxu0 %vm2741_vm7, %v3812_v14  ;;  %v5497_v14 = vpack.c.bf16 %v4781_v53, %v4780_v2 }
 0x866   : > { %5489 = vmatpush3.bf16.msra.mxu0 %v5488_v9  ;;  %5096 = vmatprep.mubr.msk.f32.mxu0 %vm6211_vm9, %v6210_v19 }
 0x867   : > { %5490 = vmatprep.subr.bf16.mxu0 %v6207_v42 }
 0x86a   : > { %5492 = vmatpush3.bf16.msra.mxu0 %v5491_v12 }
 0x86b   : > { %5493 = vmatprep.subr.bf16.mxu0 %v6207_v42 }
 0x86e   : > { %5495 = vmatpush3.bf16.msra.mxu0 %v5494_v33 }
 0x86f   : > { %5496 = vmatprep.subr.bf16.mxu0 %v6207_v42 }
 0x872   : > { %5498 = vmatpush3.bf16.msra.mxu0 %v5497_v14 }
 0x873   : > { %5499 = vmatprep.subr.bf16.mxu0 %v6207_v42 }
 0x876   : > { %5501 = vmatpush3.bf16.msra.mxu0 %v5500_v36 }
 0x877   : > { %5502 = vmatprep.subr.bf16.mxu0 %v6207_v42 }
 0x87a   : > { %5504 = vmatpush3.bf16.msra.mxu0 %v5503_v25 }
 0x87b   : > { %5505 = vmatprep.subr.bf16.mxu0 %v6207_v42 }
 0x87e   : > { %5507 = vmatpush3.bf16.msra.mxu0 %v5506_v48 }
 0x87f   : > { %5508 = vmatprep.subr.bf16.mxu0 %v6207_v42 }
 0x881   : > { %5097 = vmatmul.mubr.msk.f32.vlgmr.msra.gmra.mrb[84].mxu0 %vm2741_vm7, %v3813_v54  ;;  %v4797_v54 = vld [vmem:[%s8635_s11 + $0x2e0] sm:$0xff] }
 0x882   : > { %5510 = vmatpush3.bf16.msra.mxu0 %v5509_v17  ;;  %5127 = vmatprep.mubr.msk.f32.mxu0 %vm6211_vm9, %v6210_v19  ;;  %v4796_v19 = vld [vmem:[%s8635_s11 + $0x2d8] sm:$0xff]  ;;  %v5521_v44 = vpack.c.bf16 %v4798_v51, %v4797_v54 }
 0x883   : > { %5511 = vmatprep.subr.bf16.mxu0 %v6207_v42  ;;  %v5518_v60 = vpack.c.bf16 %v4796_v19, %v4795_v47 }
 0x886   : > { %5513 = vmatpush3.bf16.msra.mxu0 %v5512_v0 }
 0x887   : > { %5514 = vmatprep.subr.bf16.mxu0 %v6207_v42 }
 0x88a   : > { %5516 = vmatpush3.bf16.msra.mxu0 %v5515_v11 }
 0x88b   : > { %5517 = vmatprep.subr.bf16.mxu0 %v6207_v42 }
 0x88e   : > { %5519 = vmatpush3.bf16.msra.mxu0 %v5518_v60 }
 0x88f   : > { %5520 = vmatprep.subr.bf16.mxu0 %v6207_v42 }
 0x892   : > { %5522 = vmatpush3.bf16.msra.mxu0 %v5521_v44 }
 0x893   : > { %5523 = vmatprep.subr.bf16.mxu0 %v6207_v42 }
 0x896   : > { %5525 = vmatpush3.bf16.msra.mxu0 %v5524_v58 }
 0x897   : > { %5526 = vmatprep.subr.bf16.mxu0 %v6207_v42 }
 0x89a   : > { %5528 = vmatpush3.bf16.msra.mxu0 %v5527_v52 }
 0x89d   : > { %5128 = vmatmul.mubr.msk.f32.vlgmr.msra.gmra.mrb[84].mxu0 %vm2741_vm7, %v3814_v27 }
 0x8e0   : > { %v3899_v21 = vpop.f32.mrb[126].mxu1 }
 0x8e1   : > { %v4943_v37 = vpop.f32.mrb[127].mxu1  ;;  %v3909_v28 = vadd.f32 %v4713_v39, %v3899_v21 }
 0x970   : > { %v4439_v42 = vpop.f32.mrb[84].mxu0 }
 0x971   : > { %v5570_v7 = vadd.f32 %v4439_v42, %v3909_v28  ;;  %v5129_v61 = vpop.f32.mrb[85].mxu0 }
 0x973   : > { %4444 = vst [vmem:[%s493_s20] sm:$0xff] %v5570_v7 }
 0x974   : > { %6132 = shalt.err (!%p6129_p0)
}
 0x975   : > { %s6133_s16 = scalar_lea.hbm %s8582_s13, 128  ;;  %s6137_s30 = scalar_lea.hbm %s8683_s14, 256 }
 0x976   : > { %p6134_p6 = scmp.ne.s32.totalorder %s8582_s13, %s6133_s16  ;;  %p6138_p13 = scmp.lt.u32.totalorder %s8582_s13, %s8683_s14 }
 0x977   : > { %p6139_p12 = scmp.lt.u32.totalorder %s6137_s30, %s6133_s16  ;;  %p6141_p2 = scmp.lt.u32.totalorder %s6133_s16, %s8582_s13 }
 0x978   : > { %p6135_p9 = pnand %p6134_p6, %p8684_p3 }
 0x979   : > { %p6140_p1 = por %p6139_p12, %p6138_p13 }
 0x97a   : > { %p6136_p10 = pneg %p6135_p9 }
 0x97b   : > { %p6142_p4 = por %p6141_p2, %p6140_p1 }
 0x97d   : > { %p6143_p7 = pnand %p6142_p4, %p6136_p10 }
 0x97f   : > { %6146 = shalt.err (!%p6143_p7)
}
 0x980   : > { %5625 = dma.vmem_to_hbm [thread:$0]  (%p8684_p3), %s8584_s23, 128, %s8582_s13, %s4446_s5  }
 0x981 PF: > { %s8685_s12 = sld [smem:[#allocation17_spill]]  ;;  %s8686_s20 = sld [smem:[#allocation15_spill]] }
 0x982   : > { %s8687_s21 = sld [smem:[#allocation20_spill]] }
 0x987   : > { %p5652_p8 = scmp.ge.s32.totalorder %s8685_s12, 2  ;;  %s4471_s24 = sand.u32 1, %s8686_s20  }
 0x988   : > { %p8688_p11 = scmp.ne.s32.totalorder %s8687_s21, 0  ;;  %s4472_s27 = scalar_lea.sflag [#allocation4], %s4471_s24 }
 0x98a   : > { %p5641_p5 = pnand %p5652_p8, %p8688_p11 }
 0x98c   : > { %6176 = dma.done.wait (!%p5641_p5), %s4472_s27, 128  }
 0x98d   : > { %6178 = vsyncadd (!%p5641_p5), %s4472_s27, 4294967168  ;;  %s8689_s28 = sld [smem:[#allocation18_spill]]  ;;  %s8690_s29 = sld [smem:[#allocation16_spill]] }
 0x98e   : > { %s8691_s27 = sld [smem:[#allocation19_spill]]  ;;  %s8692_s25 = smov %s6185_s26 }
 0x993   : > { %p26_p0 = scmp.ge.s32.totalorder %s8689_s28, 4   ;;  %s8693_s26 = smov %s8690_s29 }
 0x995   :  { %28 = sbr.rel (!%p26_p0) target bundleno = 10 (0xa), region = 132 }
 0x99c   :  { %4477 = vsyncpa [#allocation3], 1 }
 0x99d   :  { %4479 = vsyncpa [#allocation3 + $0x1], 1 }
 0x99e   :  { %4480 = vsyncpa [#allocation6], 1 }
 0x99f   :  { %4481 = vsyncpa [#allocation9], 1 }
 0x9a0   :  { %4482 = vsyncpa [#allocation4], 1 }
 0x9a1   :  { %4484 = vsyncpa [#allocation4 + $0x1], 1 }

</bundles_post_ra>
